<compile_context>
chip_gen: v5e
topology: v5e:2x2
jax: 0.10.0
libtpu: 0.0.40
codegen_flags: <defaults>
</compile_context>

<pallas_src>
import functools

import jax
import jax.numpy as jnp
from jax.experimental import pallas as pl
from jax.experimental.pallas import tpu as pltpu

BRANCH_KS = (1, 3, 5, 7, 9, 11, 13, 15)
BRANCH_COUT = (1, 5, 5, 5, 5, 5, 5, 5)
CP = 128                       # lane-dense padded channel dimension


def _round_up(n, m):
    return (n + m - 1) // m * m


def _vmem_budget_bytes():
    """Generation-aware VMEM budget (fallback sized for v7x's 64 MiB)."""
    try:
        cap = int(pltpu.get_tpu_info().vmem_capacity_bytes)
    except Exception:
        cap = 64 * 1024 * 1024
    return max(16 * 1024 * 1024, min(cap * 3 // 4, 100 * 1024 * 1024))


def _vmem_estimate(TB, S):
    """Conservative per-step VMEM estimate (assumes double-buffered consts)."""
    TBS = TB * S
    LP = TBS + 16
    f, h, lane = 4, 2, CP
    est = 0
    est += 2 * TBS * lane * f                       # patches block (lane-padded)
    est += 2 * 16 * lane * f                        # W1
    est += 2 * 15 * lane * lane * h                 # W2 (bf16)
    est += 2 * 2 * TBS * lane * f                   # bD_full, G_full
    est += 2 * _round_up(TB, 8) * _round_up(TBS, 128) * f   # sel
    est += 2 * _round_up(TB, 8) * lane * f          # out block
    est += LP * lane * f                            # staging scratch
    est += 6 * TBS * lane * f                       # in-kernel temporaries / spills
    return est


# ------------------------------ fused kernel ------------------------------- #

def _pnngs_fused_kernel(patches_ref, w1_ref, w2_ref, bd_ref, g_ref, sel_ref,
                        bias_ref, out_ref, buf_ref, *, TB, S):
    """One batch tile (TB stacked examples) per grid step; VMEM-resident."""
    f32 = jnp.float32
    bf16 = jnp.bfloat16
    TBS = TB * S
    LP = buf_ref.shape[0]

    # conv1 (stride-2 Inception composite) + bias + ReLU as one MXU matmul.
    # The patches' ones-column carries the bias; halo rows (all-zero patches,
    # zero ones-column) therefore stay exactly zero after the ReLU.
    p = patches_ref[0]                                          # (TBS, 16)
    h1 = jnp.maximum(jnp.dot(p, w1_ref[...], preferred_element_type=f32), 0.0)
    buf_ref[0:TBS, :] = h1
    # Zero only the small trailing halo used by the last example's windows
    # (done every step: the grid axis is "parallel", so step 0 may not run on
    # every core and the scratch is per-core / uninitialized).
    buf_ref[TBS:LP, :] = jnp.zeros((LP - TBS, CP), f32)

    # conv2 (stride-1 Inception composite): 15 taps; windows are ref-sliced
    # straight from the staging scratch; bf16 MXU operands, f32 accumulation.
    # BatchNorm scale is pre-folded into W2; shift is handled by bD below.
    acc = jnp.zeros((TBS, CP), f32)
    for k in range(15):
        win = buf_ref[k:k + TBS, :].astype(bf16)
        acc = acc + jnp.dot(win, w2_ref[k], preferred_element_type=f32)
    # TODO(synk): pair taps into K=256 matmuls (lane-concat adjacent windows)
    # on v6e/v7x, and pack taps*channels into K once genuinely MXU-bound.

    # conv2 bias + BN-shift correction + ReLU, then the folded
    # conv3 + flatten + fc reduction for every example of the tile:
    #   per_ex[tb, :] = sum over that example's rows of relu(acc + bD) * G
    h2g = jnp.maximum(acc + bd_ref[...], 0.0) * g_ref[...]      # (TBS, CP)
    per_ex = jnp.dot(sel_ref[...], h2g, preferred_element_type=f32)  # (TB, CP)
    tot = jnp.sum(per_ex, axis=1, keepdims=True) + bias_ref[0, 0]    # (TB, 1)
    out_ref[0] = tot * jnp.ones((1, CP), f32)                   # lane-dense store


# ------------------------------ forward wrapper ----------------------------- #

def pnngs_forward(x_ncl, kp, *, single_buffer_consts=True):
    B, cin, L = x_ncl.shape
    assert cin == 1
    L1 = (L + 1) // 2                       # ceil(L/2) = conv1 output length
    S = _round_up(L1 + 7, 16)               # per-example row stride (incl. halo)

    budget = _vmem_budget_bytes()
    # Batch-tile size: fill the MXU M dimension (~256 rows) while keeping at
    # least two grid blocks for v7x's two TensorCores and fitting VMEM.
    TB = max(1, min(B, max(1, 256 // S)))
    if B >= 2:
        TB = min(TB, max(1, (B + 1) // 2))
    while TB > 1 and _vmem_estimate(TB, S) > budget:
        TB -= 1
    if _vmem_estimate(TB, S) > budget:
        # TODO(synk): tile the position (L1) axis with a 15-row halo for very
        # long sequences instead of keeping a whole example resident in VMEM.
        raise ValueError("sequence too long for single-block kernel")
    NB = -(-B // TB)
    Bp = NB * TB
    TBS = TB * S
    LP = TBS + 16

    f32 = jnp.float32
    x = x_ncl[:, 0, :].astype(f32)                              # (B, L)
    if Bp > B:
        x = jnp.concatenate([x, jnp.zeros((Bp - B, L), f32)], axis=0)

    # conv1 im2col (stride 2, K=15) + ones column (folded bias), laid out
    # directly in the stacked per-tile staging geometry (halo rows all-zero).
    xpad = jnp.zeros((Bp, L + 14), f32).at[:, 7:7 + L].set(x)
    idx = 2 * jnp.arange(L1)[:, None] + jnp.arange(15)[None, :]  # (L1, 15)
    pat = xpad[:, idx]                                           # (Bp, L1, 15)
    pat = jnp.concatenate([pat, jnp.ones((Bp, L1, 1), f32)], axis=-1)
    patches = (jnp.zeros((NB, TB, S, 16), f32)
               .at[:, :, 7:7 + L1, :].set(pat.reshape(NB, TB, L1, 16))
               .reshape(NB, TBS, 16))

    # Per-tile constants in the stacked layout.
    bD_full = (jnp.zeros((TB, S, CP), f32).at[:, :L1, :].set(kp["bD"][None])
               .reshape(TBS, CP))
    G_full = (jnp.zeros((TB, S, CP), f32).at[:, :L1, :].set(kp["G"][None])
              .reshape(TBS, CP))
    sel = jnp.repeat(jnp.eye(TB, dtype=f32), S, axis=1)          # (TB, TBS)

    def const_spec(shape):
        idx_map = (lambda nb: (0, 0)) if len(shape) == 2 else (lambda nb: (0, 0, 0))
        if single_buffer_consts:
            return pl.BlockSpec(shape, idx_map, pipeline_mode=pl.Buffered(1))
        return pl.BlockSpec(shape, idx_map)

    kernel = functools.partial(_pnngs_fused_kernel, TB=TB, S=S)
    out = pl.pallas_call(
        kernel,
        out_shape=jax.ShapeDtypeStruct((NB, TB, CP), f32),
        grid=(NB,),
        in_specs=[
            pl.BlockSpec((1, TBS, 16), lambda nb: (nb, 0, 0)),   # conv1 patches
            const_spec((16, CP)),                                # W1 (+bias row)
            const_spec((15, CP, CP)),                            # W2 (bf16, BN-scale folded)
            const_spec((TBS, CP)),                               # bD (b2 + BN-shift term)
            const_spec((TBS, CP)),                               # G  (conv3+flatten+fc fold)
            const_spec((TB, TBS)),                               # per-example row selector
            pl.BlockSpec(memory_space=pltpu.MemorySpace.SMEM),   # fused scalar bias (1,1)
        ],
        out_specs=pl.BlockSpec((1, TB, CP), lambda nb: (nb, 0, 0)),
        scratch_shapes=[pltpu.VMEM((LP, CP), f32)],
        compiler_params=pltpu.CompilerParams(
            dimension_semantics=("parallel",),       # shard batch tiles across TCs
            vmem_limit_bytes=budget),
    )(patches, kp["W1"], kp["W2"], bD_full, G_full, sel, kp["bias"])
    return out.reshape(Bp, CP)[:B, 0:1]                          # (B, 1)


# ------------------------------ parameters --------------------------------- #

def _make_inception_composite(key, in_channels, parallel_number):
    """Assemble Inception1d branches into one zero-embedded (Cout, Cin, 15) conv."""
    ks = BRANCH_KS[:parallel_number]
    couts = BRANCH_COUT[:parallel_number]
    c_total = sum(couts)
    w = jnp.zeros((c_total, in_channels, 15), jnp.float32)
    b = jnp.zeros((c_total,), jnp.float32)
    off = 0
    for K, co in zip(ks, couts):
        key, k1, k2 = jax.random.split(key, 3)
        fan = in_channels * K
        wb = jax.random.normal(k1, (co, in_channels, K), jnp.float32) * (2.0 / fan) ** 0.5
        bb = 0.01 * jax.random.normal(k2, (co,), jnp.float32)
        start = (15 - K) // 2
        w = w.at[off:off + co, :, start:start + K].set(wb)
        b = b.at[off:off + co].set(bb)
        off += co
    return w, b


def init_raw_params(key, parallel_number, L):
    """Torch-layout parameters (used both by the reference and to pack the kernel)."""
    C1 = sum(BRANCH_COUT[:parallel_number])
    L1 = (L + 1) // 2
    keys = jax.random.split(key, 10)
    w1, b1 = _make_inception_composite(keys[0], 1, parallel_number)   # stride 2
    w2, b2 = _make_inception_composite(keys[1], C1, parallel_number)  # stride 1
    w3 = jax.random.normal(keys[2], (3, C1, 3), jnp.float32) * (2.0 / (C1 * 3)) ** 0.5
    b3 = 0.01 * jax.random.normal(keys[3], (3,), jnp.float32)
    eps = 1e-5
    gamma = 1.0 + 0.1 * jax.random.normal(keys[4], (C1,), jnp.float32)
    beta = 0.1 * jax.random.normal(keys[5], (C1,), jnp.float32)
    r_mean = 0.1 * jax.random.normal(keys[6], (C1,), jnp.float32)
    r_var = jnp.abs(1.0 + 0.1 * jax.random.normal(keys[7], (C1,), jnp.float32))
    bn_scale = gamma / jnp.sqrt(r_var + eps)
    bn_shift = beta - r_mean * bn_scale
    wfc = 0.01 * jax.random.normal(keys[8], (1, 3 * L1), jnp.float32)  # torch Linear layout
    bfc = jnp.zeros((1,), jnp.float32)
    return dict(w1_oik=w1, b1=b1, w2_oik=w2, b2=b2, w3_oik=w3, b3=b3,
                bn_scale=bn_scale, bn_shift=bn_shift, wfc=wfc, bfc=bfc)


def pack_kernel_params(raw, L):
    """Lane-dense (CP=128) kernel params with all affine folds pre-applied."""
    C1 = raw["w1_oik"].shape[0]
    L1 = (L + 1) // 2
    assert C1 <= CP
    f32 = jnp.float32

    # conv1 taps + bias folded into one (16, CP) matmul weight
    # (row 15 = bias, driven by the ones-column of the im2col patches).
    W1 = jnp.zeros((16, CP), f32)
    W1 = W1.at[:15, :C1].set(jnp.transpose(raw["w1_oik"][:, 0, :]))
    W1 = W1.at[15, :C1].set(raw["b1"])

    # BatchNorm (inference) scale folded into W2's input-channel rows; bf16.
    w2_kic = jnp.transpose(raw["w2_oik"], (2, 1, 0))            # (15, Cin, Cout)
    w2_kic = w2_kic * raw["bn_scale"][None, :, None]
    W2 = (jnp.zeros((15, CP, CP), f32).at[:, :C1, :C1].set(w2_kic)
          .astype(jnp.bfloat16))

    # BatchNorm shift contribution to conv2 (position dependent, edge-aware):
    #   D[l, co] = sum_k 1[0 <= l+k-7 < L1] * sum_ci bn_shift[ci]*w2[co,ci,k]
    v = jnp.einsum("i,oik->ko", raw["bn_shift"], raw["w2_oik"])  # (15, C1)
    D = jnp.zeros((L1, C1), f32)
    for k in range(15):
        lo, hi = max(0, 7 - k), min(L1, 7 - k + L1)
        if lo < hi:
            D = D.at[lo:hi, :].add(v[k][None, :])
    bD = jnp.zeros((L1, CP), f32).at[:, :C1].set(D + raw["b2"][None, :])

    # Fold conv3 (K=3, pad=1) + torch.flatten + fc into one reduction weight:
    #   out = sum_{l,ci} h2[l,ci] * G[l,ci] + bias
    wfc3 = raw["wfc"].reshape(3, L1)
    G = jnp.zeros((L1, C1), f32)
    for t in range(3):
        A = jnp.einsum("cm,ci->mi", wfc3, raw["w3_oik"][:, :, t])   # (L1, C1)
        s = t - 1
        lo, hi = max(0, s), min(L1, L1 + s)
        G = G.at[lo:hi, :].add(A[lo - s:hi - s, :])
    Gp = jnp.zeros((L1, CP), f32).at[:, :C1].set(G)
    bias = jnp.reshape(raw["bfc"][0]
                       + jnp.sum(raw["b3"] * jnp.sum(wfc3, axis=1)), (1, 1))
    return dict(W1=W1, W2=W2, bD=bD, G=Gp, bias=bias.astype(f32))


# ------------------------- pure-JAX reference check ------------------------ #

def _ref_forward(x_ncl, raw):
    def conv1d(x, w, b, stride, pad):
        y = jax.lax.conv_general_dilated(
            x, w, window_strides=(stride,), padding=[(pad, pad)],
            dimension_numbers=("NCH", "OIH", "NCH"))
        return y + b[None, :, None]

    h = conv1d(x_ncl, raw["w1_oik"], raw["b1"], 2, 7)
    h = jnp.maximum(h, 0.0)
    h = h * raw["bn_scale"][None, :, None] + raw["bn_shift"][None, :, None]
    h = conv1d(h, raw["w2_oik"], raw["b2"], 1, 7)
    h = jnp.maximum(h, 0.0)
    h = conv1d(h, raw["w3_oik"], raw["b3"], 1, 1)
    flat = h.reshape(h.shape[0], -1)                            # torch.flatten(x, 1)
    return flat @ raw["wfc"].T + raw["bfc"][None, :]


# --------------------------------- main ------------------------------------ #

if __name__ == "__main__":
    configs = [
        dict(B=8, L=16, parallel_number=3),   # batch tiling: TB=4, 2 grid blocks
        dict(B=3, L=19, parallel_number=8),   # odd L, batch padding, full Inception
    ]
    key = jax.random.PRNGKey(0)
    for cfg in configs:
        key, kx, kp_key = jax.random.split(key, 3)
        x = jax.random.normal(kx, (cfg["B"], 1, cfg["L"]), jnp.float32)
        raw = init_raw_params(kp_key, cfg["parallel_number"], cfg["L"])
        kparams = pack_kernel_params(raw, cfg["L"])

        try:
            fwd = jax.jit(functools.partial(pnngs_forward, single_buffer_consts=True))
            out = fwd(x, kparams)
            out = jax.block_until_ready(out)
        except Exception:
            # Fallback if this JAX build rejects single-buffered BlockSpecs.
            fwd = jax.jit(functools.partial(pnngs_forward, single_buffer_consts=False))
            out = jax.block_until_ready(fwd(x, kparams))

        assert out.shape == (cfg["B"], 1), (cfg, out.shape)
        ref = _ref_forward(x, raw)
        # bf16 conv2 operands (f32 accumulation) -> slightly loosened tolerance.
        assert jnp.allclose(out, ref, atol=5e-2, rtol=5e-2), (cfg, out, ref)

    print("KERNEL_OK")
</pallas_src>

<mosaic_0001>
module attributes {stable_mosaic.version = 11 : i64} {
  func.func @_pnngs_fused_kernel(%arg0: i32, %arg1: memref<1x64x16xf32, #tpu.memory_space<vmem>>, %arg2: memref<16x128xf32, #tpu.memory_space<vmem>>, %arg3: memref<15x128x128xbf16, #tpu.memory_space<vmem>>, %arg4: memref<64x128xf32, #tpu.memory_space<vmem>>, %arg5: memref<64x128xf32, #tpu.memory_space<vmem>>, %arg6: memref<4x64xf32, #tpu.memory_space<vmem>>, %arg7: memref<1x1xf32, #tpu.memory_space<smem>>, %arg8: memref<1x4x128xf32, #tpu.memory_space<vmem>>, %arg9: memref<80x128xf32, #tpu.memory_space<vmem>>) attributes {dimension_semantics = [#tpu.dimension_semantics<parallel>], iteration_bounds = array<i64: 2>, scalar_prefetch = 0 : i64, scratch_operands = 1 : i64, tpu.core_type = #tpu.core_type<tc>, window_params = [{transform_indices = @transform_0, window_bounds = array<i64: 1, 64, 16>}, {pipeline_mode = #tpu.pipeline_mode<synchronous>, transform_indices = @transform_1, window_bounds = array<i64: 16, 128>}, {pipeline_mode = #tpu.pipeline_mode<synchronous>, transform_indices = @transform_2, window_bounds = array<i64: 15, 128, 128>}, {pipeline_mode = #tpu.pipeline_mode<synchronous>, transform_indices = @transform_3, window_bounds = array<i64: 64, 128>}, {pipeline_mode = #tpu.pipeline_mode<synchronous>, transform_indices = @transform_4, window_bounds = array<i64: 64, 128>}, {pipeline_mode = #tpu.pipeline_mode<synchronous>, transform_indices = @transform_5, window_bounds = array<i64: 4, 64>}, {transform_indices = @transform_6, window_bounds = array<i64: 1, 1>}, {transform_indices = @transform_7, window_bounds = array<i64: 1, 4, 128>}]} {
    %c0 = arith.constant 0 : index
    %c0_0 = arith.constant 0 : index
    %c0_1 = arith.constant 0 : index
    %0 = vector.load %arg1[%c0, %c0_0, %c0_1] : memref<1x64x16xf32, #tpu.memory_space<vmem>>, vector<1x64x16xf32>
    %1 = vector.shape_cast %0 : vector<1x64x16xf32> to vector<64x16xf32>
    %c0_2 = arith.constant 0 : index
    %c0_3 = arith.constant 0 : index
    %2 = vector.load %arg2[%c0_2, %c0_3] : memref<16x128xf32, #tpu.memory_space<vmem>>, vector<16x128xf32>
    %cst = arith.constant dense<0.000000e+00> : vector<64x128xf32>
    %3 = tpu.matmul %1, %2, %cst {dimension_numbers = #tpu.dot_dimension_numbers<[1], [0], [0], [1], [0, 0, 1, 1], [], []>} : vector<64x16xf32>, vector<16x128xf32>, vector<64x128xf32> -> vector<64x128xf32>
    %cst_4 = arith.constant 0.000000e+00 : f32
    %4 = vector.broadcast %cst_4 : f32 to vector<64x128xf32>
    %5 = arith.maximumf %3, %4 : vector<64x128xf32>
    %c0_5 = arith.constant 0 : index
    %c0_6 = arith.constant 0 : index
    %6 = vector.load %arg9[%c0_5, %c0_6] : memref<80x128xf32, #tpu.memory_space<vmem>>, vector<64x128xf32>
    tpu.vector_store %arg9[%c0_5, %c0_6], %5 {strides = array<i32>} : memref<80x128xf32, #tpu.memory_space<vmem>>, vector<64x128xf32>,
    %cst_7 = arith.constant 0.000000e+00 : f32
    %7 = vector.broadcast %cst_7 : f32 to vector<16x128xf32>
    %c64 = arith.constant 64 : index
    %c0_8 = arith.constant 0 : index
    %8 = vector.load %arg9[%c64, %c0_8] : memref<80x128xf32, #tpu.memory_space<vmem>>, vector<16x128xf32>
    tpu.vector_store %arg9[%c64, %c0_8], %7 {strides = array<i32>} : memref<80x128xf32, #tpu.memory_space<vmem>>, vector<16x128xf32>,
    %cst_9 = arith.constant 0.000000e+00 : f32
    %9 = vector.broadcast %cst_9 : f32 to vector<64x128xf32>
    %c0_10 = arith.constant 0 : index
    %c0_11 = arith.constant 0 : index
    %10 = vector.load %arg9[%c0_10, %c0_11] : memref<80x128xf32, #tpu.memory_space<vmem>>, vector<64x128xf32>
    %11 = arith.truncf %10 : vector<64x128xf32> to vector<64x128xbf16>
    %c0_12 = arith.constant 0 : index
    %c0_13 = arith.constant 0 : index
    %c0_14 = arith.constant 0 : index
    %12 = vector.load %arg3[%c0_12, %c0_13, %c0_14] : memref<15x128x128xbf16, #tpu.memory_space<vmem>>, vector<1x128x128xbf16>
    %13 = vector.shape_cast %12 : vector<1x128x128xbf16> to vector<128x128xbf16>
    %cst_15 = arith.constant dense<0.000000e+00> : vector<64x128xf32>
    %14 = tpu.matmul %11, %13, %cst_15 {dimension_numbers = #tpu.dot_dimension_numbers<[1], [0], [0], [1], [0, 0, 1, 1], [], []>} : vector<64x128xbf16>, vector<128x128xbf16>, vector<64x128xf32> -> vector<64x128xf32>
    %15 = arith.addf %9, %14 : vector<64x128xf32>
    %c1 = arith.constant 1 : index
    %c0_16 = arith.constant 0 : index
    %16 = vector.load %arg9[%c1, %c0_16] : memref<80x128xf32, #tpu.memory_space<vmem>>, vector<64x128xf32>
    %17 = arith.truncf %16 : vector<64x128xf32> to vector<64x128xbf16>
    %c1_17 = arith.constant 1 : index
    %c0_18 = arith.constant 0 : index
    %c0_19 = arith.constant 0 : index
    %18 = vector.load %arg3[%c1_17, %c0_18, %c0_19] : memref<15x128x128xbf16, #tpu.memory_space<vmem>>, vector<1x128x128xbf16>
    %19 = vector.shape_cast %18 : vector<1x128x128xbf16> to vector<128x128xbf16>
    %cst_20 = arith.constant dense<0.000000e+00> : vector<64x128xf32>
    %20 = tpu.matmul %17, %19, %cst_20 {dimension_numbers = #tpu.dot_dimension_numbers<[1], [0], [0], [1], [0, 0, 1, 1], [], []>} : vector<64x128xbf16>, vector<128x128xbf16>, vector<64x128xf32> -> vector<64x128xf32>
    %21 = arith.addf %15, %20 : vector<64x128xf32>
    %c2 = arith.constant 2 : index
    %c0_21 = arith.constant 0 : index
    %22 = vector.load %arg9[%c2, %c0_21] : memref<80x128xf32, #tpu.memory_space<vmem>>, vector<64x128xf32>
    %23 = arith.truncf %22 : vector<64x128xf32> to vector<64x128xbf16>
    %c2_22 = arith.constant 2 : index
    %c0_23 = arith.constant 0 : index
    %c0_24 = arith.constant 0 : index
    %24 = vector.load %arg3[%c2_22, %c0_23, %c0_24] : memref<15x128x128xbf16, #tpu.memory_space<vmem>>, vector<1x128x128xbf16>
    %25 = vector.shape_cast %24 : vector<1x128x128xbf16> to vector<128x128xbf16>
    %cst_25 = arith.constant dense<0.000000e+00> : vector<64x128xf32>
    %26 = tpu.matmul %23, %25, %cst_25 {dimension_numbers = #tpu.dot_dimension_numbers<[1], [0], [0], [1], [0, 0, 1, 1], [], []>} : vector<64x128xbf16>, vector<128x128xbf16>, vector<64x128xf32> -> vector<64x128xf32>
    %27 = arith.addf %21, %26 : vector<64x128xf32>
    %c3 = arith.constant 3 : index
    %c0_26 = arith.constant 0 : index
    %28 = vector.load %arg9[%c3, %c0_26] : memref<80x128xf32, #tpu.memory_space<vmem>>, vector<64x128xf32>
    %29 = arith.truncf %28 : vector<64x128xf32> to vector<64x128xbf16>
    %c3_27 = arith.constant 3 : index
    %c0_28 = arith.constant 0 : index
    %c0_29 = arith.constant 0 : index
    %30 = vector.load %arg3[%c3_27, %c0_28, %c0_29] : memref<15x128x128xbf16, #tpu.memory_space<vmem>>, vector<1x128x128xbf16>
    %31 = vector.shape_cast %30 : vector<1x128x128xbf16> to vector<128x128xbf16>
    %cst_30 = arith.constant dense<0.000000e+00> : vector<64x128xf32>
    %32 = tpu.matmul %29, %31, %cst_30 {dimension_numbers = #tpu.dot_dimension_numbers<[1], [0], [0], [1], [0, 0, 1, 1], [], []>} : vector<64x128xbf16>, vector<128x128xbf16>, vector<64x128xf32> -> vector<64x128xf32>
    %33 = arith.addf %27, %32 : vector<64x128xf32>
    %c4 = arith.constant 4 : index
    %c0_31 = arith.constant 0 : index
    %34 = vector.load %arg9[%c4, %c0_31] : memref<80x128xf32, #tpu.memory_space<vmem>>, vector<64x128xf32>
    %35 = arith.truncf %34 : vector<64x128xf32> to vector<64x128xbf16>
    %c4_32 = arith.constant 4 : index
    %c0_33 = arith.constant 0 : index
    %c0_34 = arith.constant 0 : index
    %36 = vector.load %arg3[%c4_32, %c0_33, %c0_34] : memref<15x128x128xbf16, #tpu.memory_space<vmem>>, vector<1x128x128xbf16>
    %37 = vector.shape_cast %36 : vector<1x128x128xbf16> to vector<128x128xbf16>
    %cst_35 = arith.constant dense<0.000000e+00> : vector<64x128xf32>
    %38 = tpu.matmul %35, %37, %cst_35 {dimension_numbers = #tpu.dot_dimension_numbers<[1], [0], [0], [1], [0, 0, 1, 1], [], []>} : vector<64x128xbf16>, vector<128x128xbf16>, vector<64x128xf32> -> vector<64x128xf32>
    %39 = arith.addf %33, %38 : vector<64x128xf32>
    %c5 = arith.constant 5 : index
    %c0_36 = arith.constant 0 : index
    %40 = vector.load %arg9[%c5, %c0_36] : memref<80x128xf32, #tpu.memory_space<vmem>>, vector<64x128xf32>
    %41 = arith.truncf %40 : vector<64x128xf32> to vector<64x128xbf16>
    %c5_37 = arith.constant 5 : index
    %c0_38 = arith.constant 0 : index
    %c0_39 = arith.constant 0 : index
    %42 = vector.load %arg3[%c5_37, %c0_38, %c0_39] : memref<15x128x128xbf16, #tpu.memory_space<vmem>>, vector<1x128x128xbf16>
    %43 = vector.shape_cast %42 : vector<1x128x128xbf16> to vector<128x128xbf16>
    %cst_40 = arith.constant dense<0.000000e+00> : vector<64x128xf32>
    %44 = tpu.matmul %41, %43, %cst_40 {dimension_numbers = #tpu.dot_dimension_numbers<[1], [0], [0], [1], [0, 0, 1, 1], [], []>} : vector<64x128xbf16>, vector<128x128xbf16>, vector<64x128xf32> -> vector<64x128xf32>
    %45 = arith.addf %39, %44 : vector<64x128xf32>
    %c6 = arith.constant 6 : index
    %c0_41 = arith.constant 0 : index
    %46 = vector.load %arg9[%c6, %c0_41] : memref<80x128xf32, #tpu.memory_space<vmem>>, vector<64x128xf32>
    %47 = arith.truncf %46 : vector<64x128xf32> to vector<64x128xbf16>
    %c6_42 = arith.constant 6 : index
    %c0_43 = arith.constant 0 : index
    %c0_44 = arith.constant 0 : index
    %48 = vector.load %arg3[%c6_42, %c0_43, %c0_44] : memref<15x128x128xbf16, #tpu.memory_space<vmem>>, vector<1x128x128xbf16>
    %49 = vector.shape_cast %48 : vector<1x128x128xbf16> to vector<128x128xbf16>
    %cst_45 = arith.constant dense<0.000000e+00> : vector<64x128xf32>
    %50 = tpu.matmul %47, %49, %cst_45 {dimension_numbers = #tpu.dot_dimension_numbers<[1], [0], [0], [1], [0, 0, 1, 1], [], []>} : vector<64x128xbf16>, vector<128x128xbf16>, vector<64x128xf32> -> vector<64x128xf32>
    %51 = arith.addf %45, %50 : vector<64x128xf32>
    %c7 = arith.constant 7 : index
    %c0_46 = arith.constant 0 : index
    %52 = vector.load %arg9[%c7, %c0_46] : memref<80x128xf32, #tpu.memory_space<vmem>>, vector<64x128xf32>
    %53 = arith.truncf %52 : vector<64x128xf32> to vector<64x128xbf16>
    %c7_47 = arith.constant 7 : index
    %c0_48 = arith.constant 0 : index
    %c0_49 = arith.constant 0 : index
    %54 = vector.load %arg3[%c7_47, %c0_48, %c0_49] : memref<15x128x128xbf16, #tpu.memory_space<vmem>>, vector<1x128x128xbf16>
    %55 = vector.shape_cast %54 : vector<1x128x128xbf16> to vector<128x128xbf16>
    %cst_50 = arith.constant dense<0.000000e+00> : vector<64x128xf32>
    %56 = tpu.matmul %53, %55, %cst_50 {dimension_numbers = #tpu.dot_dimension_numbers<[1], [0], [0], [1], [0, 0, 1, 1], [], []>} : vector<64x128xbf16>, vector<128x128xbf16>, vector<64x128xf32> -> vector<64x128xf32>
    %57 = arith.addf %51, %56 : vector<64x128xf32>
    %c8 = arith.constant 8 : index
    %c0_51 = arith.constant 0 : index
    %58 = vector.load %arg9[%c8, %c0_51] : memref<80x128xf32, #tpu.memory_space<vmem>>, vector<64x128xf32>
    %59 = arith.truncf %58 : vector<64x128xf32> to vector<64x128xbf16>
    %c8_52 = arith.constant 8 : index
    %c0_53 = arith.constant 0 : index
    %c0_54 = arith.constant 0 : index
    %60 = vector.load %arg3[%c8_52, %c0_53, %c0_54] : memref<15x128x128xbf16, #tpu.memory_space<vmem>>, vector<1x128x128xbf16>
    %61 = vector.shape_cast %60 : vector<1x128x128xbf16> to vector<128x128xbf16>
    %cst_55 = arith.constant dense<0.000000e+00> : vector<64x128xf32>
    %62 = tpu.matmul %59, %61, %cst_55 {dimension_numbers = #tpu.dot_dimension_numbers<[1], [0], [0], [1], [0, 0, 1, 1], [], []>} : vector<64x128xbf16>, vector<128x128xbf16>, vector<64x128xf32> -> vector<64x128xf32>
    %63 = arith.addf %57, %62 : vector<64x128xf32>
    %c9 = arith.constant 9 : index
    %c0_56 = arith.constant 0 : index
    %64 = vector.load %arg9[%c9, %c0_56] : memref<80x128xf32, #tpu.memory_space<vmem>>, vector<64x128xf32>
    %65 = arith.truncf %64 : vector<64x128xf32> to vector<64x128xbf16>
    %c9_57 = arith.constant 9 : index
    %c0_58 = arith.constant 0 : index
    %c0_59 = arith.constant 0 : index
    %66 = vector.load %arg3[%c9_57, %c0_58, %c0_59] : memref<15x128x128xbf16, #tpu.memory_space<vmem>>, vector<1x128x128xbf16>
    %67 = vector.shape_cast %66 : vector<1x128x128xbf16> to vector<128x128xbf16>
    %cst_60 = arith.constant dense<0.000000e+00> : vector<64x128xf32>
    %68 = tpu.matmul %65, %67, %cst_60 {dimension_numbers = #tpu.dot_dimension_numbers<[1], [0], [0], [1], [0, 0, 1, 1], [], []>} : vector<64x128xbf16>, vector<128x128xbf16>, vector<64x128xf32> -> vector<64x128xf32>
    %69 = arith.addf %63, %68 : vector<64x128xf32>
    %c10 = arith.constant 10 : index
    %c0_61 = arith.constant 0 : index
    %70 = vector.load %arg9[%c10, %c0_61] : memref<80x128xf32, #tpu.memory_space<vmem>>, vector<64x128xf32>
    %71 = arith.truncf %70 : vector<64x128xf32> to vector<64x128xbf16>
    %c10_62 = arith.constant 10 : index
    %c0_63 = arith.constant 0 : index
    %c0_64 = arith.constant 0 : index
    %72 = vector.load %arg3[%c10_62, %c0_63, %c0_64] : memref<15x128x128xbf16, #tpu.memory_space<vmem>>, vector<1x128x128xbf16>
    %73 = vector.shape_cast %72 : vector<1x128x128xbf16> to vector<128x128xbf16>
    %cst_65 = arith.constant dense<0.000000e+00> : vector<64x128xf32>
    %74 = tpu.matmul %71, %73, %cst_65 {dimension_numbers = #tpu.dot_dimension_numbers<[1], [0], [0], [1], [0, 0, 1, 1], [], []>} : vector<64x128xbf16>, vector<128x128xbf16>, vector<64x128xf32> -> vector<64x128xf32>
    %75 = arith.addf %69, %74 : vector<64x128xf32>
    %c11 = arith.constant 11 : index
    %c0_66 = arith.constant 0 : index
    %76 = vector.load %arg9[%c11, %c0_66] : memref<80x128xf32, #tpu.memory_space<vmem>>, vector<64x128xf32>
    %77 = arith.truncf %76 : vector<64x128xf32> to vector<64x128xbf16>
    %c11_67 = arith.constant 11 : index
    %c0_68 = arith.constant 0 : index
    %c0_69 = arith.constant 0 : index
    %78 = vector.load %arg3[%c11_67, %c0_68, %c0_69] : memref<15x128x128xbf16, #tpu.memory_space<vmem>>, vector<1x128x128xbf16>
    %79 = vector.shape_cast %78 : vector<1x128x128xbf16> to vector<128x128xbf16>
    %cst_70 = arith.constant dense<0.000000e+00> : vector<64x128xf32>
    %80 = tpu.matmul %77, %79, %cst_70 {dimension_numbers = #tpu.dot_dimension_numbers<[1], [0], [0], [1], [0, 0, 1, 1], [], []>} : vector<64x128xbf16>, vector<128x128xbf16>, vector<64x128xf32> -> vector<64x128xf32>
    %81 = arith.addf %75, %80 : vector<64x128xf32>
    %c12 = arith.constant 12 : index
    %c0_71 = arith.constant 0 : index
    %82 = vector.load %arg9[%c12, %c0_71] : memref<80x128xf32, #tpu.memory_space<vmem>>, vector<64x128xf32>
    %83 = arith.truncf %82 : vector<64x128xf32> to vector<64x128xbf16>
    %c12_72 = arith.constant 12 : index
    %c0_73 = arith.constant 0 : index
    %c0_74 = arith.constant 0 : index
    %84 = vector.load %arg3[%c12_72, %c0_73, %c0_74] : memref<15x128x128xbf16, #tpu.memory_space<vmem>>, vector<1x128x128xbf16>
    %85 = vector.shape_cast %84 : vector<1x128x128xbf16> to vector<128x128xbf16>
    %cst_75 = arith.constant dense<0.000000e+00> : vector<64x128xf32>
    %86 = tpu.matmul %83, %85, %cst_75 {dimension_numbers = #tpu.dot_dimension_numbers<[1], [0], [0], [1], [0, 0, 1, 1], [], []>} : vector<64x128xbf16>, vector<128x128xbf16>, vector<64x128xf32> -> vector<64x128xf32>
    %87 = arith.addf %81, %86 : vector<64x128xf32>
    %c13 = arith.constant 13 : index
    %c0_76 = arith.constant 0 : index
    %88 = vector.load %arg9[%c13, %c0_76] : memref<80x128xf32, #tpu.memory_space<vmem>>, vector<64x128xf32>
    %89 = arith.truncf %88 : vector<64x128xf32> to vector<64x128xbf16>
    %c13_77 = arith.constant 13 : index
    %c0_78 = arith.constant 0 : index
    %c0_79 = arith.constant 0 : index
    %90 = vector.load %arg3[%c13_77, %c0_78, %c0_79] : memref<15x128x128xbf16, #tpu.memory_space<vmem>>, vector<1x128x128xbf16>
    %91 = vector.shape_cast %90 : vector<1x128x128xbf16> to vector<128x128xbf16>
    %cst_80 = arith.constant dense<0.000000e+00> : vector<64x128xf32>
    %92 = tpu.matmul %89, %91, %cst_80 {dimension_numbers = #tpu.dot_dimension_numbers<[1], [0], [0], [1], [0, 0, 1, 1], [], []>} : vector<64x128xbf16>, vector<128x128xbf16>, vector<64x128xf32> -> vector<64x128xf32>
    %93 = arith.addf %87, %92 : vector<64x128xf32>
    %c14 = arith.constant 14 : index
    %c0_81 = arith.constant 0 : index
    %94 = vector.load %arg9[%c14, %c0_81] : memref<80x128xf32, #tpu.memory_space<vmem>>, vector<64x128xf32>
    %95 = arith.truncf %94 : vector<64x128xf32> to vector<64x128xbf16>
    %c14_82 = arith.constant 14 : index
    %c0_83 = arith.constant 0 : index
    %c0_84 = arith.constant 0 : index
    %96 = vector.load %arg3[%c14_82, %c0_83, %c0_84] : memref<15x128x128xbf16, #tpu.memory_space<vmem>>, vector<1x128x128xbf16>
    %97 = vector.shape_cast %96 : vector<1x128x128xbf16> to vector<128x128xbf16>
    %cst_85 = arith.constant dense<0.000000e+00> : vector<64x128xf32>
    %98 = tpu.matmul %95, %97, %cst_85 {dimension_numbers = #tpu.dot_dimension_numbers<[1], [0], [0], [1], [0, 0, 1, 1], [], []>} : vector<64x128xbf16>, vector<128x128xbf16>, vector<64x128xf32> -> vector<64x128xf32>
    %99 = arith.addf %93, %98 : vector<64x128xf32>
    %c0_86 = arith.constant 0 : index
    %c0_87 = arith.constant 0 : index
    %100 = vector.load %arg4[%c0_86, %c0_87] : memref<64x128xf32, #tpu.memory_space<vmem>>, vector<64x128xf32>
    %101 = arith.addf %99, %100 : vector<64x128xf32>
    %cst_88 = arith.constant 0.000000e+00 : f32
    %102 = vector.broadcast %cst_88 : f32 to vector<64x128xf32>
    %103 = arith.maximumf %101, %102 : vector<64x128xf32>
    %c0_89 = arith.constant 0 : index
    %c0_90 = arith.constant 0 : index
    %104 = vector.load %arg5[%c0_89, %c0_90] : memref<64x128xf32, #tpu.memory_space<vmem>>, vector<64x128xf32>
    %105 = arith.mulf %103, %104 : vector<64x128xf32>
    %c0_91 = arith.constant 0 : index
    %c0_92 = arith.constant 0 : index
    %106 = vector.load %arg6[%c0_91, %c0_92] : memref<4x64xf32, #tpu.memory_space<vmem>>, vector<4x64xf32>
    %cst_93 = arith.constant dense<0.000000e+00> : vector<4x128xf32>
    %107 = tpu.matmul %106, %105, %cst_93 {dimension_numbers = #tpu.dot_dimension_numbers<[1], [0], [0], [1], [0, 0, 1, 1], [], []>} : vector<4x64xf32>, vector<64x128xf32>, vector<4x128xf32> -> vector<4x128xf32>
    %cst_94 = arith.constant dense<0.000000e+00> : vector<4xf32>
    %108 = vector.multi_reduction <add>, %107, %cst_94 [1] : vector<4x128xf32> to vector<4xf32>
    %109 = vector.shape_cast %108 : vector<4xf32> to vector<4x1xf32>
    %c0_95 = arith.constant 0 : index
    %c0_96 = arith.constant 0 : index
    %110 = memref.load %arg7[%c0_95, %c0_96] : memref<1x1xf32, #tpu.memory_space<smem>>
    %111 = vector.broadcast %110 : f32 to vector<4x1xf32>
    %112 = arith.addf %109, %111 : vector<4x1xf32>
    %cst_97 = arith.constant 1.000000e+00 : f32
    %113 = vector.broadcast %cst_97 : f32 to vector<1x128xf32>
    %114 = vector.broadcast %112 : vector<4x1xf32> to vector<4x128xf32>
    %115 = vector.broadcast %113 : vector<1x128xf32> to vector<4x128xf32>
    %116 = arith.mulf %114, %115 : vector<4x128xf32>
    %c0_98 = arith.constant 0 : index
    %c0_99 = arith.constant 0 : index
    %c0_100 = arith.constant 0 : index
    %117 = vector.load %arg8[%c0_98, %c0_99, %c0_100] : memref<1x4x128xf32, #tpu.memory_space<vmem>>, vector<1x4x128xf32>
    %118 = vector.shape_cast %117 : vector<1x4x128xf32> to vector<4x128xf32>
    %119 = vector.shape_cast %116 : vector<4x128xf32> to vector<1x4x128xf32>
    tpu.vector_store %arg8[%c0_98, %c0_99, %c0_100], %119 {strides = array<i32>} : memref<1x4x128xf32, #tpu.memory_space<vmem>>, vector<1x4x128xf32>,
    return
  }
  func.func @transform_0(%arg0: i32) -> (i32, i32, i32) {
    %c0_i32 = arith.constant 0 : i32
    %c0_i32_0 = arith.constant 0 : i32
    %c0_i32_1 = arith.constant 0 : i32
    return %arg0, %c0_i32, %c0_i32_0 : i32, i32, i32
  }
  func.func @transform_1(%arg0: i32) -> (i32, i32) {
    %c0_i32 = arith.constant 0 : i32
    %c0_i32_0 = arith.constant 0 : i32
    %c0_i32_1 = arith.constant 0 : i32
    return %c0_i32, %c0_i32_0 : i32, i32
  }
  func.func @transform_2(%arg0: i32) -> (i32, i32, i32) {
    %c0_i32 = arith.constant 0 : i32
    %c0_i32_0 = arith.constant 0 : i32
    %c0_i32_1 = arith.constant 0 : i32
    %c0_i32_2 = arith.constant 0 : i32
    return %c0_i32, %c0_i32_0, %c0_i32_1 : i32, i32, i32
  }
  func.func @transform_3(%arg0: i32) -> (i32, i32) {
    %c0_i32 = arith.constant 0 : i32
    %c0_i32_0 = arith.constant 0 : i32
    %c0_i32_1 = arith.constant 0 : i32
    return %c0_i32, %c0_i32_0 : i32, i32
  }
  func.func @transform_4(%arg0: i32) -> (i32, i32) {
    %c0_i32 = arith.constant 0 : i32
    %c0_i32_0 = arith.constant 0 : i32
    %c0_i32_1 = arith.constant 0 : i32
    return %c0_i32, %c0_i32_0 : i32, i32
  }
  func.func @transform_5(%arg0: i32) -> (i32, i32) {
    %c0_i32 = arith.constant 0 : i32
    %c0_i32_0 = arith.constant 0 : i32
    %c0_i32_1 = arith.constant 0 : i32
    return %c0_i32, %c0_i32_0 : i32, i32
  }
  func.func @transform_6(%arg0: i32) -> (i32, i32) {
    %c0_i32 = arith.constant 0 : i32
    %c0_i32_0 = arith.constant 0 : i32
    %c0_i32_1 = arith.constant 0 : i32
    return %c0_i32, %c0_i32_0 : i32, i32
  }
  func.func @transform_7(%arg0: i32) -> (i32, i32, i32) {
    %c0_i32 = arith.constant 0 : i32
    %c0_i32_0 = arith.constant 0 : i32
    %c0_i32_1 = arith.constant 0 : i32
    return %arg0, %c0_i32, %c0_i32_0 : i32, i32, i32
  }
}

module attributes {stable_mosaic.version = 11 : i64} {
  func.func @_pnngs_fused_kernel(%arg0: i32, %arg1: memref<1x64x16xf32, #tpu.memory_space<vmem>>, %arg2: memref<16x128xf32, #tpu.memory_space<vmem>>, %arg3: memref<15x128x128xbf16, #tpu.memory_space<vmem>>, %arg4: memref<64x128xf32, #tpu.memory_space<vmem>>, %arg5: memref<64x128xf32, #tpu.memory_space<vmem>>, %arg6: memref<4x64xf32, #tpu.memory_space<vmem>>, %arg7: memref<1x1xf32, #tpu.memory_space<smem>>, %arg8: memref<1x4x128xf32, #tpu.memory_space<vmem>>, %arg9: memref<80x128xf32, #tpu.memory_space<vmem>>) attributes {dimension_semantics = [#tpu.dimension_semantics<parallel>], iteration_bounds = array<i64: 2>, scalar_prefetch = 0 : i64, scratch_operands = 1 : i64, tpu.core_type = #tpu.core_type<tc>, window_params = [{transform_indices = @transform_0, window_bounds = array<i64: 1, 64, 16>}, {pipeline_mode = #tpu.pipeline_mode<synchronous>, transform_indices = @transform_1, window_bounds = array<i64: 16, 128>}, {pipeline_mode = #tpu.pipeline_mode<synchronous>, transform_indices = @transform_2, window_bounds = array<i64: 15, 128, 128>}, {pipeline_mode = #tpu.pipeline_mode<synchronous>, transform_indices = @transform_3, window_bounds = array<i64: 64, 128>}, {pipeline_mode = #tpu.pipeline_mode<synchronous>, transform_indices = @transform_4, window_bounds = array<i64: 64, 128>}, {pipeline_mode = #tpu.pipeline_mode<synchronous>, transform_indices = @transform_5, window_bounds = array<i64: 4, 64>}, {transform_indices = @transform_6, window_bounds = array<i64: 1, 1>}, {transform_indices = @transform_7, window_bounds = array<i64: 1, 4, 128>}]} {
    %c0 = arith.constant 0 : index
    %c0_0 = arith.constant 0 : index
    %c0_1 = arith.constant 0 : index
    %0 = vector.load %arg1[%c0, %c0_0, %c0_1] : memref<1x64x16xf32, #tpu.memory_space<vmem>>, vector<1x64x16xf32>
    %1 = vector.shape_cast %0 : vector<1x64x16xf32> to vector<64x16xf32>
    %c0_2 = arith.constant 0 : index
    %c0_3 = arith.constant 0 : index
    %2 = vector.load %arg2[%c0_2, %c0_3] : memref<16x128xf32, #tpu.memory_space<vmem>>, vector<16x128xf32>
    %cst = arith.constant dense<0.000000e+00> : vector<64x128xf32>
    %3 = tpu.matmul %1, %2, %cst {dimension_numbers = #tpu.dot_dimension_numbers<[1], [0], [0], [1], [0, 0, 1, 1], [], []>} : vector<64x16xf32>, vector<16x128xf32>, vector<64x128xf32> -> vector<64x128xf32>
    %cst_4 = arith.constant 0.000000e+00 : f32
    %4 = vector.broadcast %cst_4 : f32 to vector<64x128xf32>
    %5 = arith.maximumf %3, %4 : vector<64x128xf32>
    %c0_5 = arith.constant 0 : index
    %c0_6 = arith.constant 0 : index
    %6 = vector.load %arg9[%c0_5, %c0_6] : memref<80x128xf32, #tpu.memory_space<vmem>>, vector<64x128xf32>
    tpu.vector_store %arg9[%c0_5, %c0_6], %5 {strides = array<i32>} : memref<80x128xf32, #tpu.memory_space<vmem>>, vector<64x128xf32>,
    %cst_7 = arith.constant 0.000000e+00 : f32
    %7 = vector.broadcast %cst_7 : f32 to vector<16x128xf32>
    %c64 = arith.constant 64 : index
    %c0_8 = arith.constant 0 : index
    %8 = vector.load %arg9[%c64, %c0_8] : memref<80x128xf32, #tpu.memory_space<vmem>>, vector<16x128xf32>
    tpu.vector_store %arg9[%c64, %c0_8], %7 {strides = array<i32>} : memref<80x128xf32, #tpu.memory_space<vmem>>, vector<16x128xf32>,
    %cst_9 = arith.constant 0.000000e+00 : f32
    %9 = vector.broadcast %cst_9 : f32 to vector<64x128xf32>
    %c0_10 = arith.constant 0 : index
    %c0_11 = arith.constant 0 : index
    %10 = vector.load %arg9[%c0_10, %c0_11] : memref<80x128xf32, #tpu.memory_space<vmem>>, vector<64x128xf32>
    %11 = arith.truncf %10 : vector<64x128xf32> to vector<64x128xbf16>
    %c0_12 = arith.constant 0 : index
    %c0_13 = arith.constant 0 : index
    %c0_14 = arith.constant 0 : index
    %12 = vector.load %arg3[%c0_12, %c0_13, %c0_14] : memref<15x128x128xbf16, #tpu.memory_space<vmem>>, vector<1x128x128xbf16>
    %13 = vector.shape_cast %12 : vector<1x128x128xbf16> to vector<128x128xbf16>
    %cst_15 = arith.constant dense<0.000000e+00> : vector<64x128xf32>
    %14 = tpu.matmul %11, %13, %cst_15 {dimension_numbers = #tpu.dot_dimension_numbers<[1], [0], [0], [1], [0, 0, 1, 1], [], []>} : vector<64x128xbf16>, vector<128x128xbf16>, vector<64x128xf32> -> vector<64x128xf32>
    %15 = arith.addf %9, %14 : vector<64x128xf32>
    %c1 = arith.constant 1 : index
    %c0_16 = arith.constant 0 : index
    %16 = vector.load %arg9[%c1, %c0_16] : memref<80x128xf32, #tpu.memory_space<vmem>>, vector<64x128xf32>
    %17 = arith.truncf %16 : vector<64x128xf32> to vector<64x128xbf16>
    %c1_17 = arith.constant 1 : index
    %c0_18 = arith.constant 0 : index
    %c0_19 = arith.constant 0 : index
    %18 = vector.load %arg3[%c1_17, %c0_18, %c0_19] : memref<15x128x128xbf16, #tpu.memory_space<vmem>>, vector<1x128x128xbf16>
    %19 = vector.shape_cast %18 : vector<1x128x128xbf16> to vector<128x128xbf16>
    %cst_20 = arith.constant dense<0.000000e+00> : vector<64x128xf32>
    %20 = tpu.matmul %17, %19, %cst_20 {dimension_numbers = #tpu.dot_dimension_numbers<[1], [0], [0], [1], [0, 0, 1, 1], [], []>} : vector<64x128xbf16>, vector<128x128xbf16>, vector<64x128xf32> -> vector<64x128xf32>
    %21 = arith.addf %15, %20 : vector<64x128xf32>
    %c2 = arith.constant 2 : index
    %c0_21 = arith.constant 0 : index
    %22 = vector.load %arg9[%c2, %c0_21] : memref<80x128xf32, #tpu.memory_space<vmem>>, vector<64x128xf32>
    %23 = arith.truncf %22 : vector<64x128xf32> to vector<64x128xbf16>
    %c2_22 = arith.constant 2 : index
    %c0_23 = arith.constant 0 : index
    %c0_24 = arith.constant 0 : index
    %24 = vector.load %arg3[%c2_22, %c0_23, %c0_24] : memref<15x128x128xbf16, #tpu.memory_space<vmem>>, vector<1x128x128xbf16>
    %25 = vector.shape_cast %24 : vector<1x128x128xbf16> to vector<128x128xbf16>
    %cst_25 = arith.constant dense<0.000000e+00> : vector<64x128xf32>
    %26 = tpu.matmul %23, %25, %cst_25 {dimension_numbers = #tpu.dot_dimension_numbers<[1], [0], [0], [1], [0, 0, 1, 1], [], []>} : vector<64x128xbf16>, vector<128x128xbf16>, vector<64x128xf32> -> vector<64x128xf32>
    %27 = arith.addf %21, %26 : vector<64x128xf32>
    %c3 = arith.constant 3 : index
    %c0_26 = arith.constant 0 : index
    %28 = vector.load %arg9[%c3, %c0_26] : memref<80x128xf32, #tpu.memory_space<vmem>>, vector<64x128xf32>
    %29 = arith.truncf %28 : vector<64x128xf32> to vector<64x128xbf16>
    %c3_27 = arith.constant 3 : index
    %c0_28 = arith.constant 0 : index
    %c0_29 = arith.constant 0 : index
    %30 = vector.load %arg3[%c3_27, %c0_28, %c0_29] : memref<15x128x128xbf16, #tpu.memory_space<vmem>>, vector<1x128x128xbf16>
    %31 = vector.shape_cast %30 : vector<1x128x128xbf16> to vector<128x128xbf16>
    %cst_30 = arith.constant dense<0.000000e+00> : vector<64x128xf32>
    %32 = tpu.matmul %29, %31, %cst_30 {dimension_numbers = #tpu.dot_dimension_numbers<[1], [0], [0], [1], [0, 0, 1, 1], [], []>} : vector<64x128xbf16>, vector<128x128xbf16>, vector<64x128xf32> -> vector<64x128xf32>
    %33 = arith.addf %27, %32 : vector<64x128xf32>
    %c4 = arith.constant 4 : index
    %c0_31 = arith.constant 0 : index
    %34 = vector.load %arg9[%c4, %c0_31] : memref<80x128xf32, #tpu.memory_space<vmem>>, vector<64x128xf32>
    %35 = arith.truncf %34 : vector<64x128xf32> to vector<64x128xbf16>
    %c4_32 = arith.constant 4 : index
    %c0_33 = arith.constant 0 : index
    %c0_34 = arith.constant 0 : index
    %36 = vector.load %arg3[%c4_32, %c0_33, %c0_34] : memref<15x128x128xbf16, #tpu.memory_space<vmem>>, vector<1x128x128xbf16>
    %37 = vector.shape_cast %36 : vector<1x128x128xbf16> to vector<128x128xbf16>
    %cst_35 = arith.constant dense<0.000000e+00> : vector<64x128xf32>
    %38 = tpu.matmul %35, %37, %cst_35 {dimension_numbers = #tpu.dot_dimension_numbers<[1], [0], [0], [1], [0, 0, 1, 1], [], []>} : vector<64x128xbf16>, vector<128x128xbf16>, vector<64x128xf32> -> vector<64x128xf32>
    %39 = arith.addf %33, %38 : vector<64x128xf32>
    %c5 = arith.constant 5 : index
    %c0_36 = arith.constant 0 : index
    %40 = vector.load %arg9[%c5, %c0_36] : memref<80x128xf32, #tpu.memory_space<vmem>>, vector<64x128xf32>
    %41 = arith.truncf %40 : vector<64x128xf32> to vector<64x128xbf16>
    %c5_37 = arith.constant 5 : index
    %c0_38 = arith.constant 0 : index
    %c0_39 = arith.constant 0 : index
    %42 = vector.load %arg3[%c5_37, %c0_38, %c0_39] : memref<15x128x128xbf16, #tpu.memory_space<vmem>>, vector<1x128x128xbf16>
    %43 = vector.shape_cast %42 : vector<1x128x128xbf16> to vector<128x128xbf16>
    %cst_40 = arith.constant dense<0.000000e+00> : vector<64x128xf32>
    %44 = tpu.matmul %41, %43, %cst_40 {dimension_numbers = #tpu.dot_dimension_numbers<[1], [0], [0], [1], [0, 0, 1, 1], [], []>} : vector<64x128xbf16>, vector<128x128xbf16>, vector<64x128xf32> -> vector<64x128xf32>
    %45 = arith.addf %39, %44 : vector<64x128xf32>
    %c6 = arith.constant 6 : index
    %c0_41 = arith.constant 0 : index
    %46 = vector.load %arg9[%c6, %c0_41] : memref<80x128xf32, #tpu.memory_space<vmem>>, vector<64x128xf32>
    %47 = arith.truncf %46 : vector<64x128xf32> to vector<64x128xbf16>
    %c6_42 = arith.constant 6 : index
    %c0_43 = arith.constant 0 : index
    %c0_44 = arith.constant 0 : index
    %48 = vector.load %arg3[%c6_42, %c0_43, %c0_44] : memref<15x128x128xbf16, #tpu.memory_space<vmem>>, vector<1x128x128xbf16>
    %49 = vector.shape_cast %48 : vector<1x128x128xbf16> to vector<128x128xbf16>
    %cst_45 = arith.constant dense<0.000000e+00> : vector<64x128xf32>
    %50 = tpu.matmul %47, %49, %cst_45 {dimension_numbers = #tpu.dot_dimension_numbers<[1], [0], [0], [1], [0, 0, 1, 1], [], []>} : vector<64x128xbf16>, vector<128x128xbf16>, vector<64x128xf32> -> vector<64x128xf32>
    %51 = arith.addf %45, %50 : vector<64x128xf32>
    %c7 = arith.constant 7 : index
    %c0_46 = arith.constant 0 : index
    %52 = vector.load %arg9[%c7, %c0_46] : memref<80x128xf32, #tpu.memory_space<vmem>>, vector<64x128xf32>
    %53 = arith.truncf %52 : vector<64x128xf32> to vector<64x128xbf16>
    %c7_47 = arith.constant 7 : index
    %c0_48 = arith.constant 0 : index
    %c0_49 = arith.constant 0 : index
    %54 = vector.load %arg3[%c7_47, %c0_48, %c0_49] : memref<15x128x128xbf16, #tpu.memory_space<vmem>>, vector<1x128x128xbf16>
    %55 = vector.shape_cast %54 : vector<1x128x128xbf16> to vector<128x128xbf16>
    %cst_50 = arith.constant dense<0.000000e+00> : vector<64x128xf32>
    %56 = tpu.matmul %53, %55, %cst_50 {dimension_numbers = #tpu.dot_dimension_numbers<[1], [0], [0], [1], [0, 0, 1, 1], [], []>} : vector<64x128xbf16>, vector<128x128xbf16>, vector<64x128xf32> -> vector<64x128xf32>
    %57 = arith.addf %51, %56 : vector<64x128xf32>
    %c8 = arith.constant 8 : index
    %c0_51 = arith.constant 0 : index
    %58 = vector.load %arg9[%c8, %c0_51] : memref<80x128xf32, #tpu.memory_space<vmem>>, vector<64x128xf32>
    %59 = arith.truncf %58 : vector<64x128xf32> to vector<64x128xbf16>
    %c8_52 = arith.constant 8 : index
    %c0_53 = arith.constant 0 : index
    %c0_54 = arith.constant 0 : index
    %60 = vector.load %arg3[%c8_52, %c0_53, %c0_54] : memref<15x128x128xbf16, #tpu.memory_space<vmem>>, vector<1x128x128xbf16>
    %61 = vector.shape_cast %60 : vector<1x128x128xbf16> to vector<128x128xbf16>
    %cst_55 = arith.constant dense<0.000000e+00> : vector<64x128xf32>
    %62 = tpu.matmul %59, %61, %cst_55 {dimension_numbers = #tpu.dot_dimension_numbers<[1], [0], [0], [1], [0, 0, 1, 1], [], []>} : vector<64x128xbf16>, vector<128x128xbf16>, vector<64x128xf32> -> vector<64x128xf32>
    %63 = arith.addf %57, %62 : vector<64x128xf32>
    %c9 = arith.constant 9 : index
    %c0_56 = arith.constant 0 : index
    %64 = vector.load %arg9[%c9, %c0_56] : memref<80x128xf32, #tpu.memory_space<vmem>>, vector<64x128xf32>
    %65 = arith.truncf %64 : vector<64x128xf32> to vector<64x128xbf16>
    %c9_57 = arith.constant 9 : index
    %c0_58 = arith.constant 0 : index
    %c0_59 = arith.constant 0 : index
    %66 = vector.load %arg3[%c9_57, %c0_58, %c0_59] : memref<15x128x128xbf16, #tpu.memory_space<vmem>>, vector<1x128x128xbf16>
    %67 = vector.shape_cast %66 : vector<1x128x128xbf16> to vector<128x128xbf16>
    %cst_60 = arith.constant dense<0.000000e+00> : vector<64x128xf32>
    %68 = tpu.matmul %65, %67, %cst_60 {dimension_numbers = #tpu.dot_dimension_numbers<[1], [0], [0], [1], [0, 0, 1, 1], [], []>} : vector<64x128xbf16>, vector<128x128xbf16>, vector<64x128xf32> -> vector<64x128xf32>
    %69 = arith.addf %63, %68 : vector<64x128xf32>
    %c10 = arith.constant 10 : index
    %c0_61 = arith.constant 0 : index
    %70 = vector.load %arg9[%c10, %c0_61] : memref<80x128xf32, #tpu.memory_space<vmem>>, vector<64x128xf32>
    %71 = arith.truncf %70 : vector<64x128xf32> to vector<64x128xbf16>
    %c10_62 = arith.constant 10 : index
    %c0_63 = arith.constant 0 : index
    %c0_64 = arith.constant 0 : index
    %72 = vector.load %arg3[%c10_62, %c0_63, %c0_64] : memref<15x128x128xbf16, #tpu.memory_space<vmem>>, vector<1x128x128xbf16>
    %73 = vector.shape_cast %72 : vector<1x128x128xbf16> to vector<128x128xbf16>
    %cst_65 = arith.constant dense<0.000000e+00> : vector<64x128xf32>
    %74 = tpu.matmul %71, %73, %cst_65 {dimension_numbers = #tpu.dot_dimension_numbers<[1], [0], [0], [1], [0, 0, 1, 1], [], []>} : vector<64x128xbf16>, vector<128x128xbf16>, vector<64x128xf32> -> vector<64x128xf32>
    %75 = arith.addf %69, %74 : vector<64x128xf32>
    %c11 = arith.constant 11 : index
    %c0_66 = arith.constant 0 : index
    %76 = vector.load %arg9[%c11, %c0_66] : memref<80x128xf32, #tpu.memory_space<vmem>>, vector<64x128xf32>
    %77 = arith.truncf %76 : vector<64x128xf32> to vector<64x128xbf16>
    %c11_67 = arith.constant 11 : index
    %c0_68 = arith.constant 0 : index
    %c0_69 = arith.constant 0 : index
    %78 = vector.load %arg3[%c11_67, %c0_68, %c0_69] : memref<15x128x128xbf16, #tpu.memory_space<vmem>>, vector<1x128x128xbf16>
    %79 = vector.shape_cast %78 : vector<1x128x128xbf16> to vector<128x128xbf16>
    %cst_70 = arith.constant dense<0.000000e+00> : vector<64x128xf32>
    %80 = tpu.matmul %77, %79, %cst_70 {dimension_numbers = #tpu.dot_dimension_numbers<[1], [0], [0], [1], [0, 0, 1, 1], [], []>} : vector<64x128xbf16>, vector<128x128xbf16>, vector<64x128xf32> -> vector<64x128xf32>
    %81 = arith.addf %75, %80 : vector<64x128xf32>
    %c12 = arith.constant 12 : index
    %c0_71 = arith.constant 0 : index
    %82 = vector.load %arg9[%c12, %c0_71] : memref<80x128xf32, #tpu.memory_space<vmem>>, vector<64x128xf32>
    %83 = arith.truncf %82 : vector<64x128xf32> to vector<64x128xbf16>
    %c12_72 = arith.constant 12 : index
    %c0_73 = arith.constant 0 : index
    %c0_74 = arith.constant 0 : index
    %84 = vector.load %arg3[%c12_72, %c0_73, %c0_74] : memref<15x128x128xbf16, #tpu.memory_space<vmem>>, vector<1x128x128xbf16>
    %85 = vector.shape_cast %84 : vector<1x128x128xbf16> to vector<128x128xbf16>
    %cst_75 = arith.constant dense<0.000000e+00> : vector<64x128xf32>
    %86 = tpu.matmul %83, %85, %cst_75 {dimension_numbers = #tpu.dot_dimension_numbers<[1], [0], [0], [1], [0, 0, 1, 1], [], []>} : vector<64x128xbf16>, vector<128x128xbf16>, vector<64x128xf32> -> vector<64x128xf32>
    %87 = arith.addf %81, %86 : vector<64x128xf32>
    %c13 = arith.constant 13 : index
    %c0_76 = arith.constant 0 : index
    %88 = vector.load %arg9[%c13, %c0_76] : memref<80x128xf32, #tpu.memory_space<vmem>>, vector<64x128xf32>
    %89 = arith.truncf %88 : vector<64x128xf32> to vector<64x128xbf16>
    %c13_77 = arith.constant 13 : index
    %c0_78 = arith.constant 0 : index
    %c0_79 = arith.constant 0 : index
    %90 = vector.load %arg3[%c13_77, %c0_78, %c0_79] : memref<15x128x128xbf16, #tpu.memory_space<vmem>>, vector<1x128x128xbf16>
    %91 = vector.shape_cast %90 : vector<1x128x128xbf16> to vector<128x128xbf16>
    %cst_80 = arith.constant dense<0.000000e+00> : vector<64x128xf32>
    %92 = tpu.matmul %89, %91, %cst_80 {dimension_numbers = #tpu.dot_dimension_numbers<[1], [0], [0], [1], [0, 0, 1, 1], [], []>} : vector<64x128xbf16>, vector<128x128xbf16>, vector<64x128xf32> -> vector<64x128xf32>
    %93 = arith.addf %87, %92 : vector<64x128xf32>
    %c14 = arith.constant 14 : index
    %c0_81 = arith.constant 0 : index
    %94 = vector.load %arg9[%c14, %c0_81] : memref<80x128xf32, #tpu.memory_space<vmem>>, vector<64x128xf32>
    %95 = arith.truncf %94 : vector<64x128xf32> to vector<64x128xbf16>
    %c14_82 = arith.constant 14 : index
    %c0_83 = arith.constant 0 : index
    %c0_84 = arith.constant 0 : index
    %96 = vector.load %arg3[%c14_82, %c0_83, %c0_84] : memref<15x128x128xbf16, #tpu.memory_space<vmem>>, vector<1x128x128xbf16>
    %97 = vector.shape_cast %96 : vector<1x128x128xbf16> to vector<128x128xbf16>
    %cst_85 = arith.constant dense<0.000000e+00> : vector<64x128xf32>
    %98 = tpu.matmul %95, %97, %cst_85 {dimension_numbers = #tpu.dot_dimension_numbers<[1], [0], [0], [1], [0, 0, 1, 1], [], []>} : vector<64x128xbf16>, vector<128x128xbf16>, vector<64x128xf32> -> vector<64x128xf32>
    %99 = arith.addf %93, %98 : vector<64x128xf32>
    %c0_86 = arith.constant 0 : index
    %c0_87 = arith.constant 0 : index
    %100 = vector.load %arg4[%c0_86, %c0_87] : memref<64x128xf32, #tpu.memory_space<vmem>>, vector<64x128xf32>
    %101 = arith.addf %99, %100 : vector<64x128xf32>
    %cst_88 = arith.constant 0.000000e+00 : f32
    %102 = vector.broadcast %cst_88 : f32 to vector<64x128xf32>
    %103 = arith.maximumf %101, %102 : vector<64x128xf32>
    %c0_89 = arith.constant 0 : index
    %c0_90 = arith.constant 0 : index
    %104 = vector.load %arg5[%c0_89, %c0_90] : memref<64x128xf32, #tpu.memory_space<vmem>>, vector<64x128xf32>
    %105 = arith.mulf %103, %104 : vector<64x128xf32>
    %c0_91 = arith.constant 0 : index
    %c0_92 = arith.constant 0 : index
    %106 = vector.load %arg6[%c0_91, %c0_92] : memref<4x64xf32, #tpu.memory_space<vmem>>, vector<4x64xf32>
    %cst_93 = arith.constant dense<0.000000e+00> : vector<4x128xf32>
    %107 = tpu.matmul %106, %105, %cst_93 {dimension_numbers = #tpu.dot_dimension_numbers<[1], [0], [0], [1], [0, 0, 1, 1], [], []>} : vector<4x64xf32>, vector<64x128xf32>, vector<4x128xf32> -> vector<4x128xf32>
    %cst_94 = arith.constant dense<0.000000e+00> : vector<4xf32>
    %108 = vector.multi_reduction <add>, %107, %cst_94 [1] : vector<4x128xf32> to vector<4xf32>
    %109 = vector.shape_cast %108 : vector<4xf32> to vector<4x1xf32>
    %c0_95 = arith.constant 0 : index
    %c0_96 = arith.constant 0 : index
    %110 = memref.load %arg7[%c0_95, %c0_96] : memref<1x1xf32, #tpu.memory_space<smem>>
    %111 = vector.broadcast %110 : f32 to vector<4x1xf32>
    %112 = arith.addf %109, %111 : vector<4x1xf32>
    %cst_97 = arith.constant 1.000000e+00 : f32
    %113 = vector.broadcast %cst_97 : f32 to vector<1x128xf32>
    %114 = vector.broadcast %112 : vector<4x1xf32> to vector<4x128xf32>
    %115 = vector.broadcast %113 : vector<1x128xf32> to vector<4x128xf32>
    %116 = arith.mulf %114, %115 : vector<4x128xf32>
    %c0_98 = arith.constant 0 : index
    %c0_99 = arith.constant 0 : index
    %c0_100 = arith.constant 0 : index
    %117 = vector.load %arg8[%c0_98, %c0_99, %c0_100] : memref<1x4x128xf32, #tpu.memory_space<vmem>>, vector<1x4x128xf32>
    %118 = vector.shape_cast %117 : vector<1x4x128xf32> to vector<4x128xf32>
    %119 = vector.shape_cast %116 : vector<4x128xf32> to vector<1x4x128xf32>
    tpu.vector_store %arg8[%c0_98, %c0_99, %c0_100], %119 {strides = array<i32>} : memref<1x4x128xf32, #tpu.memory_space<vmem>>, vector<1x4x128xf32>,
    return
  }
  func.func @transform_0(%arg0: i32) -> (i32, i32, i32) {
    %c0_i32 = arith.constant 0 : i32
    %c0_i32_0 = arith.constant 0 : i32
    %c0_i32_1 = arith.constant 0 : i32
    return %arg0, %c0_i32, %c0_i32_0 : i32, i32, i32
  }
  func.func @transform_1(%arg0: i32) -> (i32, i32) {
    %c0_i32 = arith.constant 0 : i32
    %c0_i32_0 = arith.constant 0 : i32
    %c0_i32_1 = arith.constant 0 : i32
    return %c0_i32, %c0_i32_0 : i32, i32
  }
  func.func @transform_2(%arg0: i32) -> (i32, i32, i32) {
    %c0_i32 = arith.constant 0 : i32
    %c0_i32_0 = arith.constant 0 : i32
    %c0_i32_1 = arith.constant 0 : i32
    %c0_i32_2 = arith.constant 0 : i32
    return %c0_i32, %c0_i32_0, %c0_i32_1 : i32, i32, i32
  }
  func.func @transform_3(%arg0: i32) -> (i32, i32) {
    %c0_i32 = arith.constant 0 : i32
    %c0_i32_0 = arith.constant 0 : i32
    %c0_i32_1 = arith.constant 0 : i32
    return %c0_i32, %c0_i32_0 : i32, i32
  }
  func.func @transform_4(%arg0: i32) -> (i32, i32) {
    %c0_i32 = arith.constant 0 : i32
    %c0_i32_0 = arith.constant 0 : i32
    %c0_i32_1 = arith.constant 0 : i32
    return %c0_i32, %c0_i32_0 : i32, i32
  }
  func.func @transform_5(%arg0: i32) -> (i32, i32) {
    %c0_i32 = arith.constant 0 : i32
    %c0_i32_0 = arith.constant 0 : i32
    %c0_i32_1 = arith.constant 0 : i32
    return %c0_i32, %c0_i32_0 : i32, i32
  }
  func.func @transform_6(%arg0: i32) -> (i32, i32) {
    %c0_i32 = arith.constant 0 : i32
    %c0_i32_0 = arith.constant 0 : i32
    %c0_i32_1 = arith.constant 0 : i32
    return %c0_i32, %c0_i32_0 : i32, i32
  }
  func.func @transform_7(%arg0: i32) -> (i32, i32, i32) {
    %c0_i32 = arith.constant 0 : i32
    %c0_i32_0 = arith.constant 0 : i32
    %c0_i32_1 = arith.constant 0 : i32
    return %arg0, %c0_i32, %c0_i32_0 : i32, i32, i32
  }
}

</mosaic_0001>

<bundles_post_ra>
// kernel: pnngs_forward.1
= control target key start
LH: loop header
LB: loop body
LE: loop exit
PB: predicated region body
PF: predicated region fallthrough
CT: control target
= control target key end

     0   :  { %s3096_s26 = smov 0   ;;  %s3870_s0 = inlined_call_operand.vmem [shape: f32[2,64,16], index: 0, kind: input, shape index: {}]   ;;  %s3871_s1 = inlined_call_operand.vmem [shape: f32[16,128], index: 1, kind: input, shape index: {}]   ;;  %s3872_s2 = inlined_call_operand.vmem [shape: bf16[15,128,128], index: 2, kind: input, shape index: {}]   ;;  %s3873_s3 = inlined_call_operand.vmem [shape: f32[64,128], index: 3, kind: input, shape index: {}]   ;;  %s3874_s4 = inlined_call_operand.vmem [shape: f32[64,128], index: 4, kind: input, shape index: {}]   ;;  %s3875_s5 = inlined_call_operand.vmem [shape: f32[4,64], index: 5, kind: input, shape index: {}]   ;;  %s3876_s6 = inlined_call_operand.<no memory space> [shape: f32[1,1], index: 6, kind: input, shape index: {}]   ;;  %s3877_s7 = inlined_call_operand.vmem [shape: f32[2,4,128], index: 7, kind: output, shape index: {}]  }
   0x1   :  { %12 = sst [smem:[#allocation3]] %s3876_s6 }
   0x2 LB: > { %s2191_s27 = sadd.s32 4294967295, %s3050_s26   ;;  %p2195_p0 = scmp.ge.s32.totalorder %s3050_s26, 1  ;;  %s3050_s26 = sphi %s3096_s26, %s18_s26  }
   0x3   : > { %p238_p1 = scmp.lt.s32.totalorder %s3050_s26, 3 }
   0x5   : > { %p239_p2 = pnand %p2195_p0, %p238_p1 }
   0x6   : > { %p269_p3 = scmp.lt.s32.totalorder (!%p239_p2), %s2191_s27, 1  ;;  %s2134_s22 = sld [smem:[#allocation3]] (!%p239_p2) }
   0x7   : > { %242 = sbr.rel (%p239_p2) target bundleno = 820 (0x334), region = 48 }
   0xc   : > { %v287_v0 = vld [vmem:[%s3871_s1 + $0x8] sm:$0xff]  ;;  %v286_v1 = vld [vmem:[%s3871_s1] sm:$0xff]  ;;  %s3898_s27 = smov (!%p269_p3, %s2191_s27), 1  ;;  %vm288_vm0 = vcmask 130048   ;;  %v2922_v6 = vld [vmem:[%s3872_s2 + $0x38] sm:$0xff]  ;;  %vm2106_vm1 = vcmask 523264  }
   0xd   : > { %327 = vmatpush.msra.mxu0 %v287_v0  ;;  %s2914_s8 = sshll.u32 %s3898_s27, 6  ;;  %v2930_v7 = vld [vmem:[%s3872_s2 + $0x78] sm:$0xff]  ;;  %554 = vmatpush.bf16.msra.mxu2 %v2922_v6  ;;  %v2921_v10 = vld [vmem:[%s3872_s2 + $0x30] sm:$0xff]  ;;  %v2920_v12 = vld [vmem:[%s3872_s2 + $0x28] sm:$0xff]  ;;  %vm2130_vm2 = vcmask 1043456   ;;  %s2198_s23 = sshll.u32 %s3898_s27, 2 }
   0xe   : > { %s273_s11 = scalar_lea.vmem %s3870_s0, %s2914_s8  ;;  %v2938_v8 = vld [vmem:[%s3872_s2 + $0xb8] sm:$0xff]  ;;  %477 = vmatpush.bf16.msra.mxu1 %v2930_v7  ;;  %v2919_v16 = vld [vmem:[%s3872_s2 + $0x20] sm:$0xff]  ;;  %v2929_v18 = vld [vmem:[%s3872_s2 + $0x70] sm:$0xff]  ;;  %s277_s28 = scalar_lea.vmem %s3877_s7, %s2198_s23 }
   0xf   : > { %328 = vmatpush.msra.mxu0 %v286_v1  ;;  %v278_v2 = vld [vmem:[%s273_s11] sm:$0xff]  ;;  %v279_v3 = vld [vmem:[%s273_s11 + $0x8] sm:$0xff]  ;;  %v280_v4 = vld [vmem:[%s273_s11 + $0x10] sm:$0xff]  ;;  %660 = vmatpush.bf16.msra.mxu3 %v2938_v8 }
  0x10   : > { %2199 = vmatmul.msk.f32.vlgmr.msra.gmra.mxu0 %vm288_vm0, %v278_v2  ;;  %v281_v5 = vld [vmem:[%s273_s11 + $0x18] sm:$0xff]  ;;  %v282_v11 = vld [vmem:[%s273_s11 + $0x20] sm:$0xff]  ;;  %v283_v13 = vld [vmem:[%s273_s11 + $0x28] sm:$0xff] }
  0x11   : > { %v2946_v9 = vld [vmem:[%s3872_s2 + $0xf8] sm:$0xff]  ;;  %555 = vmatpush.bf16.msra.mxu2 %v2921_v10  ;;  %v284_v14 = vld [vmem:[%s273_s11 + $0x30] sm:$0xff]  ;;  %v2928_v22 = vld [vmem:[%s3872_s2 + $0x68] sm:$0xff] }
  0x12   : > { %774 = vmatpush.bf16.msrb.mxu0 %v2946_v9  ;;  %v285_v15 = vld [vmem:[%s273_s11 + $0x38] sm:$0xff]  ;;  %v2937_v19 = vld [vmem:[%s3872_s2 + $0xb0] sm:$0xff]  ;;  %478 = vmatpush.bf16.msra.mxu1 %v2929_v18  ;;  %v2936_v23 = vld [vmem:[%s3872_s2 + $0xa8] sm:$0xff] }
  0x13   : > { %v2918_v17 = vld [vmem:[%s3872_s2 + $0x18] sm:$0xff]  ;;  %v2945_v20 = vld [vmem:[%s3872_s2 + $0xf0] sm:$0xff]  ;;  %661 = vmatpush.bf16.msra.mxu3 %v2937_v19  ;;  %v2944_v24 = vld [vmem:[%s3872_s2 + $0xe8] sm:$0xff] }
  0x14   : > { %v2917_v21 = vld [vmem:[%s3872_s2 + $0x10] sm:$0xff]  ;;  %v2916_v25 = vld [vmem:[%s3872_s2 + $0x8] sm:$0xff]  ;;  %v2927_v26 = vld [vmem:[%s3872_s2 + $0x60] sm:$0xff] }
  0x15   : > { %556 = vmatpush.bf16.msra.mxu2 %v2920_v12  ;;  %v2935_v27 = vld [vmem:[%s3872_s2 + $0xa0] sm:$0xff]  ;;  %v2926_v30 = vld [vmem:[%s3872_s2 + $0x58] sm:$0xff]  ;;  %v2925_v33 = vld [vmem:[%s3872_s2 + $0x50] sm:$0xff] }
  0x16   : > { %775 = vmatpush.bf16.msrb.mxu0 %v2945_v20  ;;  %479 = vmatpush.bf16.msra.mxu1 %v2928_v22  ;;  %v2943_v28 = vld [vmem:[%s3872_s2 + $0xe0] sm:$0xff]  ;;  %v2934_v31 = vld [vmem:[%s3872_s2 + $0x98] sm:$0xff]  ;;  %v2933_v34 = vld [vmem:[%s3872_s2 + $0x90] sm:$0xff] }
  0x17   : > { %662 = vmatpush.bf16.msra.mxu3 %v2936_v23  ;;  %v2915_v29 = vld [vmem:[%s3872_s2] sm:$0xff]  ;;  %v2942_v32 = vld [vmem:[%s3872_s2 + $0xd8] sm:$0xff]  ;;  %v2941_v35 = vld [vmem:[%s3872_s2 + $0xd0] sm:$0xff] }
  0x18   : > { %2200 = vmatmul.msk.f32.gmra.mxu0 %vm288_vm0, %v279_v3  ;;  %v2924_v36 = vld [vmem:[%s3872_s2 + $0x48] sm:$0xff]  ;;  %v2923_v39 = vld [vmem:[%s3872_s2 + $0x40] sm:$0xff]  ;;  %v2962_v47 = vld [vmem:[%s3872_s2 + $0x178] sm:$0xff] }
  0x19   : > { %557 = vmatpush.bf16.msra.mxu2 %v2919_v16  ;;  %v2932_v37 = vld [vmem:[%s3872_s2 + $0x88] sm:$0xff]  ;;  %v2931_v40 = vld [vmem:[%s3872_s2 + $0x80] sm:$0xff]  ;;  %v2961_v50 = vld [vmem:[%s3872_s2 + $0x170] sm:$0xff] }
  0x1a   : > { %776 = vmatpush.bf16.msrb.mxu0 %v2944_v24  ;;  %480 = vmatpush.bf16.msra.mxu1 %v2927_v26  ;;  %v2940_v38 = vld [vmem:[%s3872_s2 + $0xc8] sm:$0xff]  ;;  %v2939_v41 = vld [vmem:[%s3872_s2 + $0xc0] sm:$0xff]  ;;  %v2954_v2 = vld [vmem:[%s3872_s2 + $0x138] sm:$0xff] }
  0x1b   : > { %663 = vmatpush.bf16.msra.mxu3 %v2935_v27  ;;  %v2960_v52 = vld [vmem:[%s3872_s2 + $0x168] sm:$0xff]  ;;  %v2959_v58 = vld [vmem:[%s3872_s2 + $0x160] sm:$0xff]  ;;  %v2970_v3 = vld [vmem:[%s3872_s2 + $0x1b8] sm:$0xff] }
  0x1c   : > { %v2953_v6 = vld [vmem:[%s3872_s2 + $0x130] sm:$0xff]  ;;  %v2958_v8 = vld [vmem:[%s3872_s2 + $0x158] sm:$0xff]  ;;  %v2952_v12 = vld [vmem:[%s3872_s2 + $0x128] sm:$0xff] }
  0x1d   : > { %558 = vmatpush.bf16.msra.mxu2 %v2918_v17  ;;  %v2969_v7 = vld [vmem:[%s3872_s2 + $0x1b0] sm:$0xff]  ;;  %v2976_v27 = vld [vmem:[%s3872_s2 + $0x1e8] sm:$0xff] }
  0x1e   : > { %777 = vmatpush.bf16.msrb.mxu0 %v2943_v28  ;;  %481 = vmatpush.bf16.msra.mxu1 %v2926_v30  ;;  %v2977_v10 = vld [vmem:[%s3872_s2 + $0x1f0] sm:$0xff] }
  0x1f   : > { %664 = vmatpush.bf16.msra.mxu3 %v2934_v31 }
  0x20   : > { %2201 = vmatmul.msk.f32.gmra.mxu0 %vm288_vm0, %v280_v4  ;;  %v2978_v4 = vld [vmem:[%s3872_s2 + $0x1f8] sm:$0xff] }
  0x21   : > { %559 = vmatpush.bf16.msra.mxu2 %v2917_v21 }
  0x22   : > { %778 = vmatpush.bf16.msrb.mxu0 %v2942_v32  ;;  %482 = vmatpush.bf16.msra.mxu1 %v2925_v33  ;;  %v2956_v32 = vld [vmem:[%s3872_s2 + $0x148] sm:$0xff] }
  0x23   : > { %665 = vmatpush.bf16.msra.mxu3 %v2933_v34  ;;  %v2951_v34 = vld [vmem:[%s3872_s2 + $0x120] sm:$0xff] }
  0x25   : > { %560 = vmatpush.bf16.msra.mxu2 %v2916_v25 }
  0x26   : > { %779 = vmatpush.bf16.msrb.mxu0 %v2941_v35  ;;  %483 = vmatpush.bf16.msra.mxu1 %v2924_v36  ;;  %v2967_v35 = vld [vmem:[%s3872_s2 + $0x1a0] sm:$0xff] }
  0x27   : > { %666 = vmatpush.bf16.msra.mxu3 %v2932_v37 }
  0x28   : > { %2202 = vmatmul.msk.f32.gmra.mxu0 %vm288_vm0, %v281_v5  ;;  %v3052_v5 = vmov 0.0  }
  0x29   : > { %561 = vmatpush.bf16.msra.mxu2 %v2915_v29  ;;  %370 = vst [vmem:[#allocation2 + $0x40] sm:$0xff] %v3052_v5 }
  0x2a   : > { %780 = vmatpush.bf16.msrb.mxu0 %v2940_v38  ;;  %484 = vmatpush.bf16.msra.mxu1 %v2923_v39  ;;  %371 = vst [vmem:[#allocation2 + $0x48] sm:$0xff] %v3052_v5 }
  0x2b   : > { %667 = vmatpush.bf16.msra.mxu3 %v2931_v40 }
  0x2d   : > { %1002 = vmatpush.bf16.msrb.mxu2 %v2962_v47  ;;  %v2950_v47 = vld [vmem:[%s3872_s2 + $0x118] sm:$0xff] }
  0x2e   : > { %781 = vmatpush.bf16.msrb.mxu0 %v2939_v41  ;;  %888 = vmatpush.bf16.msrb.mxu1 %v2954_v2 }
  0x2f   : > { %1116 = vmatpush.bf16.msrb.mxu3 %v2970_v3 }
  0x30   : > { %2203 = vmatmul.msk.f32.gmra.mxu0 %vm288_vm0, %v282_v11 }
  0x31   : > { %1003 = vmatpush.bf16.msrb.mxu2 %v2961_v50  ;;  %v2974_v50 = vld [vmem:[%s3872_s2 + $0x1d8] sm:$0xff] }
  0x32   : > { %1230 = vmatpush.bf16.msra.mxu0 %v2978_v4  ;;  %889 = vmatpush.bf16.msrb.mxu1 %v2953_v6 }
  0x33   : > { %1117 = vmatpush.bf16.msrb.mxu3 %v2969_v7 }
  0x35   : > { %1004 = vmatpush.bf16.msrb.mxu2 %v2960_v52 }
  0x36   : > { %1231 = vmatpush.bf16.msra.mxu0 %v2977_v10  ;;  %890 = vmatpush.bf16.msrb.mxu1 %v2952_v12 }
  0x38   : > { %2204 = vmatmul.msk.f32.gmra.mxu0 %vm288_vm0, %v283_v13  ;;  %v2968_v13 = vld [vmem:[%s3872_s2 + $0x1a8] sm:$0xff] }
  0x39   : > { %1005 = vmatpush.bf16.msrb.mxu2 %v2959_v58  ;;  %1118 = vmatpush.bf16.msrb.mxu3 %v2968_v13 }
  0x3a   : > { %1232 = vmatpush.bf16.msra.mxu0 %v2976_v27  ;;  %891 = vmatpush.bf16.msrb.mxu1 %v2951_v34  ;;  %v2947_v34 = vld [vmem:[%s3872_s2 + $0x100] sm:$0xff]  ;;  %v2994_v27 = vld [vmem:[%s3872_s2 + $0x278] sm:$0xff] }
  0x3d   : > { %1006 = vmatpush.bf16.msrb.mxu2 %v2958_v8  ;;  %1119 = vmatpush.bf16.msrb.mxu3 %v2967_v35  ;;  %v2948_v8 = vld [vmem:[%s3872_s2 + $0x108] sm:$0xff] }
  0x3e   : > { %892 = vmatpush.bf16.msrb.mxu1 %v2950_v47 }
  0x40   : > { %2205 = vmatmul.msk.f32.gmra.mxu0 %vm288_vm0, %v284_v14  ;;  %v2957_v14 = vld [vmem:[%s3872_s2 + $0x150] sm:$0xff] }
  0x41   : > { %1007 = vmatpush.bf16.msrb.mxu2 %v2957_v14 }
  0x45   : > { %1008 = vmatpush.bf16.msrb.mxu2 %v2956_v32 }
  0x48   : > { %2206 = vmatmul.msk.f32.gmra.mxu0 %vm288_vm0, %v285_v15 }
  0x8d   : > { %v330_v42 = vpop.f32.mrf.mxu0 }
  0x8e   : > { %v354_v43 = vmax.f32 %v330_v42, 0.0 }
  0x90   : > { %362 = vst [vmem:[#allocation2] sm:$0xff] %v354_v43 }
  0x95   : > { %v333_v44 = vpop.f32.mrf.mxu0 }
  0x96   : > { %v3220_v45 = vmax.f32 %v333_v44, 0.0  ;;  %v2975_v44 = vld [vmem:[%s3872_s2 + $0x1e0] sm:$0xff] }
  0x97   : > { %1233 = vmatpush.bf16.msra.mxu0 %v2975_v44 }
  0x98   : > { %363 = vst [vmem:[#allocation2 + $0x8] sm:$0xff] %v3220_v45  ;;  %v380_v46 = vpack.c.bf16 %v3220_v45, %v354_v43 }
  0x9a   : > { %562 = vmatmul.bf16.vlgmr.msra.gmra.mxu2 %v380_v46  ;;  %v2955_v46 = vld [vmem:[%s3872_s2 + $0x140] sm:$0xff] }
  0x9b   : > { %1009 = vmatpush.bf16.msrb.mxu2 %v2955_v46  ;;  %1234 = vmatpush.bf16.msra.mxu0 %v2974_v50  ;;  %v2971_v50 = vld [vmem:[%s3872_s2 + $0x1c0] sm:$0xff] }
  0x9d   : > { %v336_v48 = vpop.f32.mrf.mxu0 }
  0x9e   : > { %v3227_v49 = vmax.f32 %v336_v48, 0.0  ;;  %v2966_v48 = vld [vmem:[%s3872_s2 + $0x198] sm:$0xff] }
  0x9f   : > { %v400_v54 = vld [vmem:[#allocation2 + $0x1] sm:$0xff]  ;;  %1120 = vmatpush.bf16.msrb.mxu3 %v2966_v48  ;;  %1458 = vmatpush.bf16.msra.mxu2 %v2994_v27 }
  0xa0   : > { %364 = vst [vmem:[#allocation2 + $0x10] sm:$0xff] %v3227_v49  ;;  %v1275_v51 = vpack.c.bf16 %v3227_v49, %v3220_v45  ;;  %v583_v56 = vld [vmem:[#allocation2 + $0x2] sm:$0xff]  ;;  %v3034_v45 = vld [vmem:[%s3872_s2 + $0x3b8] sm:$0xff] }
  0xa1   : > { %v697_v57 = vld [vmem:[#allocation2 + $0x3] sm:$0xff] }
  0xa2   : > { %v2963_v48 = vld [vmem:[%s3872_s2 + $0x180] sm:$0xff] }
  0xa3   : > { %v1153_v12 = vld [vmem:[#allocation2 + $0x7] sm:$0xff] }
  0xa5   : > { %v339_v53 = vpop.f32.mrf.mxu0 }
  0xa6   : > { %v3238_v55 = vmax.f32 %v339_v53, 0.0  ;;  %v2949_v53 = vld [vmem:[%s3872_s2 + $0x110] sm:$0xff] }
  0xa7   : > { %v3243_v59 = vld [vmem:[#allocation2 + $0x9] sm:$0xff]  ;;  %893 = vmatpush.bf16.msrb.mxu1 %v2949_v53 }
  0xa8   : > { %v3245_v60 = vld [vmem:[#allocation2 + $0xa] sm:$0xff]  ;;  %365 = vst [vmem:[#allocation2 + $0x18] sm:$0xff] %v3238_v55  ;;  %v408_v62 = vpack.c.bf16 %v3243_v59, %v400_v54  ;;  %v381_v1 = vpack.c.bf16 %v3238_v55, %v3227_v49 }
  0xa9   : > { %v3247_v61 = vld [vmem:[#allocation2 + $0xb] sm:$0xff]  ;;  %v591_v63 = vpack.c.bf16 %v3245_v60, %v583_v56 }
  0xaa   : > { %v705_v0 = vpack.c.bf16 %v3247_v61, %v697_v57  ;;  %485 = vmatmul.bf16.vlgmr.msra.gmra.mxu1 %v408_v62  ;;  %567 = vmatmul.bf16.gmra.mxu2 %v381_v1  ;;  %v3287_v15 = vld [vmem:[#allocation2 + $0xd] sm:$0xff] }
  0xab   : > { %668 = vmatmul.bf16.vlgmr.msra.gmra.mxu3 %v591_v63  ;;  %v3289_v16 = vld [vmem:[#allocation2 + $0xc] sm:$0xff]  ;;  %894 = vmatpush.bf16.msrb.mxu1 %v2948_v8 }
  0xac   : > { %782 = vmatmul.bf16.vlgmr.msrb.gmra.mxu0 %v705_v0  ;;  %v3291_v17 = vld [vmem:[#allocation2 + $0xe] sm:$0xff] }
  0xad   : > { %v342_v9 = vpop.f32.mrf.mxu0  ;;  %v2965_v54 = vld [vmem:[%s3872_s2 + $0x190] sm:$0xff] }
  0xae   : > { %v3276_v11 = vmax.f32 %v342_v9, 0.0  ;;  %v2973_v57 = vld [vmem:[%s3872_s2 + $0x1d0] sm:$0xff]  ;;  %1121 = vmatpush.bf16.msrb.mxu3 %v2965_v54  ;;  %v2964_v9 = vld [vmem:[%s3872_s2 + $0x188] sm:$0xff] }
  0xaf   : > { %v3293_v18 = vld [vmem:[#allocation2 + $0x11] sm:$0xff]  ;;  %1235 = vmatpush.bf16.msra.mxu0 %v2973_v57  ;;  %895 = vmatpush.bf16.msrb.mxu1 %v2947_v34 }
  0xb0   : > { %v3295_v19 = vld [vmem:[#allocation2 + $0x12] sm:$0xff]  ;;  %366 = vst [vmem:[#allocation2 + $0x20] sm:$0xff] %v3276_v11  ;;  %v1389_v24 = vpack.c.bf16 %v3293_v18, %v3243_v59 }
  0xb1   : > { %v3297_v20 = vld [vmem:[#allocation2 + $0x13] sm:$0xff]  ;;  %v1503_v25 = vpack.c.bf16 %v3295_v19, %v3245_v60 }
  0xb2   : > { %v3300_v21 = vld [vmem:[#allocation2 + $0x15] sm:$0xff]  ;;  %1122 = vmatpush.bf16.msrb.mxu3 %v2964_v9 }
  0xb3   : > { %v3302_v22 = vld [vmem:[#allocation2 + $0x14] sm:$0xff] }
  0xb4   : > { %v3304_v23 = vld [vmem:[#allocation2 + $0x16] sm:$0xff] }
  0xb5   : > { %v345_v33 = vpop.f32.mrf.mxu0 }
  0xb6   : > { %v3332_v36 = vmax.f32 %v345_v33, 0.0  ;;  %v2972_v33 = vld [vmem:[%s3872_s2 + $0x1c8] sm:$0xff]  ;;  %1123 = vmatpush.bf16.msrb.mxu3 %v2963_v48 }
  0xb7   : > { %v3334_v37 = vld [vmem:[#allocation2 + $0x19] sm:$0xff]  ;;  %1236 = vmatpush.bf16.msra.mxu0 %v2972_v33 }
  0xb8   : > { %v3336_v38 = vld [vmem:[#allocation2 + $0x1a] sm:$0xff]  ;;  %367 = vst [vmem:[#allocation2 + $0x28] sm:$0xff] %v3332_v36  ;;  %v409_v40 = vpack.c.bf16 %v3334_v37, %v3293_v18  ;;  %v382_v43 = vpack.c.bf16 %v3332_v36, %v3276_v11 }
  0xb9   : > { %v3338_v39 = vld [vmem:[#allocation2 + $0x1b] sm:$0xff]  ;;  %v592_v41 = vpack.c.bf16 %v3336_v38, %v3295_v19 }
  0xba   : > { %v706_v42 = vpack.c.bf16 %v3338_v39, %v3297_v20  ;;  %490 = vmatmul.bf16.gmra.mxu1 %v409_v40  ;;  %572 = vmatmul.bf16.gmra.mxu2 %v382_v43  ;;  %v3375_v58 = vld [vmem:[#allocation2 + $0x1d] sm:$0xff] }
  0xbb   : > { %673 = vmatmul.bf16.gmra.mxu3 %v592_v41  ;;  %v3377_v62 = vld [vmem:[#allocation2 + $0x1c] sm:$0xff]  ;;  %1237 = vmatpush.bf16.msra.mxu0 %v2971_v50 }
  0xbc   : > { %787 = vmatmul.bf16.gmra.mxu0 %v706_v42  ;;  %v3404_v10 = vld [vmem:[#allocation2 + $0x1e] sm:$0xff] }
  0xbd   : > { %v348_v52 = vpop.f32.mrf.mxu0 }
  0xbe   : > { %v3370_v56 = vmax.f32 %v348_v52, 0.0  ;;  %v925_v52 = vld [vmem:[#allocation2 + $0x5] sm:$0xff] }
  0xbf   : > { %v3379_v63 = vld [vmem:[#allocation2 + $0x21] sm:$0xff]  ;;  %v933_v50 = vpack.c.bf16 %v3287_v15, %v925_v52  ;;  %v1154_v52 = vld [vmem:[#allocation2 + $0xf] sm:$0xff] }
  0xc0   : > { %v3381_v0 = vld [vmem:[#allocation2 + $0x22] sm:$0xff]  ;;  %368 = vst [vmem:[#allocation2 + $0x30] sm:$0xff] %v3370_v56  ;;  %v1161_v9 = vpack.c.bf16 %v1154_v52, %v1153_v12  ;;  %v3010_v12 = vld [vmem:[%s3872_s2 + $0x2f8] sm:$0xff]  ;;  %v2985_v52 = vld [vmem:[%s3872_s2 + $0x230] sm:$0xff] }
  0xc1   : > { %v3383_v1 = vld [vmem:[#allocation2 + $0x23] sm:$0xff]  ;;  %1686 = vmatpush.bf16.msrb.mxu0 %v3010_v12 }
  0xc2   : > { %v3386_v2 = vld [vmem:[#allocation2 + $0x25] sm:$0xff] }
  0xc3   : > { %v3388_v3 = vld [vmem:[#allocation2 + $0x24] sm:$0xff] }
  0xc4   : > { %v3390_v4 = vld [vmem:[#allocation2 + $0x26] sm:$0xff] }
  0xc5   : > { %v351_v32 = vpop.f32.mrf.mxu0  ;;  %v2999_v12 = vld [vmem:[%s3872_s2 + $0x2a0] sm:$0xff] }
  0xc6   : > { %v3420_v35 = vmax.f32 %v351_v32, 0.0  ;;  %v2992_v32 = vld [vmem:[%s3872_s2 + $0x268] sm:$0xff] }
  0xc7   : > { %v3422_v40 = vld [vmem:[#allocation2 + $0x29] sm:$0xff] }
  0xc8   : > { %v3424_v41 = vld [vmem:[#allocation2 + $0x2a] sm:$0xff]  ;;  %369 = vst [vmem:[#allocation2 + $0x38] sm:$0xff] %v3420_v35  ;;  %v410_v43 = vpack.c.bf16 %v3422_v40, %v3379_v63  ;;  %v383_v47 = vpack.c.bf16 %v3420_v35, %v3370_v56 }
  0xc9   : > { %v3426_v42 = vld [vmem:[#allocation2 + $0x2b] sm:$0xff]  ;;  %v593_v44 = vpack.c.bf16 %v3424_v41, %v3381_v0 }
  0xca   : > { %v707_v46 = vpack.c.bf16 %v3426_v42, %v3383_v1  ;;  %495 = vmatmul.bf16.gmra.mxu1 %v410_v43  ;;  %577 = vmatmul.bf16.gmra.mxu2 %v383_v47  ;;  %v3450_v8 = vld [vmem:[#allocation2 + $0x2d] sm:$0xff] }
  0xcb   : > { %678 = vmatmul.bf16.gmra.mxu3 %v593_v44  ;;  %v3456_v33 = vld [vmem:[#allocation2 + $0x2c] sm:$0xff]  ;;  %v935_v7 = vpack.c.bf16 %v3450_v8, %v3386_v2 }
  0xcc   : > { %792 = vmatmul.bf16.gmra.mxu0 %v707_v46  ;;  %v3464_v46 = vld [vmem:[#allocation2 + $0x2e] sm:$0xff] }
  0xcd   : > { %v2993_v44 = vld [vmem:[%s3872_s2 + $0x270] sm:$0xff] }
  0xce   : > { %1459 = vmatpush.bf16.msra.mxu2 %v2993_v44  ;;  %v934_v44 = vpack.c.bf16 %v3375_v58, %v3300_v21 }
  0xcf   : > { %v3444_v53 = vld [vmem:[#allocation2 + $0x31] sm:$0xff]  ;;  %v3474_v14 = vld [vmem:[#allocation2 + $0x39] sm:$0xff] }
  0xd0   : > { %v3446_v54 = vld [vmem:[#allocation2 + $0x32] sm:$0xff]  ;;  %v3476_v13 = vld [vmem:[#allocation2 + $0x3a] sm:$0xff]  ;;  %v411_v30 = vpack.c.bf16 %v3474_v14, %v3444_v53 }
  0xd1   : > { %v3448_v57 = vld [vmem:[#allocation2 + $0x33] sm:$0xff]  ;;  %v3478_v31 = vld [vmem:[#allocation2 + $0x3b] sm:$0xff]  ;;  %v594_v29 = vpack.c.bf16 %v3476_v13, %v3446_v54 }
  0xd2   : > { %v3458_v34 = vld [vmem:[#allocation2 + $0x35] sm:$0xff]  ;;  %v708_v48 = vpack.c.bf16 %v3478_v31, %v3448_v57  ;;  %1460 = vmatpush.bf16.msra.mxu2 %v2992_v32  ;;  %v3603_v6 = vld [vmem:[#allocation2 + $0x3e] sm:$0xff] }
  0xd3   : > { %v3460_v43 = vld [vmem:[#allocation2 + $0x34] sm:$0xff] }
  0xd4   : > { %v3466_v47 = vld [vmem:[#allocation2 + $0x36] sm:$0xff] }
  0xd5   : > { %v2986_v32 = vld [vmem:[%s3872_s2 + $0x238] sm:$0xff]  ;;  %v1050_v5 = vpack.c.bf16 %v3603_v6, %v3466_v47 }
  0xd6   : > { %1344 = vmatpush.bf16.msra.mxu1 %v2986_v32  ;;  %v3008_v32 = vld [vmem:[%s3872_s2 + $0x2e8] sm:$0xff]  ;;  %v1159_v28 = vld [vmem:[#allocation2 + $0x37] sm:$0xff] }
  0xda   : > { %500 = vmatmul.bf16.gmra.mxu1 %v411_v30  ;;  %1010 = vmatmul.bf16.vlgmr.msrb.gmra.mxu2 %v933_v50  ;;  %v811_v30 = vld [vmem:[#allocation2 + $0x4] sm:$0xff] }
  0xdb   : > { %683 = vmatmul.bf16.gmra.mxu3 %v594_v29  ;;  %v1039_v29 = vld [vmem:[#allocation2 + $0x6] sm:$0xff]  ;;  %v819_v50 = vpack.c.bf16 %v3289_v16, %v811_v30  ;;  %v3002_v30 = vld [vmem:[%s3872_s2 + $0x2b8] sm:$0xff]  ;;  %1345 = vmatpush.bf16.msra.mxu1 %v2985_v52 }
  0xdc   : > { %797 = vmatmul.bf16.gmra.mxu0 %v708_v48  ;;  %v2991_v48 = vld [vmem:[%s3872_s2 + $0x260] sm:$0xff]  ;;  %v1047_v27 = vpack.c.bf16 %v3291_v17, %v1039_v29  ;;  %1572 = vmatpush.bf16.msra.mxu3 %v3002_v30  ;;  %v2990_v29 = vld [vmem:[%s3872_s2 + $0x258] sm:$0xff]  ;;  %v2988_v52 = vld [vmem:[%s3872_s2 + $0x248] sm:$0xff] }
  0xdd   : > { %1461 = vmatpush.bf16.msra.mxu2 %v2991_v48  ;;  %v3009_v48 = vld [vmem:[%s3872_s2 + $0x2f0] sm:$0xff]  ;;  %v2983_v30 = vld [vmem:[%s3872_s2 + $0x220] sm:$0xff] }
  0xde   : > { %1687 = vmatpush.bf16.msrb.mxu0 %v3009_v48  ;;  %v1048_v48 = vpack.c.bf16 %v3404_v10, %v3304_v23 }
  0xe1   : > { %1462 = vmatpush.bf16.msra.mxu2 %v2990_v29  ;;  %v820_v29 = vpack.c.bf16 %v3377_v62, %v3302_v22 }
  0xe2   : > { %1688 = vmatpush.bf16.msrb.mxu0 %v3008_v32  ;;  %v2987_v32 = vld [vmem:[%s3872_s2 + $0x240] sm:$0xff] }
  0xea   : > { %896 = vmatmul.bf16.vlgmr.msrb.gmra.mxu1 %v819_v50  ;;  %1015 = vmatmul.bf16.gmra.mxu2 %v934_v44  ;;  %v2989_v50 = vld [vmem:[%s3872_s2 + $0x250] sm:$0xff]  ;;  %v3000_v44 = vld [vmem:[%s3872_s2 + $0x2a8] sm:$0xff] }
  0xeb   : > { %1124 = vmatmul.bf16.vlgmr.msrb.gmra.mxu3 %v1047_v27  ;;  %v2984_v27 = vld [vmem:[%s3872_s2 + $0x228] sm:$0xff]  ;;  %1463 = vmatpush.bf16.msra.mxu2 %v2989_v50  ;;  %v1155_v50 = vld [vmem:[#allocation2 + $0x17] sm:$0xff] }
  0xec   : > { %1238 = vmatmul.bf16.vlgmr.msra.gmra.mxu0 %v1161_v9  ;;  %v3001_v9 = vld [vmem:[%s3872_s2 + $0x2b0] sm:$0xff]  ;;  %1346 = vmatpush.bf16.msra.mxu1 %v2984_v27  ;;  %v3007_v27 = vld [vmem:[%s3872_s2 + $0x2e0] sm:$0xff] }
  0xed   : > { %1573 = vmatpush.bf16.msra.mxu3 %v3001_v9  ;;  %v1156_v9 = vld [vmem:[#allocation2 + $0x1f] sm:$0xff]  ;;  %1689 = vmatpush.bf16.msrb.mxu0 %v3007_v27  ;;  %v3004_v27 = vld [vmem:[%s3872_s2 + $0x2c8] sm:$0xff] }
  0xef   : > { %1464 = vmatpush.bf16.msra.mxu2 %v2988_v52  ;;  %v2982_v52 = vld [vmem:[%s3872_s2 + $0x218] sm:$0xff] }
  0xf0   : > { %1347 = vmatpush.bf16.msra.mxu1 %v2983_v30  ;;  %v3006_v30 = vld [vmem:[%s3872_s2 + $0x2d8] sm:$0xff] }
  0xf1   : > { %1574 = vmatpush.bf16.msra.mxu3 %v3000_v44  ;;  %v1162_v44 = vpack.c.bf16 %v1156_v9, %v1155_v50  ;;  %v2998_v9 = vld [vmem:[%s3872_s2 + $0x298] sm:$0xff]  ;;  %1690 = vmatpush.bf16.msrb.mxu0 %v3006_v30  ;;  %v2996_v50 = vld [vmem:[%s3872_s2 + $0x288] sm:$0xff] }
  0xf2   : > { %v1157_v30 = vld [vmem:[#allocation2 + $0x27] sm:$0xff] }
  0xf3   : > { %1465 = vmatpush.bf16.msra.mxu2 %v2987_v32  ;;  %v3584_v32 = vld [vmem:[#allocation2 + $0x3d] sm:$0xff] }
  0xf4   : > { %1348 = vmatpush.bf16.msra.mxu1 %v2982_v52  ;;  %v821_v52 = vpack.c.bf16 %v3456_v33, %v3388_v3 }
  0xf5   : > { %1575 = vmatpush.bf16.msra.mxu3 %v2999_v12  ;;  %v2997_v12 = vld [vmem:[%s3872_s2 + $0x290] sm:$0xff] }
  0xf9   : > { %1576 = vmatpush.bf16.msra.mxu3 %v2998_v9  ;;  %v1049_v9 = vpack.c.bf16 %v3464_v46, %v3390_v4 }
  0xfa   : > { %901 = vmatmul.bf16.gmra.mxu1 %v820_v29  ;;  %1020 = vmatmul.bf16.gmra.mxu2 %v935_v7  ;;  %v2981_v7 = vld [vmem:[%s3872_s2 + $0x210] sm:$0xff] }
  0xfb   : > { %1129 = vmatmul.bf16.gmra.mxu3 %v1048_v48  ;;  %v3005_v29 = vld [vmem:[%s3872_s2 + $0x2d0] sm:$0xff]  ;;  %1349 = vmatpush.bf16.msra.mxu1 %v2981_v7  ;;  %v2980_v48 = vld [vmem:[%s3872_s2 + $0x208] sm:$0xff]  ;;  %v2979_v7 = vld [vmem:[%s3872_s2 + $0x200] sm:$0xff] }
  0xfc   : > { %1243 = vmatmul.bf16.gmra.mxu0 %v1162_v44  ;;  %v1158_v44 = vld [vmem:[#allocation2 + $0x2f] sm:$0xff] }
  0xfd   : > { %1577 = vmatpush.bf16.msra.mxu3 %v2997_v12  ;;  %1691 = vmatpush.bf16.msrb.mxu0 %v3005_v29  ;;  %v2995_v12 = vld [vmem:[%s3872_s2 + $0x280] sm:$0xff]  ;;  %v1163_v29 = vpack.c.bf16 %v1158_v44, %v1157_v30 }
  0xfe   : > { %v1160_v44 = vld [vmem:[#allocation2 + $0x3f] sm:$0xff] }
  0xff   : > { %1350 = vmatpush.bf16.msra.mxu1 %v2980_v48  ;;  %v936_v48 = vpack.c.bf16 %v3584_v32, %v3458_v34  ;;  %v1164_v26 = vpack.c.bf16 %v1160_v44, %v1159_v28  ;;  %v3016_v44 = vld [vmem:[%s3872_s2 + $0x328] sm:$0xff] }
 0x101   : > { %1578 = vmatpush.bf16.msra.mxu3 %v2996_v50  ;;  %1692 = vmatpush.bf16.msrb.mxu0 %v3004_v27  ;;  %v3003_v50 = vld [vmem:[%s3872_s2 + $0x2c0] sm:$0xff] }
 0x102   : > { %v3601_v27 = vld [vmem:[#allocation2 + $0x3c] sm:$0xff] }
 0x103   : > { %1351 = vmatpush.bf16.msra.mxu1 %v2979_v7  ;;  %v822_v30 = vpack.c.bf16 %v3601_v27, %v3460_v43  ;;  %v3025_v7 = vld [vmem:[%s3872_s2 + $0x370] sm:$0xff] }
 0x105   : > { %1579 = vmatpush.bf16.msra.mxu3 %v2995_v12  ;;  %1693 = vmatpush.bf16.msrb.mxu0 %v3003_v50  ;;  %v3021_v50 = vld [vmem:[%s3872_s2 + $0x350] sm:$0xff] }
 0x109   : > { %2028 = vmatpush.bf16.msrb.mxu3 %v3034_v45  ;;  %v3880_v45 = vpack.c.bf16 %v3276_v11, %v3238_v55  ;;  %v3030_v55 = vld [vmem:[%s3872_s2 + $0x398] sm:$0xff] }
 0x10a   : > { %906 = vmatmul.bf16.gmra.mxu1 %v821_v52  ;;  %1025 = vmatmul.bf16.gmra.mxu2 %v936_v48  ;;  %v3018_v48 = vld [vmem:[%s3872_s2 + $0x338] sm:$0xff] }
 0x10b   : > { %1134 = vmatmul.bf16.gmra.mxu3 %v1049_v9  ;;  %v3026_v9 = vld [vmem:[%s3872_s2 + $0x378] sm:$0xff]  ;;  %1800 = vmatpush.bf16.msrb.mxu1 %v3018_v48  ;;  %v3019_v48 = vld [vmem:[%s3872_s2 + $0x340] sm:$0xff] }
 0x10c   : > { %1248 = vmatmul.bf16.gmra.mxu0 %v1163_v29  ;;  %1914 = vmatpush.bf16.msrb.mxu2 %v3026_v9  ;;  %v3879_v29 = vpack.c.bf16 %v3379_v63, %v3334_v37  ;;  %v3017_v37 = vld [vmem:[%s3872_s2 + $0x330] sm:$0xff]  ;;  %v3020_v9 = vld [vmem:[%s3872_s2 + $0x348] sm:$0xff] }
 0x10d   : > { %v3033_v63 = vld [vmem:[%s3872_s2 + $0x3b0] sm:$0xff] }
 0x10e   : > { %2029 = vmatpush.bf16.msrb.mxu3 %v3033_v63  ;;  %v3028_v63 = vld [vmem:[%s3872_s2 + $0x388] sm:$0xff] }
 0x10f   : > { %1801 = vmatpush.bf16.msrb.mxu1 %v3017_v37  ;;  %v3012_v37 = vld [vmem:[%s3872_s2 + $0x308] sm:$0xff] }
 0x110   : > { %1915 = vmatpush.bf16.msrb.mxu2 %v3025_v7 }
 0x113   : > { %1802 = vmatpush.bf16.msrb.mxu1 %v3016_v44 }
 0x11a   : > { %911 = vmatmul.bf16.gmra.mxu1 %v822_v30  ;;  %1466 = vmatmul.bf16.vlgmr.msra.gmra.mxu2 %v1389_v24  ;;  %v3023_v24 = vld [vmem:[%s3872_s2 + $0x360] sm:$0xff]  ;;  %v3032_v30 = vld [vmem:[%s3872_s2 + $0x3a8] sm:$0xff] }
 0x11b   : > { %1139 = vmatmul.bf16.gmra.mxu3 %v1050_v5  ;;  %v3878_v5 = vpack.c.bf16 %v3297_v20, %v3247_v61 }
 0x11c   : > { %1253 = vmatmul.bf16.gmra.mxu0 %v1164_v26  ;;  %v3024_v26 = vld [vmem:[%s3872_s2 + $0x368] sm:$0xff]  ;;  %2030 = vmatpush.bf16.msrb.mxu3 %v3032_v30 }
 0x11d   : > { %v563_v52 = vpop.f32.mrf.mxu2  ;;  %1916 = vmatpush.bf16.msrb.mxu2 %v3024_v26 }
 0x121   : > { %1917 = vmatpush.bf16.msrb.mxu2 %v3023_v24  ;;  %v3015_v24 = vld [vmem:[%s3872_s2 + $0x320] sm:$0xff] }
 0x122   : > { %1803 = vmatpush.bf16.msrb.mxu1 %v3015_v24 }
 0x125   : > { %v565_v12 = vpop.f32.mrf.mxu2 }
 0x127   : > { %v486_v28 = vpop.f32.mrf.mxu1 }
 0x128   : > { %v564_v59 = vadd.f32 %v563_v52, %v486_v28 }
 0x129   : > { %v3621_v18 = vpop.f32.mrf.mxu0 }
 0x12a   : > { %1352 = vmatmul.bf16.vlgmr.msra.gmra.mxu1 %v1275_v51  ;;  %1471 = vmatmul.bf16.gmra.mxu2 %v3879_v29  ;;  %v3022_v51 = vld [vmem:[%s3872_s2 + $0x358] sm:$0xff] }
 0x12b   : > { %1580 = vmatmul.bf16.vlgmr.msra.gmra.mxu3 %v1503_v25  ;;  %1918 = vmatpush.bf16.msrb.mxu2 %v3022_v51  ;;  %v3882_v51 = vpack.c.bf16 %v3383_v1, %v3338_v39 }
 0x12c   : > { %1694 = vmatmul.bf16.vlgmr.msrb.gmra.mxu0 %v3878_v5  ;;  %v3031_v5 = vld [vmem:[%s3872_s2 + $0x3a0] sm:$0xff] }
 0x12d   : > { %v568_v61 = vpop.f32.mrf.mxu2  ;;  %2031 = vmatpush.bf16.msrb.mxu3 %v3031_v5  ;;  %v3884_v5 = vpack.c.bf16 %v3370_v56, %v3332_v36  ;;  %v1502_v56 = vld [vmem:[#allocation2 + $0x42] sm:$0xff] }
 0x12e   : > { %v669_v49 = vpop.f32.mrf.mxu3 }
 0x12f   : > { %v3647_v60 = vadd.f32 %v669_v49, %v564_v59  ;;  %v488_v19 = vpop.f32.mrf.mxu1  ;;  %1919 = vmatpush.bf16.msrb.mxu2 %v3021_v50  ;;  %v3881_v49 = vpack.c.bf16 %v3381_v0, %v3336_v38 }
 0x130   : > { %v566_v20 = vadd.f32 %v565_v12, %v488_v19  ;;  %v3014_v19 = vld [vmem:[%s3872_s2 + $0x318] sm:$0xff] }
 0x131   : > { %v785_v25 = vpop.f32.mrf.mxu0  ;;  %1804 = vmatpush.bf16.msrb.mxu1 %v3014_v19  ;;  %2032 = vmatpush.bf16.msrb.mxu3 %v3030_v55 }
 0x133   : > { %1920 = vmatpush.bf16.msrb.mxu2 %v3020_v9 }
 0x135   : > { %v570_v12 = vpop.f32.mrf.mxu2 }
 0x136   : > { %v671_v52 = vpop.f32.mrf.mxu3 }
 0x137   : > { %v690_v7 = vadd.f32 %v671_v52, %v566_v20  ;;  %v491_v26 = vpop.f32.mrf.mxu1  ;;  %1921 = vmatpush.bf16.msrb.mxu2 %v3019_v48  ;;  %v1388_v52 = vld [vmem:[#allocation2 + $0x41] sm:$0xff]  ;;  %v3885_v48 = vpack.c.bf16 %v3446_v54, %v3424_v41 }
 0x138   : > { %v569_v28 = vadd.f32 %v568_v61, %v491_v26  ;;  %v3883_v61 = vpack.c.bf16 %v3444_v53, %v3422_v40  ;;  %v3013_v40 = vld [vmem:[%s3872_s2 + $0x310] sm:$0xff]  ;;  %v3011_v26 = vld [vmem:[%s3872_s2 + $0x300] sm:$0xff]  ;;  %v1392_v24 = vpack.c.bf16 %v1388_v52, %v3474_v14 }
 0x139   : > { %v788_v59 = vpop.f32.mrf.mxu0  ;;  %v3673_v29 = vadd.f32 %v785_v25, %v690_v7  ;;  %v3029_v53 = vld [vmem:[%s3872_s2 + $0x390] sm:$0xff]  ;;  %1805 = vmatpush.bf16.msrb.mxu1 %v3013_v40  ;;  %v1616_v41 = vld [vmem:[#allocation2 + $0x43] sm:$0xff]  ;;  %v3887_v40 = vpack.c.bf16 0.0, %v3420_v35 }
 0x13a   : > { %1357 = vmatmul.bf16.gmra.mxu1 %v3880_v45  ;;  %1476 = vmatmul.bf16.gmra.mxu2 %v3883_v61  ;;  %v3886_v45 = vpack.c.bf16 %v3448_v57, %v3426_v42  ;;  %v1506_v57 = vpack.c.bf16 %v1502_v56, %v3476_v13 }
 0x13b   : > { %1585 = vmatmul.bf16.gmra.mxu3 %v3881_v49 }
 0x13c   : > { %1699 = vmatmul.bf16.gmra.mxu0 %v3882_v51  ;;  %2033 = vmatpush.bf16.msrb.mxu3 %v3029_v53  ;;  %v3888_v53 = vpack.c.bf16 %v3300_v21, %v3287_v15  ;;  %v3889_v15 = vpack.c.bf16 %v3302_v22, %v3289_v16  ;;  %v3890_v21 = vpack.c.bf16 %v3304_v23, %v3291_v17 }
 0x13d   : > { %v573_v0 = vpop.f32.mrf.mxu2  ;;  %1806 = vmatpush.bf16.msrb.mxu1 %v3012_v37 }
 0x13e   : > { %v674_v11 = vpop.f32.mrf.mxu3 }
 0x13f   : > { %v691_v38 = vadd.f32 %v674_v11, %v569_v28  ;;  %v493_v39 = vpop.f32.mrf.mxu1  ;;  %v3027_v28 = vld [vmem:[%s3872_s2 + $0x380] sm:$0xff] }
 0x140   : > { %v571_v1 = vadd.f32 %v570_v12, %v493_v39  ;;  %2034 = vmatpush.bf16.msrb.mxu3 %v3028_v63 }
 0x141   : > { %v790_v20 = vpop.f32.mrf.mxu0  ;;  %v3702_v25 = vadd.f32 %v788_v59, %v691_v38  ;;  %1807 = vmatpush.bf16.msrb.mxu1 %v3011_v26 }
 0x144   : > { %2035 = vmatpush.bf16.msrb.mxu3 %v3027_v28 }
 0x145   : > { %v575_v30 = vpop.f32.mrf.mxu2 }
 0x146   : > { %v676_v50 = vpop.f32.mrf.mxu3 }
 0x147   : > { %v692_v44 = vadd.f32 %v676_v50, %v571_v1  ;;  %v496_v9 = vpop.f32.mrf.mxu1 }
 0x148   : > { %v574_v7 = vadd.f32 %v573_v0, %v496_v9 }
 0x149   : > { %v793_v12 = vpop.f32.mrf.mxu0  ;;  %v3716_v59 = vadd.f32 %v790_v20, %v692_v44  ;;  %v1620_v20 = vpack.c.bf16 %v1616_v41, %v3478_v31  ;;  %v803_v31 = vadd.f32 %v3621_v18, %v3647_v60 }
 0x14a   : > { %1362 = vmatmul.bf16.gmra.mxu1 %v3884_v5  ;;  %1481 = vmatmul.bf16.gmra.mxu2 %v1392_v24 }
 0x14b   : > { %1590 = vmatmul.bf16.gmra.mxu3 %v3885_v48  ;;  %v3891_v48 = vpack.c.bf16 %v3386_v2, %v3375_v58  ;;  %v3892_v58 = vpack.c.bf16 %v3388_v3, %v3377_v62  ;;  %v3893_v2 = vpack.c.bf16 %v3390_v4, %v3404_v10  ;;  %v1844_v4 = vld [vmem:[#allocation2 + $0x45] sm:$0xff] }
 0x14c   : > { %1704 = vmatmul.bf16.gmra.mxu0 %v3886_v45 }
 0x14d   : > { %v578_v61 = vpop.f32.mrf.mxu2 }
 0x14e   : > { %v679_v49 = vpop.f32.mrf.mxu3 }
 0x14f   : > { %v693_v51 = vadd.f32 %v679_v49, %v574_v7  ;;  %v498_v19 = vpop.f32.mrf.mxu1 }
 0x150   : > { %v576_v14 = vadd.f32 %v575_v30, %v498_v19 }
 0x151   : > { %v795_v55 = vpop.f32.mrf.mxu0  ;;  %v3728_v11 = vadd.f32 %v793_v12, %v693_v51 }
 0x155   : > { %v580_v54 = vpop.f32.mrf.mxu2 }
 0x156   : > { %v681_v36 = vpop.f32.mrf.mxu3 }
 0x157   : > { %v694_v38 = vadd.f32 %v681_v36, %v576_v14  ;;  %v501_v0 = vpop.f32.mrf.mxu1 }
 0x158   : > { %v579_v39 = vadd.f32 %v578_v61, %v501_v0 }
 0x159   : > { %v798_v42 = vpop.f32.mrf.mxu0  ;;  %v3731_v1 = vadd.f32 %v795_v55, %v694_v38  ;;  %v3894_v38 = vpack.c.bf16 %v3458_v34, %v3450_v8  ;;  %v1848_v34 = vpack.c.bf16 %v1844_v4, %v3584_v32 }
 0x15a   : > { %1367 = vmatmul.bf16.gmra.mxu1 %v3887_v40  ;;  %1922 = vmatmul.bf16.vlgmr.msrb.gmra.mxu2 %v3888_v53 }
 0x15b   : > { %1595 = vmatmul.bf16.gmra.mxu3 %v1506_v57 }
 0x15c   : > { %1709 = vmatmul.bf16.gmra.mxu0 %v1620_v20 }
 0x15d   : > { %v1011_v50 = vpop.f32.mrf.mxu2 }
 0x15e   : > { %v684_v37 = vpop.f32.mrf.mxu3 }
 0x15f   : > { %v695_v63 = vadd.f32 %v684_v37, %v579_v39  ;;  %v503_v44 = vpop.f32.mrf.mxu1 }
 0x160   : > { %v581_v30 = vadd.f32 %v580_v54, %v503_v44 }
 0x161   : > { %v800_v52 = vpop.f32.mrf.mxu0  ;;  %v3739_v13 = vadd.f32 %v798_v42, %v695_v63  ;;  %v3895_v63 = vpack.c.bf16 %v3460_v43, %v3456_v33 }
 0x165   : > { %v1013_v35 = vpop.f32.mrf.mxu2 }
 0x166   : > { %v686_v9 = vpop.f32.mrf.mxu3 }
 0x167   : > { %v696_v7 = vadd.f32 %v686_v9, %v581_v30  ;;  %v897_v12 = vpop.f32.mrf.mxu1 }
 0x168   : > { %v917_v26 = vadd.f32 %v897_v12, %v803_v31  ;;  %v1730_v12 = vld [vmem:[#allocation2 + $0x44] sm:$0xff] }
 0x169   : > { %v1239_v28 = vpop.f32.mrf.mxu0  ;;  %v3743_v24 = vadd.f32 %v800_v52, %v696_v7 }
 0x16a   : > { %1808 = vmatmul.bf16.vlgmr.msrb.gmra.mxu1 %v3889_v15  ;;  %v1031_v5 = vadd.f32 %v1011_v50, %v917_v26  ;;  %1927 = vmatmul.bf16.gmra.mxu2 %v3891_v48  ;;  %v1958_v26 = vld [vmem:[#allocation2 + $0x46] sm:$0xff] }
 0x16b   : > { %2036 = vmatmul.bf16.vlgmr.msrb.gmra.mxu3 %v3890_v21  ;;  %v1962_v15 = vpack.c.bf16 %v1958_v26, %v3603_v6 }
 0x16d   : > { %v1016_v45 = vpop.f32.mrf.mxu2 }
 0x16e   : > { %v1125_v18 = vpop.f32.mrf.mxu3 }
 0x16f   : > { %v1145_v60 = vadd.f32 %v1125_v18, %v1031_v5  ;;  %v899_v49 = vpop.f32.mrf.mxu1 }
 0x170   : > { %v918_v51 = vadd.f32 %v899_v49, %v3673_v29 }
 0x171   : > { %v1241_v61 = vpop.f32.mrf.mxu0  ;;  %v3755_v19 = vadd.f32 %v1239_v28, %v1145_v60 }
 0x172   : > { %v1032_v16 = vadd.f32 %v1013_v35, %v918_v51 }
 0x175   : > { %v1018_v55 = vpop.f32.mrf.mxu2 }
 0x176   : > { %v1127_v22 = vpop.f32.mrf.mxu3 }
 0x177   : > { %v1146_v14 = vadd.f32 %v1127_v22, %v1032_v16  ;;  %v902_v17 = vpop.f32.mrf.mxu1 }
 0x178   : > { %v919_v23 = vadd.f32 %v902_v17, %v3702_v25 }
 0x179   : > { %v1244_v36 = vpop.f32.mrf.mxu0  ;;  %v3758_v56 = vadd.f32 %v1241_v61, %v1146_v14 }
 0x17a   : > { %1813 = vmatmul.bf16.gmra.mxu1 %v3892_v58  ;;  %v1033_v29 = vadd.f32 %v1016_v45, %v919_v23  ;;  %1932 = vmatmul.bf16.gmra.mxu2 %v3894_v38 }
 0x17b   : > { %2041 = vmatmul.bf16.gmra.mxu3 %v3893_v2 }
 0x17d   : > { %v1021_v0 = vpop.f32.mrf.mxu2 }
 0x17e   : > { %v1130_v41 = vpop.f32.mrf.mxu3 }
 0x17f   : > { %v1147_v54 = vadd.f32 %v1130_v41, %v1033_v29  ;;  %v904_v25 = vpop.f32.mrf.mxu1 }
 0x180   : > { %v920_v39 = vadd.f32 %v904_v25, %v3716_v59  ;;  %v3896_v59 = vpack.c.bf16 %v3466_v47, %v3464_v46  ;;  %v1734_v47 = vpack.c.bf16 %v1730_v12, %v3601_v27 }
 0x181   : > { %v1246_v42 = vpop.f32.mrf.mxu0  ;;  %v3770_v57 = vadd.f32 %v1244_v36, %v1147_v54 }
 0x182   : > { %v1034_v62 = vadd.f32 %v1018_v55, %v920_v39 }
 0x185   : > { %v1023_v40 = vpop.f32.mrf.mxu2 }
 0x186   : > { %v1132_v3 = vpop.f32.mrf.mxu3 }
 0x187   : > { %v1148_v20 = vadd.f32 %v1132_v3, %v1034_v62  ;;  %v907_v10 = vpop.f32.mrf.mxu1 }
 0x188   : > { %v921_v53 = vadd.f32 %v907_v10, %v3728_v11 }
 0x189   : > { %v1249_v37 = vpop.f32.mrf.mxu0  ;;  %v1262_v8 = vadd.f32 %v1246_v42, %v1148_v20 }
 0x18a   : > { %1818 = vmatmul.bf16.gmra.mxu1 %v3895_v63  ;;  %v1035_v50 = vadd.f32 %v1021_v0, %v921_v53  ;;  %1937 = vmatmul.bf16.gmra.mxu2 %v1848_v34 }
 0x18b   : > { %2046 = vmatmul.bf16.gmra.mxu3 %v3896_v59 }
 0x18d   : > { %v1026_v52 = vpop.f32.mrf.mxu2 }
 0x18e   : > { %v1135_v44 = vpop.f32.mrf.mxu3 }
 0x18f   : > { %v1149_v30 = vadd.f32 %v1135_v44, %v1035_v50  ;;  %v909_v9 = vpop.f32.mrf.mxu1 }
 0x190   : > { %v922_v11 = vadd.f32 %v909_v9, %v3731_v1 }
 0x191   : > { %v1263_v7 = vadd.f32 %v1249_v37, %v1149_v30  ;;  %v1251_v31 = vpop.f32.mrf.mxu0 }
 0x192   : > { %v1036_v35 = vadd.f32 %v1023_v40, %v922_v11 }
 0x195   : > { %v1028_v43 = vpop.f32.mrf.mxu2 }
 0x196   : > { %v1137_v32 = vpop.f32.mrf.mxu3 }
 0x197   : > { %v1150_v33 = vadd.f32 %v1137_v32, %v1036_v35  ;;  %v912_v28 = vpop.f32.mrf.mxu1 }
 0x198   : > { %v923_v46 = vadd.f32 %v912_v28, %v3739_v13 }
 0x199   : > { %v1264_v21 = vadd.f32 %v1251_v31, %v1150_v33  ;;  %v1254_v1 = vpop.f32.mrf.mxu0 }
 0x19a   : > { %1823 = vmatmul.bf16.gmra.mxu1 %v1734_v47  ;;  %v1037_v5 = vadd.f32 %v1026_v52, %v923_v46 }
 0x19b   : > { %2051 = vmatmul.bf16.gmra.mxu3 %v1962_v15 }
 0x19d   : > { %v1467_v60 = vpop.f32.mrf.mxu2 }
 0x19e   : > { %v1140_v48 = vpop.f32.mrf.mxu3 }
 0x19f   : > { %v1151_v18 = vadd.f32 %v1140_v48, %v1037_v5  ;;  %v914_v45 = vpop.f32.mrf.mxu1 }
 0x1a0   : > { %v924_v49 = vadd.f32 %v914_v45, %v3743_v24 }
 0x1a1   : > { %v1265_v51 = vadd.f32 %v1254_v1, %v1151_v18  ;;  %v3785_v16 = vpop.f32.mrf.mxu0 }
 0x1a2   : > { %v1038_v61 = vadd.f32 %v1028_v43, %v924_v49 }
 0x1a5   : > { %v1469_v27 = vpop.f32.mrf.mxu2 }
 0x1a6   : > { %v1142_v13 = vpop.f32.mrf.mxu3 }
 0x1a7   : > { %v3787_v22 = vadd.f32 %v1142_v13, %v1038_v61  ;;  %v1353_v6 = vpop.f32.mrf.mxu1 }
 0x1a8   : > { %v1373_v14 = vadd.f32 %v1353_v6, %v3755_v19 }
 0x1a9   : > { %v1695_v58 = vpop.f32.mrf.mxu0 }
 0x1aa   : > { %v1487_v55 = vadd.f32 %v1467_v60, %v1373_v14 }
 0x1ad   : > { %v1472_v36 = vpop.f32.mrf.mxu2 }
 0x1ae   : > { %v1581_v17 = vpop.f32.mrf.mxu3 }
 0x1af   : > { %v1601_v23 = vadd.f32 %v1581_v17, %v1487_v55  ;;  %v1355_v2 = vpop.f32.mrf.mxu1 }
 0x1b0   : > { %v1374_v29 = vadd.f32 %v1355_v2, %v3758_v56 }
 0x1b1   : > { %v1715_v24 = vadd.f32 %v1695_v58, %v1601_v23  ;;  %v1697_v28 = vpop.f32.mrf.mxu0 }
 0x1b2   : > { %v1488_v38 = vadd.f32 %v1469_v27, %v1374_v29  ;;  %v1266_v29 = vadd.f32 %v3785_v16, %v3787_v22 }
 0x1b5   : > { %v1474_v0 = vpop.f32.mrf.mxu2 }
 0x1b6   : > { %v1583_v41 = vpop.f32.mrf.mxu3 }
 0x1b7   : > { %v3791_v54 = vadd.f32 %v1583_v41, %v1488_v38  ;;  %v1358_v25 = vpop.f32.mrf.mxu1 }
 0x1b8   : > { %v1375_v39 = vadd.f32 %v1358_v25, %v3770_v57 }
 0x1b9   : > { %v1700_v1 = vpop.f32.mrf.mxu0 }
 0x1ba   : > { %v1489_v42 = vadd.f32 %v1472_v36, %v1375_v39 }
 0x1bd   : > { %v1477_v3 = vpop.f32.mrf.mxu2 }
 0x1be   : > { %v1586_v62 = vpop.f32.mrf.mxu3 }
 0x1bf   : > { %v3794_v19 = vadd.f32 %v1586_v62, %v1489_v42  ;;  %v1360_v20 = vpop.f32.mrf.mxu1 }
 0x1c0   : > { %v1376_v40 = vadd.f32 %v1360_v20, %v1262_v8 }
 0x1c1   : > { %v1702_v45 = vpop.f32.mrf.mxu0 }
 0x1c2   : > { %v1490_v4 = vadd.f32 %v1474_v0, %v1376_v40 }
 0x1c5   : > { %v1479_v56 = vpop.f32.mrf.mxu2 }
 0x1c6   : > { %v1588_v10 = vpop.f32.mrf.mxu3 }
 0x1c7   : > { %v3796_v53 = vadd.f32 %v1588_v10, %v1490_v4  ;;  %v1363_v37 = vpop.f32.mrf.mxu1 }
 0x1c8   : > { %v1377_v34 = vadd.f32 %v1363_v37, %v1263_v7 }
 0x1c9   : > { %v1705_v27 = vpop.f32.mrf.mxu0 }
 0x1ca   : > { %v1491_v63 = vadd.f32 %v1477_v3, %v1377_v34 }
 0x1cd   : > { %v1482_v44 = vpop.f32.mrf.mxu2 }
 0x1ce   : > { %v1591_v59 = vpop.f32.mrf.mxu3 }
 0x1cf   : > { %v1605_v50 = vadd.f32 %v1591_v59, %v1491_v63  ;;  %v1365_v30 = vpop.f32.mrf.mxu1  ;;  %v1718_v63 = vadd.f32 %v1702_v45, %v3796_v53  ;;  %v2096_v45 = vld [vmem:[%s3874_s4 + $0x38] sm:$0xff] }
 0x1d0   : > { %v1378_v57 = vadd.f32 %v1365_v30, %v1264_v21 }
 0x1d1   : > { %v1707_v23 = vpop.f32.mrf.mxu0  ;;  %v1719_v10 = vadd.f32 %v1705_v27, %v1605_v50  ;;  %v2071_v50 = vld [vmem:[%s3873_s3 + $0x30] sm:$0xff] }
 0x1d2   : > { %v1492_v52 = vadd.f32 %v1479_v56, %v1378_v57 }
 0x1d5   : > { %v1484_v31 = vpop.f32.mrf.mxu2 }
 0x1d6   : > { %v1593_v9 = vpop.f32.mrf.mxu3 }
 0x1d7   : > { %v1606_v11 = vadd.f32 %v1593_v9, %v1492_v52  ;;  %v1368_v35 = vpop.f32.mrf.mxu1  ;;  %v1716_v9 = vadd.f32 %v1697_v28, %v3791_v54 }
 0x1d8   : > { %v1379_v32 = vadd.f32 %v1368_v35, %v1265_v51 }
 0x1d9   : > { %v1720_v3 = vadd.f32 %v1707_v23, %v1606_v11 }
 0x1da   : > { %v1493_v8 = vadd.f32 %v1482_v44, %v1379_v32  ;;  %v1717_v44 = vadd.f32 %v1700_v1, %v3794_v19 }
 0x1dd   : > { %v1923_v33 = vpop.f32.mrf.mxu2 }
 0x1de   : > { %v1596_v12 = vpop.f32.mrf.mxu3 }
 0x1df   : > { %v1607_v26 = vadd.f32 %v1596_v12, %v1493_v8  ;;  %v1370_v43 = vpop.f32.mrf.mxu1  ;;  %v2070_v12 = vld [vmem:[%s3873_s3 + $0x28] sm:$0xff] }
 0x1e0   : > { %v1380_v38 = vadd.f32 %v1370_v43, %v1266_v29 }
 0x1e2   : > { %v1494_v25 = vadd.f32 %v1484_v31, %v1380_v38 }
 0x1e5   : > { %v3798_v47 = vpop.f32.mrf.mxu2 }
 0x1e6   : > { %v1598_v46 = vpop.f32.mrf.mxu3 }
 0x1e7   : > { %v1809_v7 = vpop.f32.mrf.mxu1  ;;  %v1608_v42 = vadd.f32 %v1598_v46, %v1494_v25  ;;  %v2069_v46 = vld [vmem:[%s3873_s3 + $0x20] sm:$0xff]  ;;  %v2092_v25 = vld [vmem:[%s3874_s4 + $0x18] sm:$0xff] }
 0x1e8   : > { %v1829_v15 = vadd.f32 %v1809_v7, %v1715_v24  ;;  %v1710_v24 = vpop.f32.mrf.mxu0 }
 0x1e9   : > { %v1721_v62 = vadd.f32 %v1710_v24, %v1607_v26  ;;  %v2072_v26 = vld [vmem:[%s3873_s3 + $0x38] sm:$0xff]  ;;  %v2065_v24 = vld [vmem:[%s3873_s3] sm:$0xff] }
 0x1ea   : > { %v1943_v5 = vadd.f32 %v1923_v33, %v1829_v15 }
 0x1ed   : > { %v1928_v60 = vpop.f32.mrf.mxu2 }
 0x1ee   : > { %v2037_v21 = vpop.f32.mrf.mxu3 }
 0x1ef   : > { %v3800_v48 = vadd.f32 %v2037_v21, %v1943_v5  ;;  %v1811_v18 = vpop.f32.mrf.mxu1 }
 0x1f0   : > { %v1712_v40 = vpop.f32.mrf.mxu0  ;;  %v1830_v53 = vadd.f32 %v1811_v18, %v1716_v9  ;;  %v2068_v18 = vld [vmem:[%s3873_s3 + $0x18] sm:$0xff] }
 0x1f1   : > { %v1722_v37 = vadd.f32 %v1712_v40, %v1608_v42 }
 0x1f2   : > { %v1944_v21 = vadd.f32 %v3798_v47, %v1830_v53  ;;  %v2095_v47 = vld [vmem:[%s3874_s4 + $0x30] sm:$0xff] }
 0x1f5   : > { %v1930_v61 = vpop.f32.mrf.mxu2 }
 0x1f6   : > { %v3802_v49 = vpop.f32.mrf.mxu3 }
 0x1f7   : > { %v1814_v51 = vpop.f32.mrf.mxu1 }
 0x1f8   : > { %v1831_v31 = vadd.f32 %v1814_v51, %v1717_v44 }
 0x1fa   : > { %v1945_v7 = vadd.f32 %v1928_v60, %v1831_v31  ;;  %v2067_v60 = vld [vmem:[%s3873_s3 + $0x10] sm:$0xff] }
 0x1fd   : > { %v1933_v14 = vpop.f32.mrf.mxu2 }
 0x1fe   : > { %v2042_v13 = vpop.f32.mrf.mxu3 }
 0x1ff   : > { %v1816_v6 = vpop.f32.mrf.mxu1  ;;  %v2059_v51 = vadd.f32 %v2042_v13, %v1945_v7  ;;  %v2066_v13 = vld [vmem:[%s3873_s3 + $0x8] sm:$0xff] }
 0x200   : > { %v1832_v30 = vadd.f32 %v1816_v6, %v1718_v63  ;;  %v2105_v63 = vld [vmem:[%s3875_s5] sm:$0xf] }
 0x202   : > { %v1946_v54 = vadd.f32 %v1930_v61, %v1832_v30 }
 0x205   : > { %v1935_v58 = vpop.f32.mrf.mxu2 }
 0x206   : > { %v2044_v55 = vpop.f32.mrf.mxu3 }
 0x207   : > { %v1819_v17 = vpop.f32.mrf.mxu1  ;;  %v2060_v15 = vadd.f32 %v2044_v55, %v1946_v54 }
 0x208   : > { %v1833_v59 = vadd.f32 %v1819_v17, %v1719_v10 }
 0x209   : > { %v2076_v55 = vadd.f32 %v2068_v18, %v2060_v15 }
 0x20a   : > { %v1947_v35 = vadd.f32 %v1933_v14, %v1833_v59  ;;  %v2058_v14 = vadd.f32 %v3802_v49, %v1944_v21  ;;  %v2093_v49 = vld [vmem:[%s3874_s4 + $0x20] sm:$0xff] }
 0x20c   : > { %v2074_v38 = vadd.f32 %v2066_v13, %v2058_v14 }
 0x20d   : > { %v1938_v39 = vpop.f32.mrf.mxu2 }
 0x20e   : > { %v2047_v36 = vpop.f32.mrf.mxu3 }
 0x20f   : > { %v1821_v2 = vpop.f32.mrf.mxu1  ;;  %v2061_v33 = vadd.f32 %v2047_v36, %v1947_v35  ;;  %v2094_v36 = vld [vmem:[%s3874_s4 + $0x28] sm:$0xff] }
 0x210   : > { %v1834_v56 = vadd.f32 %v1821_v2, %v1720_v3  ;;  %v2091_v3 = vld [vmem:[%s3874_s4 + $0x10] sm:$0xff] }
 0x211   : > { %v2077_v61 = vadd.f32 %v2069_v46, %v2061_v33 }
 0x212   : > { %v1948_v57 = vadd.f32 %v1935_v58, %v1834_v56  ;;  %v2075_v58 = vadd.f32 %v2067_v60, %v2059_v51 }
 0x213   : > { %v2085_v2 = vmax.f32 %v2077_v61, 0.0 }
 0x214   : > { %v2083_v42 = vmax.f32 %v2075_v58, 0.0 }
 0x215   : > { %v1940_v11 = vpop.f32.mrf.mxu2 }
 0x216   : > { %v2049_v41 = vpop.f32.mrf.mxu3  ;;  %v2099_v56 = vmul.f32 %v2091_v3, %v2083_v42 }
 0x217   : > { %v1824_v0 = vpop.f32.mrf.mxu1  ;;  %v2062_v32 = vadd.f32 %v2049_v41, %v1948_v57  ;;  %v2084_v41 = vmax.f32 %v2076_v55, 0.0 }
 0x218   : > { %v1835_v20 = vadd.f32 %v1824_v0, %v1721_v62  ;;  %v2101_v62 = vmul.f32 %v2093_v49, %v2085_v2 }
 0x219   : > { %v2078_v5 = vadd.f32 %v2070_v12, %v2062_v32  ;;  %v2100_v40 = vmul.f32 %v2092_v25, %v2084_v41 }
 0x21a   : > { %v1949_v16 = vadd.f32 %v1938_v39, %v1835_v20  ;;  %v2073_v39 = vadd.f32 %v2065_v24, %v3800_v48  ;;  %v2082_v20 = vmax.f32 %v2074_v38, 0.0  ;;  %v2089_v48 = vld [vmem:[%s3874_s4] sm:$0xff] }
 0x21b   : > { %v2086_v17 = vmax.f32 %v2078_v5, 0.0 }
 0x21c   : > { %v2081_v10 = vmax.f32 %v2073_v39, 0.0 }
 0x21d   : > { %v2102_v0 = vmul.f32 %v2094_v36, %v2086_v17 }
 0x21e   : > { %v2052_v4 = vpop.f32.mrf.mxu3 }
 0x21f   : > { %v1826_v34 = vpop.f32.mrf.mxu1  ;;  %v2063_v52 = vadd.f32 %v2052_v4, %v1949_v16  ;;  %v2090_v4 = vld [vmem:[%s3874_s4 + $0x8] sm:$0xff] }
 0x220   : > { %v1836_v22 = vadd.f32 %v1826_v34, %v1722_v37  ;;  %v2098_v37 = vmul.f32 %v2090_v4, %v2082_v20  ;;  %v2097_v34 = vmul.f32 %v2089_v48, %v2081_v10 }
 0x221   : > { %v2079_v43 = vadd.f32 %v2071_v50, %v2063_v52 }
 0x222   : > { %v1950_v8 = vadd.f32 %v1940_v11, %v1836_v22  ;;  %v2135_v22 = vstv %s2134_s22 }
 0x223   : > { %v2087_v27 = vmax.f32 %v2079_v43, 0.0 }
 0x225   : > { %v2103_v29 = vmul.f32 %v2095_v47, %v2087_v27 }
 0x226   : > { %v2054_v19 = vpop.f32.mrf.mxu3 }
 0x227   : > { %v2064_v28 = vadd.f32 %v2054_v19, %v1950_v8 }
 0x229   : > { %v2080_v1 = vadd.f32 %v2072_v26, %v2064_v28 }
 0x22b   : > { %v2088_v6 = vmax.f32 %v2080_v1, 0.0 }
 0x22d   : > { %v2104_v23 = vmul.f32 %v2096_v45, %v2088_v6 }
 0x22f   : > { %2118 = vmatpush.msra.mxu0 %v2104_v23 }
 0x231   : > { %2119 = vmatpush.msra.mxu0 %v2103_v29 }
 0x233   : > { %2120 = vmatpush.msra.mxu0 %v2102_v0 }
 0x235   : > { %2121 = vmatpush.msra.mxu0 %v2101_v62 }
 0x237   : > { %2122 = vmatpush.msra.mxu0 %v2100_v40 }
 0x239   : > { %2123 = vmatpush.msra.mxu0 %v2099_v56 }
 0x23b   : > { %2124 = vmatpush.msra.mxu0 %v2098_v37 }
 0x23d   : > { %2125 = vmatpush.msra.mxu0 %v2097_v34 }
 0x23e   : > { %2911 = vmatmul.msk.f32.vlgmr.msra.gmra.mxu0 %vm2106_vm1, %v2105_v63 }
 0x2bb   : > { %v2127_v59 = vpop.f32.mrf.mxu0 }
 0x2bc   : > { %v2131_v16 = vsel %vm2130_vm2, %v2127_v59, 0.0 }
 0x2bd   : > { %2132 = vadd.xlane.f32.xlu0 %v2131_v16 }
 0x330   : > { %v2133_v44 = vpop.xlane.xlu0 %2132 }
 0x331   : > { %v2136_v30 = vadd.f32 %v2135_v22, %v2133_v44 }
 0x333   : > { %2137 = vst [vmem:[%s277_s28] sm:$0xf] %v2136_v30 }
 0x334 PF: > { %s18_s26 = sadd.s32 1, %s3050_s26  }
 0x335   : > { %p15_p4 = scmp.ge.s32.totalorder %s18_s26, 4  }
 0x337   :  { %17 = sbr.rel (!%p15_p4) target bundleno = 2 (0x2), region = 92 }

// kernel: pnngs_forward.1
= control target key start
LH: loop header
LB: loop body
LE: loop exit
PB: predicated region body
PF: predicated region fallthrough
CT: control target
= control target key end

     0   :  { %s3096_s26 = smov 0   ;;  %s3870_s0 = inlined_call_operand.vmem [shape: f32[2,64,16], index: 0, kind: input, shape index: {}]   ;;  %s3871_s1 = inlined_call_operand.vmem [shape: f32[16,128], index: 1, kind: input, shape index: {}]   ;;  %s3872_s2 = inlined_call_operand.vmem [shape: bf16[15,128,128], index: 2, kind: input, shape index: {}]   ;;  %s3873_s3 = inlined_call_operand.vmem [shape: f32[64,128], index: 3, kind: input, shape index: {}]   ;;  %s3874_s4 = inlined_call_operand.vmem [shape: f32[64,128], index: 4, kind: input, shape index: {}]   ;;  %s3875_s5 = inlined_call_operand.vmem [shape: f32[4,64], index: 5, kind: input, shape index: {}]   ;;  %s3876_s6 = inlined_call_operand.<no memory space> [shape: f32[1,1], index: 6, kind: input, shape index: {}]   ;;  %s3877_s7 = inlined_call_operand.vmem [shape: f32[2,4,128], index: 7, kind: output, shape index: {}]  }
   0x1   :  { %12 = sst [smem:[#allocation3]] %s3876_s6 }
   0x2 LB: > { %s2191_s27 = sadd.s32 4294967295, %s3050_s26   ;;  %p2195_p0 = scmp.ge.s32.totalorder %s3050_s26, 1  ;;  %s3050_s26 = sphi %s3096_s26, %s18_s26  }
   0x3   : > { %p238_p1 = scmp.lt.s32.totalorder %s3050_s26, 3 }
   0x5   : > { %p239_p2 = pnand %p2195_p0, %p238_p1 }
   0x6   : > { %p269_p3 = scmp.lt.s32.totalorder (!%p239_p2), %s2191_s27, 1  ;;  %s2134_s22 = sld [smem:[#allocation3]] (!%p239_p2) }
   0x7   : > { %242 = sbr.rel (%p239_p2) target bundleno = 820 (0x334), region = 48 }
   0xc   : > { %v287_v0 = vld [vmem:[%s3871_s1 + $0x8] sm:$0xff]  ;;  %v286_v1 = vld [vmem:[%s3871_s1] sm:$0xff]  ;;  %s3898_s27 = smov (!%p269_p3, %s2191_s27), 1  ;;  %vm288_vm0 = vcmask 130048   ;;  %v2922_v6 = vld [vmem:[%s3872_s2 + $0x38] sm:$0xff]  ;;  %vm2106_vm1 = vcmask 523264  }
   0xd   : > { %327 = vmatpush.msra.mxu0 %v287_v0  ;;  %s2914_s8 = sshll.u32 %s3898_s27, 6  ;;  %v2930_v7 = vld [vmem:[%s3872_s2 + $0x78] sm:$0xff]  ;;  %554 = vmatpush.bf16.msra.mxu2 %v2922_v6  ;;  %v2921_v10 = vld [vmem:[%s3872_s2 + $0x30] sm:$0xff]  ;;  %v2920_v12 = vld [vmem:[%s3872_s2 + $0x28] sm:$0xff]  ;;  %vm2130_vm2 = vcmask 1043456   ;;  %s2198_s23 = sshll.u32 %s3898_s27, 2 }
   0xe   : > { %s273_s11 = scalar_lea.vmem %s3870_s0, %s2914_s8  ;;  %v2938_v8 = vld [vmem:[%s3872_s2 + $0xb8] sm:$0xff]  ;;  %477 = vmatpush.bf16.msra.mxu1 %v2930_v7  ;;  %v2919_v16 = vld [vmem:[%s3872_s2 + $0x20] sm:$0xff]  ;;  %v2929_v18 = vld [vmem:[%s3872_s2 + $0x70] sm:$0xff]  ;;  %s277_s28 = scalar_lea.vmem %s3877_s7, %s2198_s23 }
   0xf   : > { %328 = vmatpush.msra.mxu0 %v286_v1  ;;  %v278_v2 = vld [vmem:[%s273_s11] sm:$0xff]  ;;  %v279_v3 = vld [vmem:[%s273_s11 + $0x8] sm:$0xff]  ;;  %v280_v4 = vld [vmem:[%s273_s11 + $0x10] sm:$0xff]  ;;  %660 = vmatpush.bf16.msra.mxu3 %v2938_v8 }
  0x10   : > { %2199 = vmatmul.msk.f32.vlgmr.msra.gmra.mxu0 %vm288_vm0, %v278_v2  ;;  %v281_v5 = vld [vmem:[%s273_s11 + $0x18] sm:$0xff]  ;;  %v282_v11 = vld [vmem:[%s273_s11 + $0x20] sm:$0xff]  ;;  %v283_v13 = vld [vmem:[%s273_s11 + $0x28] sm:$0xff] }
  0x11   : > { %v2946_v9 = vld [vmem:[%s3872_s2 + $0xf8] sm:$0xff]  ;;  %555 = vmatpush.bf16.msra.mxu2 %v2921_v10  ;;  %v284_v14 = vld [vmem:[%s273_s11 + $0x30] sm:$0xff]  ;;  %v2928_v22 = vld [vmem:[%s3872_s2 + $0x68] sm:$0xff] }
  0x12   : > { %774 = vmatpush.bf16.msrb.mxu0 %v2946_v9  ;;  %v285_v15 = vld [vmem:[%s273_s11 + $0x38] sm:$0xff]  ;;  %v2937_v19 = vld [vmem:[%s3872_s2 + $0xb0] sm:$0xff]  ;;  %478 = vmatpush.bf16.msra.mxu1 %v2929_v18  ;;  %v2936_v23 = vld [vmem:[%s3872_s2 + $0xa8] sm:$0xff] }
  0x13   : > { %v2918_v17 = vld [vmem:[%s3872_s2 + $0x18] sm:$0xff]  ;;  %v2945_v20 = vld [vmem:[%s3872_s2 + $0xf0] sm:$0xff]  ;;  %661 = vmatpush.bf16.msra.mxu3 %v2937_v19  ;;  %v2944_v24 = vld [vmem:[%s3872_s2 + $0xe8] sm:$0xff] }
  0x14   : > { %v2917_v21 = vld [vmem:[%s3872_s2 + $0x10] sm:$0xff]  ;;  %v2916_v25 = vld [vmem:[%s3872_s2 + $0x8] sm:$0xff]  ;;  %v2927_v26 = vld [vmem:[%s3872_s2 + $0x60] sm:$0xff] }
  0x15   : > { %556 = vmatpush.bf16.msra.mxu2 %v2920_v12  ;;  %v2935_v27 = vld [vmem:[%s3872_s2 + $0xa0] sm:$0xff]  ;;  %v2926_v30 = vld [vmem:[%s3872_s2 + $0x58] sm:$0xff]  ;;  %v2925_v33 = vld [vmem:[%s3872_s2 + $0x50] sm:$0xff] }
  0x16   : > { %775 = vmatpush.bf16.msrb.mxu0 %v2945_v20  ;;  %479 = vmatpush.bf16.msra.mxu1 %v2928_v22  ;;  %v2943_v28 = vld [vmem:[%s3872_s2 + $0xe0] sm:$0xff]  ;;  %v2934_v31 = vld [vmem:[%s3872_s2 + $0x98] sm:$0xff]  ;;  %v2933_v34 = vld [vmem:[%s3872_s2 + $0x90] sm:$0xff] }
  0x17   : > { %662 = vmatpush.bf16.msra.mxu3 %v2936_v23  ;;  %v2915_v29 = vld [vmem:[%s3872_s2] sm:$0xff]  ;;  %v2942_v32 = vld [vmem:[%s3872_s2 + $0xd8] sm:$0xff]  ;;  %v2941_v35 = vld [vmem:[%s3872_s2 + $0xd0] sm:$0xff] }
  0x18   : > { %2200 = vmatmul.msk.f32.gmra.mxu0 %vm288_vm0, %v279_v3  ;;  %v2924_v36 = vld [vmem:[%s3872_s2 + $0x48] sm:$0xff]  ;;  %v2923_v39 = vld [vmem:[%s3872_s2 + $0x40] sm:$0xff]  ;;  %v2962_v47 = vld [vmem:[%s3872_s2 + $0x178] sm:$0xff] }
  0x19   : > { %557 = vmatpush.bf16.msra.mxu2 %v2919_v16  ;;  %v2932_v37 = vld [vmem:[%s3872_s2 + $0x88] sm:$0xff]  ;;  %v2931_v40 = vld [vmem:[%s3872_s2 + $0x80] sm:$0xff]  ;;  %v2961_v50 = vld [vmem:[%s3872_s2 + $0x170] sm:$0xff] }
  0x1a   : > { %776 = vmatpush.bf16.msrb.mxu0 %v2944_v24  ;;  %480 = vmatpush.bf16.msra.mxu1 %v2927_v26  ;;  %v2940_v38 = vld [vmem:[%s3872_s2 + $0xc8] sm:$0xff]  ;;  %v2939_v41 = vld [vmem:[%s3872_s2 + $0xc0] sm:$0xff]  ;;  %v2954_v2 = vld [vmem:[%s3872_s2 + $0x138] sm:$0xff] }
  0x1b   : > { %663 = vmatpush.bf16.msra.mxu3 %v2935_v27  ;;  %v2960_v52 = vld [vmem:[%s3872_s2 + $0x168] sm:$0xff]  ;;  %v2959_v58 = vld [vmem:[%s3872_s2 + $0x160] sm:$0xff]  ;;  %v2970_v3 = vld [vmem:[%s3872_s2 + $0x1b8] sm:$0xff] }
  0x1c   : > { %v2953_v6 = vld [vmem:[%s3872_s2 + $0x130] sm:$0xff]  ;;  %v2958_v8 = vld [vmem:[%s3872_s2 + $0x158] sm:$0xff]  ;;  %v2952_v12 = vld [vmem:[%s3872_s2 + $0x128] sm:$0xff] }
  0x1d   : > { %558 = vmatpush.bf16.msra.mxu2 %v2918_v17  ;;  %v2969_v7 = vld [vmem:[%s3872_s2 + $0x1b0] sm:$0xff]  ;;  %v2976_v27 = vld [vmem:[%s3872_s2 + $0x1e8] sm:$0xff] }
  0x1e   : > { %777 = vmatpush.bf16.msrb.mxu0 %v2943_v28  ;;  %481 = vmatpush.bf16.msra.mxu1 %v2926_v30  ;;  %v2977_v10 = vld [vmem:[%s3872_s2 + $0x1f0] sm:$0xff] }
  0x1f   : > { %664 = vmatpush.bf16.msra.mxu3 %v2934_v31 }
  0x20   : > { %2201 = vmatmul.msk.f32.gmra.mxu0 %vm288_vm0, %v280_v4  ;;  %v2978_v4 = vld [vmem:[%s3872_s2 + $0x1f8] sm:$0xff] }
  0x21   : > { %559 = vmatpush.bf16.msra.mxu2 %v2917_v21 }
  0x22   : > { %778 = vmatpush.bf16.msrb.mxu0 %v2942_v32  ;;  %482 = vmatpush.bf16.msra.mxu1 %v2925_v33  ;;  %v2956_v32 = vld [vmem:[%s3872_s2 + $0x148] sm:$0xff] }
  0x23   : > { %665 = vmatpush.bf16.msra.mxu3 %v2933_v34  ;;  %v2951_v34 = vld [vmem:[%s3872_s2 + $0x120] sm:$0xff] }
  0x25   : > { %560 = vmatpush.bf16.msra.mxu2 %v2916_v25 }
  0x26   : > { %779 = vmatpush.bf16.msrb.mxu0 %v2941_v35  ;;  %483 = vmatpush.bf16.msra.mxu1 %v2924_v36  ;;  %v2967_v35 = vld [vmem:[%s3872_s2 + $0x1a0] sm:$0xff] }
  0x27   : > { %666 = vmatpush.bf16.msra.mxu3 %v2932_v37 }
  0x28   : > { %2202 = vmatmul.msk.f32.gmra.mxu0 %vm288_vm0, %v281_v5  ;;  %v3052_v5 = vmov 0.0  }
  0x29   : > { %561 = vmatpush.bf16.msra.mxu2 %v2915_v29  ;;  %370 = vst [vmem:[#allocation2 + $0x40] sm:$0xff] %v3052_v5 }
  0x2a   : > { %780 = vmatpush.bf16.msrb.mxu0 %v2940_v38  ;;  %484 = vmatpush.bf16.msra.mxu1 %v2923_v39  ;;  %371 = vst [vmem:[#allocation2 + $0x48] sm:$0xff] %v3052_v5 }
  0x2b   : > { %667 = vmatpush.bf16.msra.mxu3 %v2931_v40 }
  0x2d   : > { %1002 = vmatpush.bf16.msrb.mxu2 %v2962_v47  ;;  %v2950_v47 = vld [vmem:[%s3872_s2 + $0x118] sm:$0xff] }
  0x2e   : > { %781 = vmatpush.bf16.msrb.mxu0 %v2939_v41  ;;  %888 = vmatpush.bf16.msrb.mxu1 %v2954_v2 }
  0x2f   : > { %1116 = vmatpush.bf16.msrb.mxu3 %v2970_v3 }
  0x30   : > { %2203 = vmatmul.msk.f32.gmra.mxu0 %vm288_vm0, %v282_v11 }
  0x31   : > { %1003 = vmatpush.bf16.msrb.mxu2 %v2961_v50  ;;  %v2974_v50 = vld [vmem:[%s3872_s2 + $0x1d8] sm:$0xff] }
  0x32   : > { %1230 = vmatpush.bf16.msra.mxu0 %v2978_v4  ;;  %889 = vmatpush.bf16.msrb.mxu1 %v2953_v6 }
  0x33   : > { %1117 = vmatpush.bf16.msrb.mxu3 %v2969_v7 }
  0x35   : > { %1004 = vmatpush.bf16.msrb.mxu2 %v2960_v52 }
  0x36   : > { %1231 = vmatpush.bf16.msra.mxu0 %v2977_v10  ;;  %890 = vmatpush.bf16.msrb.mxu1 %v2952_v12 }
  0x38   : > { %2204 = vmatmul.msk.f32.gmra.mxu0 %vm288_vm0, %v283_v13  ;;  %v2968_v13 = vld [vmem:[%s3872_s2 + $0x1a8] sm:$0xff] }
  0x39   : > { %1005 = vmatpush.bf16.msrb.mxu2 %v2959_v58  ;;  %1118 = vmatpush.bf16.msrb.mxu3 %v2968_v13 }
  0x3a   : > { %1232 = vmatpush.bf16.msra.mxu0 %v2976_v27  ;;  %891 = vmatpush.bf16.msrb.mxu1 %v2951_v34  ;;  %v2947_v34 = vld [vmem:[%s3872_s2 + $0x100] sm:$0xff]  ;;  %v2994_v27 = vld [vmem:[%s3872_s2 + $0x278] sm:$0xff] }
  0x3d   : > { %1006 = vmatpush.bf16.msrb.mxu2 %v2958_v8  ;;  %1119 = vmatpush.bf16.msrb.mxu3 %v2967_v35  ;;  %v2948_v8 = vld [vmem:[%s3872_s2 + $0x108] sm:$0xff] }
  0x3e   : > { %892 = vmatpush.bf16.msrb.mxu1 %v2950_v47 }
  0x40   : > { %2205 = vmatmul.msk.f32.gmra.mxu0 %vm288_vm0, %v284_v14  ;;  %v2957_v14 = vld [vmem:[%s3872_s2 + $0x150] sm:$0xff] }
  0x41   : > { %1007 = vmatpush.bf16.msrb.mxu2 %v2957_v14 }
  0x45   : > { %1008 = vmatpush.bf16.msrb.mxu2 %v2956_v32 }
  0x48   : > { %2206 = vmatmul.msk.f32.gmra.mxu0 %vm288_vm0, %v285_v15 }
  0x8d   : > { %v330_v42 = vpop.f32.mrf.mxu0 }
  0x8e   : > { %v354_v43 = vmax.f32 %v330_v42, 0.0 }
  0x90   : > { %362 = vst [vmem:[#allocation2] sm:$0xff] %v354_v43 }
  0x95   : > { %v333_v44 = vpop.f32.mrf.mxu0 }
  0x96   : > { %v3220_v45 = vmax.f32 %v333_v44, 0.0  ;;  %v2975_v44 = vld [vmem:[%s3872_s2 + $0x1e0] sm:$0xff] }
  0x97   : > { %1233 = vmatpush.bf16.msra.mxu0 %v2975_v44 }
  0x98   : > { %363 = vst [vmem:[#allocation2 + $0x8] sm:$0xff] %v3220_v45  ;;  %v380_v46 = vpack.c.bf16 %v3220_v45, %v354_v43 }
  0x9a   : > { %562 = vmatmul.bf16.vlgmr.msra.gmra.mxu2 %v380_v46  ;;  %v2955_v46 = vld [vmem:[%s3872_s2 + $0x140] sm:$0xff] }
  0x9b   : > { %1009 = vmatpush.bf16.msrb.mxu2 %v2955_v46  ;;  %1234 = vmatpush.bf16.msra.mxu0 %v2974_v50  ;;  %v2971_v50 = vld [vmem:[%s3872_s2 + $0x1c0] sm:$0xff] }
  0x9d   : > { %v336_v48 = vpop.f32.mrf.mxu0 }
  0x9e   : > { %v3227_v49 = vmax.f32 %v336_v48, 0.0  ;;  %v2966_v48 = vld [vmem:[%s3872_s2 + $0x198] sm:$0xff] }
  0x9f   : > { %v400_v54 = vld [vmem:[#allocation2 + $0x1] sm:$0xff]  ;;  %1120 = vmatpush.bf16.msrb.mxu3 %v2966_v48  ;;  %1458 = vmatpush.bf16.msra.mxu2 %v2994_v27 }
  0xa0   : > { %364 = vst [vmem:[#allocation2 + $0x10] sm:$0xff] %v3227_v49  ;;  %v1275_v51 = vpack.c.bf16 %v3227_v49, %v3220_v45  ;;  %v583_v56 = vld [vmem:[#allocation2 + $0x2] sm:$0xff]  ;;  %v3034_v45 = vld [vmem:[%s3872_s2 + $0x3b8] sm:$0xff] }
  0xa1   : > { %v697_v57 = vld [vmem:[#allocation2 + $0x3] sm:$0xff] }
  0xa2   : > { %v2963_v48 = vld [vmem:[%s3872_s2 + $0x180] sm:$0xff] }
  0xa3   : > { %v1153_v12 = vld [vmem:[#allocation2 + $0x7] sm:$0xff] }
  0xa5   : > { %v339_v53 = vpop.f32.mrf.mxu0 }
  0xa6   : > { %v3238_v55 = vmax.f32 %v339_v53, 0.0  ;;  %v2949_v53 = vld [vmem:[%s3872_s2 + $0x110] sm:$0xff] }
  0xa7   : > { %v3243_v59 = vld [vmem:[#allocation2 + $0x9] sm:$0xff]  ;;  %893 = vmatpush.bf16.msrb.mxu1 %v2949_v53 }
  0xa8   : > { %v3245_v60 = vld [vmem:[#allocation2 + $0xa] sm:$0xff]  ;;  %365 = vst [vmem:[#allocation2 + $0x18] sm:$0xff] %v3238_v55  ;;  %v408_v62 = vpack.c.bf16 %v3243_v59, %v400_v54  ;;  %v381_v1 = vpack.c.bf16 %v3238_v55, %v3227_v49 }
  0xa9   : > { %v3247_v61 = vld [vmem:[#allocation2 + $0xb] sm:$0xff]  ;;  %v591_v63 = vpack.c.bf16 %v3245_v60, %v583_v56 }
  0xaa   : > { %v705_v0 = vpack.c.bf16 %v3247_v61, %v697_v57  ;;  %485 = vmatmul.bf16.vlgmr.msra.gmra.mxu1 %v408_v62  ;;  %567 = vmatmul.bf16.gmra.mxu2 %v381_v1  ;;  %v3287_v15 = vld [vmem:[#allocation2 + $0xd] sm:$0xff] }
  0xab   : > { %668 = vmatmul.bf16.vlgmr.msra.gmra.mxu3 %v591_v63  ;;  %v3289_v16 = vld [vmem:[#allocation2 + $0xc] sm:$0xff]  ;;  %894 = vmatpush.bf16.msrb.mxu1 %v2948_v8 }
  0xac   : > { %782 = vmatmul.bf16.vlgmr.msrb.gmra.mxu0 %v705_v0  ;;  %v3291_v17 = vld [vmem:[#allocation2 + $0xe] sm:$0xff] }
  0xad   : > { %v342_v9 = vpop.f32.mrf.mxu0  ;;  %v2965_v54 = vld [vmem:[%s3872_s2 + $0x190] sm:$0xff] }
  0xae   : > { %v3276_v11 = vmax.f32 %v342_v9, 0.0  ;;  %v2973_v57 = vld [vmem:[%s3872_s2 + $0x1d0] sm:$0xff]  ;;  %1121 = vmatpush.bf16.msrb.mxu3 %v2965_v54  ;;  %v2964_v9 = vld [vmem:[%s3872_s2 + $0x188] sm:$0xff] }
  0xaf   : > { %v3293_v18 = vld [vmem:[#allocation2 + $0x11] sm:$0xff]  ;;  %1235 = vmatpush.bf16.msra.mxu0 %v2973_v57  ;;  %895 = vmatpush.bf16.msrb.mxu1 %v2947_v34 }
  0xb0   : > { %v3295_v19 = vld [vmem:[#allocation2 + $0x12] sm:$0xff]  ;;  %366 = vst [vmem:[#allocation2 + $0x20] sm:$0xff] %v3276_v11  ;;  %v1389_v24 = vpack.c.bf16 %v3293_v18, %v3243_v59 }
  0xb1   : > { %v3297_v20 = vld [vmem:[#allocation2 + $0x13] sm:$0xff]  ;;  %v1503_v25 = vpack.c.bf16 %v3295_v19, %v3245_v60 }
  0xb2   : > { %v3300_v21 = vld [vmem:[#allocation2 + $0x15] sm:$0xff]  ;;  %1122 = vmatpush.bf16.msrb.mxu3 %v2964_v9 }
  0xb3   : > { %v3302_v22 = vld [vmem:[#allocation2 + $0x14] sm:$0xff] }
  0xb4   : > { %v3304_v23 = vld [vmem:[#allocation2 + $0x16] sm:$0xff] }
  0xb5   : > { %v345_v33 = vpop.f32.mrf.mxu0 }
  0xb6   : > { %v3332_v36 = vmax.f32 %v345_v33, 0.0  ;;  %v2972_v33 = vld [vmem:[%s3872_s2 + $0x1c8] sm:$0xff]  ;;  %1123 = vmatpush.bf16.msrb.mxu3 %v2963_v48 }
  0xb7   : > { %v3334_v37 = vld [vmem:[#allocation2 + $0x19] sm:$0xff]  ;;  %1236 = vmatpush.bf16.msra.mxu0 %v2972_v33 }
  0xb8   : > { %v3336_v38 = vld [vmem:[#allocation2 + $0x1a] sm:$0xff]  ;;  %367 = vst [vmem:[#allocation2 + $0x28] sm:$0xff] %v3332_v36  ;;  %v409_v40 = vpack.c.bf16 %v3334_v37, %v3293_v18  ;;  %v382_v43 = vpack.c.bf16 %v3332_v36, %v3276_v11 }
  0xb9   : > { %v3338_v39 = vld [vmem:[#allocation2 + $0x1b] sm:$0xff]  ;;  %v592_v41 = vpack.c.bf16 %v3336_v38, %v3295_v19 }
  0xba   : > { %v706_v42 = vpack.c.bf16 %v3338_v39, %v3297_v20  ;;  %490 = vmatmul.bf16.gmra.mxu1 %v409_v40  ;;  %572 = vmatmul.bf16.gmra.mxu2 %v382_v43  ;;  %v3375_v58 = vld [vmem:[#allocation2 + $0x1d] sm:$0xff] }
  0xbb   : > { %673 = vmatmul.bf16.gmra.mxu3 %v592_v41  ;;  %v3377_v62 = vld [vmem:[#allocation2 + $0x1c] sm:$0xff]  ;;  %1237 = vmatpush.bf16.msra.mxu0 %v2971_v50 }
  0xbc   : > { %787 = vmatmul.bf16.gmra.mxu0 %v706_v42  ;;  %v3404_v10 = vld [vmem:[#allocation2 + $0x1e] sm:$0xff] }
  0xbd   : > { %v348_v52 = vpop.f32.mrf.mxu0 }
  0xbe   : > { %v3370_v56 = vmax.f32 %v348_v52, 0.0  ;;  %v925_v52 = vld [vmem:[#allocation2 + $0x5] sm:$0xff] }
  0xbf   : > { %v3379_v63 = vld [vmem:[#allocation2 + $0x21] sm:$0xff]  ;;  %v933_v50 = vpack.c.bf16 %v3287_v15, %v925_v52  ;;  %v1154_v52 = vld [vmem:[#allocation2 + $0xf] sm:$0xff] }
  0xc0   : > { %v3381_v0 = vld [vmem:[#allocation2 + $0x22] sm:$0xff]  ;;  %368 = vst [vmem:[#allocation2 + $0x30] sm:$0xff] %v3370_v56  ;;  %v1161_v9 = vpack.c.bf16 %v1154_v52, %v1153_v12  ;;  %v3010_v12 = vld [vmem:[%s3872_s2 + $0x2f8] sm:$0xff]  ;;  %v2985_v52 = vld [vmem:[%s3872_s2 + $0x230] sm:$0xff] }
  0xc1   : > { %v3383_v1 = vld [vmem:[#allocation2 + $0x23] sm:$0xff]  ;;  %1686 = vmatpush.bf16.msrb.mxu0 %v3010_v12 }
  0xc2   : > { %v3386_v2 = vld [vmem:[#allocation2 + $0x25] sm:$0xff] }
  0xc3   : > { %v3388_v3 = vld [vmem:[#allocation2 + $0x24] sm:$0xff] }
  0xc4   : > { %v3390_v4 = vld [vmem:[#allocation2 + $0x26] sm:$0xff] }
  0xc5   : > { %v351_v32 = vpop.f32.mrf.mxu0  ;;  %v2999_v12 = vld [vmem:[%s3872_s2 + $0x2a0] sm:$0xff] }
  0xc6   : > { %v3420_v35 = vmax.f32 %v351_v32, 0.0  ;;  %v2992_v32 = vld [vmem:[%s3872_s2 + $0x268] sm:$0xff] }
  0xc7   : > { %v3422_v40 = vld [vmem:[#allocation2 + $0x29] sm:$0xff] }
  0xc8   : > { %v3424_v41 = vld [vmem:[#allocation2 + $0x2a] sm:$0xff]  ;;  %369 = vst [vmem:[#allocation2 + $0x38] sm:$0xff] %v3420_v35  ;;  %v410_v43 = vpack.c.bf16 %v3422_v40, %v3379_v63  ;;  %v383_v47 = vpack.c.bf16 %v3420_v35, %v3370_v56 }
  0xc9   : > { %v3426_v42 = vld [vmem:[#allocation2 + $0x2b] sm:$0xff]  ;;  %v593_v44 = vpack.c.bf16 %v3424_v41, %v3381_v0 }
  0xca   : > { %v707_v46 = vpack.c.bf16 %v3426_v42, %v3383_v1  ;;  %495 = vmatmul.bf16.gmra.mxu1 %v410_v43  ;;  %577 = vmatmul.bf16.gmra.mxu2 %v383_v47  ;;  %v3450_v8 = vld [vmem:[#allocation2 + $0x2d] sm:$0xff] }
  0xcb   : > { %678 = vmatmul.bf16.gmra.mxu3 %v593_v44  ;;  %v3456_v33 = vld [vmem:[#allocation2 + $0x2c] sm:$0xff]  ;;  %v935_v7 = vpack.c.bf16 %v3450_v8, %v3386_v2 }
  0xcc   : > { %792 = vmatmul.bf16.gmra.mxu0 %v707_v46  ;;  %v3464_v46 = vld [vmem:[#allocation2 + $0x2e] sm:$0xff] }
  0xcd   : > { %v2993_v44 = vld [vmem:[%s3872_s2 + $0x270] sm:$0xff] }
  0xce   : > { %1459 = vmatpush.bf16.msra.mxu2 %v2993_v44  ;;  %v934_v44 = vpack.c.bf16 %v3375_v58, %v3300_v21 }
  0xcf   : > { %v3444_v53 = vld [vmem:[#allocation2 + $0x31] sm:$0xff]  ;;  %v3474_v14 = vld [vmem:[#allocation2 + $0x39] sm:$0xff] }
  0xd0   : > { %v3446_v54 = vld [vmem:[#allocation2 + $0x32] sm:$0xff]  ;;  %v3476_v13 = vld [vmem:[#allocation2 + $0x3a] sm:$0xff]  ;;  %v411_v30 = vpack.c.bf16 %v3474_v14, %v3444_v53 }
  0xd1   : > { %v3448_v57 = vld [vmem:[#allocation2 + $0x33] sm:$0xff]  ;;  %v3478_v31 = vld [vmem:[#allocation2 + $0x3b] sm:$0xff]  ;;  %v594_v29 = vpack.c.bf16 %v3476_v13, %v3446_v54 }
  0xd2   : > { %v3458_v34 = vld [vmem:[#allocation2 + $0x35] sm:$0xff]  ;;  %v708_v48 = vpack.c.bf16 %v3478_v31, %v3448_v57  ;;  %1460 = vmatpush.bf16.msra.mxu2 %v2992_v32  ;;  %v3603_v6 = vld [vmem:[#allocation2 + $0x3e] sm:$0xff] }
  0xd3   : > { %v3460_v43 = vld [vmem:[#allocation2 + $0x34] sm:$0xff] }
  0xd4   : > { %v3466_v47 = vld [vmem:[#allocation2 + $0x36] sm:$0xff] }
  0xd5   : > { %v2986_v32 = vld [vmem:[%s3872_s2 + $0x238] sm:$0xff]  ;;  %v1050_v5 = vpack.c.bf16 %v3603_v6, %v3466_v47 }
  0xd6   : > { %1344 = vmatpush.bf16.msra.mxu1 %v2986_v32  ;;  %v3008_v32 = vld [vmem:[%s3872_s2 + $0x2e8] sm:$0xff]  ;;  %v1159_v28 = vld [vmem:[#allocation2 + $0x37] sm:$0xff] }
  0xda   : > { %500 = vmatmul.bf16.gmra.mxu1 %v411_v30  ;;  %1010 = vmatmul.bf16.vlgmr.msrb.gmra.mxu2 %v933_v50  ;;  %v811_v30 = vld [vmem:[#allocation2 + $0x4] sm:$0xff] }
  0xdb   : > { %683 = vmatmul.bf16.gmra.mxu3 %v594_v29  ;;  %v1039_v29 = vld [vmem:[#allocation2 + $0x6] sm:$0xff]  ;;  %v819_v50 = vpack.c.bf16 %v3289_v16, %v811_v30  ;;  %v3002_v30 = vld [vmem:[%s3872_s2 + $0x2b8] sm:$0xff]  ;;  %1345 = vmatpush.bf16.msra.mxu1 %v2985_v52 }
  0xdc   : > { %797 = vmatmul.bf16.gmra.mxu0 %v708_v48  ;;  %v2991_v48 = vld [vmem:[%s3872_s2 + $0x260] sm:$0xff]  ;;  %v1047_v27 = vpack.c.bf16 %v3291_v17, %v1039_v29  ;;  %1572 = vmatpush.bf16.msra.mxu3 %v3002_v30  ;;  %v2990_v29 = vld [vmem:[%s3872_s2 + $0x258] sm:$0xff]  ;;  %v2988_v52 = vld [vmem:[%s3872_s2 + $0x248] sm:$0xff] }
  0xdd   : > { %1461 = vmatpush.bf16.msra.mxu2 %v2991_v48  ;;  %v3009_v48 = vld [vmem:[%s3872_s2 + $0x2f0] sm:$0xff]  ;;  %v2983_v30 = vld [vmem:[%s3872_s2 + $0x220] sm:$0xff] }
  0xde   : > { %1687 = vmatpush.bf16.msrb.mxu0 %v3009_v48  ;;  %v1048_v48 = vpack.c.bf16 %v3404_v10, %v3304_v23 }
  0xe1   : > { %1462 = vmatpush.bf16.msra.mxu2 %v2990_v29  ;;  %v820_v29 = vpack.c.bf16 %v3377_v62, %v3302_v22 }
  0xe2   : > { %1688 = vmatpush.bf16.msrb.mxu0 %v3008_v32  ;;  %v2987_v32 = vld [vmem:[%s3872_s2 + $0x240] sm:$0xff] }
  0xea   : > { %896 = vmatmul.bf16.vlgmr.msrb.gmra.mxu1 %v819_v50  ;;  %1015 = vmatmul.bf16.gmra.mxu2 %v934_v44  ;;  %v2989_v50 = vld [vmem:[%s3872_s2 + $0x250] sm:$0xff]  ;;  %v3000_v44 = vld [vmem:[%s3872_s2 + $0x2a8] sm:$0xff] }
  0xeb   : > { %1124 = vmatmul.bf16.vlgmr.msrb.gmra.mxu3 %v1047_v27  ;;  %v2984_v27 = vld [vmem:[%s3872_s2 + $0x228] sm:$0xff]  ;;  %1463 = vmatpush.bf16.msra.mxu2 %v2989_v50  ;;  %v1155_v50 = vld [vmem:[#allocation2 + $0x17] sm:$0xff] }
  0xec   : > { %1238 = vmatmul.bf16.vlgmr.msra.gmra.mxu0 %v1161_v9  ;;  %v3001_v9 = vld [vmem:[%s3872_s2 + $0x2b0] sm:$0xff]  ;;  %1346 = vmatpush.bf16.msra.mxu1 %v2984_v27  ;;  %v3007_v27 = vld [vmem:[%s3872_s2 + $0x2e0] sm:$0xff] }
  0xed   : > { %1573 = vmatpush.bf16.msra.mxu3 %v3001_v9  ;;  %v1156_v9 = vld [vmem:[#allocation2 + $0x1f] sm:$0xff]  ;;  %1689 = vmatpush.bf16.msrb.mxu0 %v3007_v27  ;;  %v3004_v27 = vld [vmem:[%s3872_s2 + $0x2c8] sm:$0xff] }
  0xef   : > { %1464 = vmatpush.bf16.msra.mxu2 %v2988_v52  ;;  %v2982_v52 = vld [vmem:[%s3872_s2 + $0x218] sm:$0xff] }
  0xf0   : > { %1347 = vmatpush.bf16.msra.mxu1 %v2983_v30  ;;  %v3006_v30 = vld [vmem:[%s3872_s2 + $0x2d8] sm:$0xff] }
  0xf1   : > { %1574 = vmatpush.bf16.msra.mxu3 %v3000_v44  ;;  %v1162_v44 = vpack.c.bf16 %v1156_v9, %v1155_v50  ;;  %v2998_v9 = vld [vmem:[%s3872_s2 + $0x298] sm:$0xff]  ;;  %1690 = vmatpush.bf16.msrb.mxu0 %v3006_v30  ;;  %v2996_v50 = vld [vmem:[%s3872_s2 + $0x288] sm:$0xff] }
  0xf2   : > { %v1157_v30 = vld [vmem:[#allocation2 + $0x27] sm:$0xff] }
  0xf3   : > { %1465 = vmatpush.bf16.msra.mxu2 %v2987_v32  ;;  %v3584_v32 = vld [vmem:[#allocation2 + $0x3d] sm:$0xff] }
  0xf4   : > { %1348 = vmatpush.bf16.msra.mxu1 %v2982_v52  ;;  %v821_v52 = vpack.c.bf16 %v3456_v33, %v3388_v3 }
  0xf5   : > { %1575 = vmatpush.bf16.msra.mxu3 %v2999_v12  ;;  %v2997_v12 = vld [vmem:[%s3872_s2 + $0x290] sm:$0xff] }
  0xf9   : > { %1576 = vmatpush.bf16.msra.mxu3 %v2998_v9  ;;  %v1049_v9 = vpack.c.bf16 %v3464_v46, %v3390_v4 }
  0xfa   : > { %901 = vmatmul.bf16.gmra.mxu1 %v820_v29  ;;  %1020 = vmatmul.bf16.gmra.mxu2 %v935_v7  ;;  %v2981_v7 = vld [vmem:[%s3872_s2 + $0x210] sm:$0xff] }
  0xfb   : > { %1129 = vmatmul.bf16.gmra.mxu3 %v1048_v48  ;;  %v3005_v29 = vld [vmem:[%s3872_s2 + $0x2d0] sm:$0xff]  ;;  %1349 = vmatpush.bf16.msra.mxu1 %v2981_v7  ;;  %v2980_v48 = vld [vmem:[%s3872_s2 + $0x208] sm:$0xff]  ;;  %v2979_v7 = vld [vmem:[%s3872_s2 + $0x200] sm:$0xff] }
  0xfc   : > { %1243 = vmatmul.bf16.gmra.mxu0 %v1162_v44  ;;  %v1158_v44 = vld [vmem:[#allocation2 + $0x2f] sm:$0xff] }
  0xfd   : > { %1577 = vmatpush.bf16.msra.mxu3 %v2997_v12  ;;  %1691 = vmatpush.bf16.msrb.mxu0 %v3005_v29  ;;  %v2995_v12 = vld [vmem:[%s3872_s2 + $0x280] sm:$0xff]  ;;  %v1163_v29 = vpack.c.bf16 %v1158_v44, %v1157_v30 }
  0xfe   : > { %v1160_v44 = vld [vmem:[#allocation2 + $0x3f] sm:$0xff] }
  0xff   : > { %1350 = vmatpush.bf16.msra.mxu1 %v2980_v48  ;;  %v936_v48 = vpack.c.bf16 %v3584_v32, %v3458_v34  ;;  %v1164_v26 = vpack.c.bf16 %v1160_v44, %v1159_v28  ;;  %v3016_v44 = vld [vmem:[%s3872_s2 + $0x328] sm:$0xff] }
 0x101   : > { %1578 = vmatpush.bf16.msra.mxu3 %v2996_v50  ;;  %1692 = vmatpush.bf16.msrb.mxu0 %v3004_v27  ;;  %v3003_v50 = vld [vmem:[%s3872_s2 + $0x2c0] sm:$0xff] }
 0x102   : > { %v3601_v27 = vld [vmem:[#allocation2 + $0x3c] sm:$0xff] }
 0x103   : > { %1351 = vmatpush.bf16.msra.mxu1 %v2979_v7  ;;  %v822_v30 = vpack.c.bf16 %v3601_v27, %v3460_v43  ;;  %v3025_v7 = vld [vmem:[%s3872_s2 + $0x370] sm:$0xff] }
 0x105   : > { %1579 = vmatpush.bf16.msra.mxu3 %v2995_v12  ;;  %1693 = vmatpush.bf16.msrb.mxu0 %v3003_v50  ;;  %v3021_v50 = vld [vmem:[%s3872_s2 + $0x350] sm:$0xff] }
 0x109   : > { %2028 = vmatpush.bf16.msrb.mxu3 %v3034_v45  ;;  %v3880_v45 = vpack.c.bf16 %v3276_v11, %v3238_v55  ;;  %v3030_v55 = vld [vmem:[%s3872_s2 + $0x398] sm:$0xff] }
 0x10a   : > { %906 = vmatmul.bf16.gmra.mxu1 %v821_v52  ;;  %1025 = vmatmul.bf16.gmra.mxu2 %v936_v48  ;;  %v3018_v48 = vld [vmem:[%s3872_s2 + $0x338] sm:$0xff] }
 0x10b   : > { %1134 = vmatmul.bf16.gmra.mxu3 %v1049_v9  ;;  %v3026_v9 = vld [vmem:[%s3872_s2 + $0x378] sm:$0xff]  ;;  %1800 = vmatpush.bf16.msrb.mxu1 %v3018_v48  ;;  %v3019_v48 = vld [vmem:[%s3872_s2 + $0x340] sm:$0xff] }
 0x10c   : > { %1248 = vmatmul.bf16.gmra.mxu0 %v1163_v29  ;;  %1914 = vmatpush.bf16.msrb.mxu2 %v3026_v9  ;;  %v3879_v29 = vpack.c.bf16 %v3379_v63, %v3334_v37  ;;  %v3017_v37 = vld [vmem:[%s3872_s2 + $0x330] sm:$0xff]  ;;  %v3020_v9 = vld [vmem:[%s3872_s2 + $0x348] sm:$0xff] }
 0x10d   : > { %v3033_v63 = vld [vmem:[%s3872_s2 + $0x3b0] sm:$0xff] }
 0x10e   : > { %2029 = vmatpush.bf16.msrb.mxu3 %v3033_v63  ;;  %v3028_v63 = vld [vmem:[%s3872_s2 + $0x388] sm:$0xff] }
 0x10f   : > { %1801 = vmatpush.bf16.msrb.mxu1 %v3017_v37  ;;  %v3012_v37 = vld [vmem:[%s3872_s2 + $0x308] sm:$0xff] }
 0x110   : > { %1915 = vmatpush.bf16.msrb.mxu2 %v3025_v7 }
 0x113   : > { %1802 = vmatpush.bf16.msrb.mxu1 %v3016_v44 }
 0x11a   : > { %911 = vmatmul.bf16.gmra.mxu1 %v822_v30  ;;  %1466 = vmatmul.bf16.vlgmr.msra.gmra.mxu2 %v1389_v24  ;;  %v3023_v24 = vld [vmem:[%s3872_s2 + $0x360] sm:$0xff]  ;;  %v3032_v30 = vld [vmem:[%s3872_s2 + $0x3a8] sm:$0xff] }
 0x11b   : > { %1139 = vmatmul.bf16.gmra.mxu3 %v1050_v5  ;;  %v3878_v5 = vpack.c.bf16 %v3297_v20, %v3247_v61 }
 0x11c   : > { %1253 = vmatmul.bf16.gmra.mxu0 %v1164_v26  ;;  %v3024_v26 = vld [vmem:[%s3872_s2 + $0x368] sm:$0xff]  ;;  %2030 = vmatpush.bf16.msrb.mxu3 %v3032_v30 }
 0x11d   : > { %v563_v52 = vpop.f32.mrf.mxu2  ;;  %1916 = vmatpush.bf16.msrb.mxu2 %v3024_v26 }
 0x121   : > { %1917 = vmatpush.bf16.msrb.mxu2 %v3023_v24  ;;  %v3015_v24 = vld [vmem:[%s3872_s2 + $0x320] sm:$0xff] }
 0x122   : > { %1803 = vmatpush.bf16.msrb.mxu1 %v3015_v24 }
 0x125   : > { %v565_v12 = vpop.f32.mrf.mxu2 }
 0x127   : > { %v486_v28 = vpop.f32.mrf.mxu1 }
 0x128   : > { %v564_v59 = vadd.f32 %v563_v52, %v486_v28 }
 0x129   : > { %v3621_v18 = vpop.f32.mrf.mxu0 }
 0x12a   : > { %1352 = vmatmul.bf16.vlgmr.msra.gmra.mxu1 %v1275_v51  ;;  %1471 = vmatmul.bf16.gmra.mxu2 %v3879_v29  ;;  %v3022_v51 = vld [vmem:[%s3872_s2 + $0x358] sm:$0xff] }
 0x12b   : > { %1580 = vmatmul.bf16.vlgmr.msra.gmra.mxu3 %v1503_v25  ;;  %1918 = vmatpush.bf16.msrb.mxu2 %v3022_v51  ;;  %v3882_v51 = vpack.c.bf16 %v3383_v1, %v3338_v39 }
 0x12c   : > { %1694 = vmatmul.bf16.vlgmr.msrb.gmra.mxu0 %v3878_v5  ;;  %v3031_v5 = vld [vmem:[%s3872_s2 + $0x3a0] sm:$0xff] }
 0x12d   : > { %v568_v61 = vpop.f32.mrf.mxu2  ;;  %2031 = vmatpush.bf16.msrb.mxu3 %v3031_v5  ;;  %v3884_v5 = vpack.c.bf16 %v3370_v56, %v3332_v36  ;;  %v1502_v56 = vld [vmem:[#allocation2 + $0x42] sm:$0xff] }
 0x12e   : > { %v669_v49 = vpop.f32.mrf.mxu3 }
 0x12f   : > { %v3647_v60 = vadd.f32 %v669_v49, %v564_v59  ;;  %v488_v19 = vpop.f32.mrf.mxu1  ;;  %1919 = vmatpush.bf16.msrb.mxu2 %v3021_v50  ;;  %v3881_v49 = vpack.c.bf16 %v3381_v0, %v3336_v38 }
 0x130   : > { %v566_v20 = vadd.f32 %v565_v12, %v488_v19  ;;  %v3014_v19 = vld [vmem:[%s3872_s2 + $0x318] sm:$0xff] }
 0x131   : > { %v785_v25 = vpop.f32.mrf.mxu0  ;;  %1804 = vmatpush.bf16.msrb.mxu1 %v3014_v19  ;;  %2032 = vmatpush.bf16.msrb.mxu3 %v3030_v55 }
 0x133   : > { %1920 = vmatpush.bf16.msrb.mxu2 %v3020_v9 }
 0x135   : > { %v570_v12 = vpop.f32.mrf.mxu2 }
 0x136   : > { %v671_v52 = vpop.f32.mrf.mxu3 }
 0x137   : > { %v690_v7 = vadd.f32 %v671_v52, %v566_v20  ;;  %v491_v26 = vpop.f32.mrf.mxu1  ;;  %1921 = vmatpush.bf16.msrb.mxu2 %v3019_v48  ;;  %v1388_v52 = vld [vmem:[#allocation2 + $0x41] sm:$0xff]  ;;  %v3885_v48 = vpack.c.bf16 %v3446_v54, %v3424_v41 }
 0x138   : > { %v569_v28 = vadd.f32 %v568_v61, %v491_v26  ;;  %v3883_v61 = vpack.c.bf16 %v3444_v53, %v3422_v40  ;;  %v3013_v40 = vld [vmem:[%s3872_s2 + $0x310] sm:$0xff]  ;;  %v3011_v26 = vld [vmem:[%s3872_s2 + $0x300] sm:$0xff]  ;;  %v1392_v24 = vpack.c.bf16 %v1388_v52, %v3474_v14 }
 0x139   : > { %v788_v59 = vpop.f32.mrf.mxu0  ;;  %v3673_v29 = vadd.f32 %v785_v25, %v690_v7  ;;  %v3029_v53 = vld [vmem:[%s3872_s2 + $0x390] sm:$0xff]  ;;  %1805 = vmatpush.bf16.msrb.mxu1 %v3013_v40  ;;  %v1616_v41 = vld [vmem:[#allocation2 + $0x43] sm:$0xff]  ;;  %v3887_v40 = vpack.c.bf16 0.0, %v3420_v35 }
 0x13a   : > { %1357 = vmatmul.bf16.gmra.mxu1 %v3880_v45  ;;  %1476 = vmatmul.bf16.gmra.mxu2 %v3883_v61  ;;  %v3886_v45 = vpack.c.bf16 %v3448_v57, %v3426_v42  ;;  %v1506_v57 = vpack.c.bf16 %v1502_v56, %v3476_v13 }
 0x13b   : > { %1585 = vmatmul.bf16.gmra.mxu3 %v3881_v49 }
 0x13c   : > { %1699 = vmatmul.bf16.gmra.mxu0 %v3882_v51  ;;  %2033 = vmatpush.bf16.msrb.mxu3 %v3029_v53  ;;  %v3888_v53 = vpack.c.bf16 %v3300_v21, %v3287_v15  ;;  %v3889_v15 = vpack.c.bf16 %v3302_v22, %v3289_v16  ;;  %v3890_v21 = vpack.c.bf16 %v3304_v23, %v3291_v17 }
 0x13d   : > { %v573_v0 = vpop.f32.mrf.mxu2  ;;  %1806 = vmatpush.bf16.msrb.mxu1 %v3012_v37 }
 0x13e   : > { %v674_v11 = vpop.f32.mrf.mxu3 }
 0x13f   : > { %v691_v38 = vadd.f32 %v674_v11, %v569_v28  ;;  %v493_v39 = vpop.f32.mrf.mxu1  ;;  %v3027_v28 = vld [vmem:[%s3872_s2 + $0x380] sm:$0xff] }
 0x140   : > { %v571_v1 = vadd.f32 %v570_v12, %v493_v39  ;;  %2034 = vmatpush.bf16.msrb.mxu3 %v3028_v63 }
 0x141   : > { %v790_v20 = vpop.f32.mrf.mxu0  ;;  %v3702_v25 = vadd.f32 %v788_v59, %v691_v38  ;;  %1807 = vmatpush.bf16.msrb.mxu1 %v3011_v26 }
 0x144   : > { %2035 = vmatpush.bf16.msrb.mxu3 %v3027_v28 }
 0x145   : > { %v575_v30 = vpop.f32.mrf.mxu2 }
 0x146   : > { %v676_v50 = vpop.f32.mrf.mxu3 }
 0x147   : > { %v692_v44 = vadd.f32 %v676_v50, %v571_v1  ;;  %v496_v9 = vpop.f32.mrf.mxu1 }
 0x148   : > { %v574_v7 = vadd.f32 %v573_v0, %v496_v9 }
 0x149   : > { %v793_v12 = vpop.f32.mrf.mxu0  ;;  %v3716_v59 = vadd.f32 %v790_v20, %v692_v44  ;;  %v1620_v20 = vpack.c.bf16 %v1616_v41, %v3478_v31  ;;  %v803_v31 = vadd.f32 %v3621_v18, %v3647_v60 }
 0x14a   : > { %1362 = vmatmul.bf16.gmra.mxu1 %v3884_v5  ;;  %1481 = vmatmul.bf16.gmra.mxu2 %v1392_v24 }
 0x14b   : > { %1590 = vmatmul.bf16.gmra.mxu3 %v3885_v48  ;;  %v3891_v48 = vpack.c.bf16 %v3386_v2, %v3375_v58  ;;  %v3892_v58 = vpack.c.bf16 %v3388_v3, %v3377_v62  ;;  %v3893_v2 = vpack.c.bf16 %v3390_v4, %v3404_v10  ;;  %v1844_v4 = vld [vmem:[#allocation2 + $0x45] sm:$0xff] }
 0x14c   : > { %1704 = vmatmul.bf16.gmra.mxu0 %v3886_v45 }
 0x14d   : > { %v578_v61 = vpop.f32.mrf.mxu2 }
 0x14e   : > { %v679_v49 = vpop.f32.mrf.mxu3 }
 0x14f   : > { %v693_v51 = vadd.f32 %v679_v49, %v574_v7  ;;  %v498_v19 = vpop.f32.mrf.mxu1 }
 0x150   : > { %v576_v14 = vadd.f32 %v575_v30, %v498_v19 }
 0x151   : > { %v795_v55 = vpop.f32.mrf.mxu0  ;;  %v3728_v11 = vadd.f32 %v793_v12, %v693_v51 }
 0x155   : > { %v580_v54 = vpop.f32.mrf.mxu2 }
 0x156   : > { %v681_v36 = vpop.f32.mrf.mxu3 }
 0x157   : > { %v694_v38 = vadd.f32 %v681_v36, %v576_v14  ;;  %v501_v0 = vpop.f32.mrf.mxu1 }
 0x158   : > { %v579_v39 = vadd.f32 %v578_v61, %v501_v0 }
 0x159   : > { %v798_v42 = vpop.f32.mrf.mxu0  ;;  %v3731_v1 = vadd.f32 %v795_v55, %v694_v38  ;;  %v3894_v38 = vpack.c.bf16 %v3458_v34, %v3450_v8  ;;  %v1848_v34 = vpack.c.bf16 %v1844_v4, %v3584_v32 }
 0x15a   : > { %1367 = vmatmul.bf16.gmra.mxu1 %v3887_v40  ;;  %1922 = vmatmul.bf16.vlgmr.msrb.gmra.mxu2 %v3888_v53 }
 0x15b   : > { %1595 = vmatmul.bf16.gmra.mxu3 %v1506_v57 }
 0x15c   : > { %1709 = vmatmul.bf16.gmra.mxu0 %v1620_v20 }
 0x15d   : > { %v1011_v50 = vpop.f32.mrf.mxu2 }
 0x15e   : > { %v684_v37 = vpop.f32.mrf.mxu3 }
 0x15f   : > { %v695_v63 = vadd.f32 %v684_v37, %v579_v39  ;;  %v503_v44 = vpop.f32.mrf.mxu1 }
 0x160   : > { %v581_v30 = vadd.f32 %v580_v54, %v503_v44 }
 0x161   : > { %v800_v52 = vpop.f32.mrf.mxu0  ;;  %v3739_v13 = vadd.f32 %v798_v42, %v695_v63  ;;  %v3895_v63 = vpack.c.bf16 %v3460_v43, %v3456_v33 }
 0x165   : > { %v1013_v35 = vpop.f32.mrf.mxu2 }
 0x166   : > { %v686_v9 = vpop.f32.mrf.mxu3 }
 0x167   : > { %v696_v7 = vadd.f32 %v686_v9, %v581_v30  ;;  %v897_v12 = vpop.f32.mrf.mxu1 }
 0x168   : > { %v917_v26 = vadd.f32 %v897_v12, %v803_v31  ;;  %v1730_v12 = vld [vmem:[#allocation2 + $0x44] sm:$0xff] }
 0x169   : > { %v1239_v28 = vpop.f32.mrf.mxu0  ;;  %v3743_v24 = vadd.f32 %v800_v52, %v696_v7 }
 0x16a   : > { %1808 = vmatmul.bf16.vlgmr.msrb.gmra.mxu1 %v3889_v15  ;;  %v1031_v5 = vadd.f32 %v1011_v50, %v917_v26  ;;  %1927 = vmatmul.bf16.gmra.mxu2 %v3891_v48  ;;  %v1958_v26 = vld [vmem:[#allocation2 + $0x46] sm:$0xff] }
 0x16b   : > { %2036 = vmatmul.bf16.vlgmr.msrb.gmra.mxu3 %v3890_v21  ;;  %v1962_v15 = vpack.c.bf16 %v1958_v26, %v3603_v6 }
 0x16d   : > { %v1016_v45 = vpop.f32.mrf.mxu2 }
 0x16e   : > { %v1125_v18 = vpop.f32.mrf.mxu3 }
 0x16f   : > { %v1145_v60 = vadd.f32 %v1125_v18, %v1031_v5  ;;  %v899_v49 = vpop.f32.mrf.mxu1 }
 0x170   : > { %v918_v51 = vadd.f32 %v899_v49, %v3673_v29 }
 0x171   : > { %v1241_v61 = vpop.f32.mrf.mxu0  ;;  %v3755_v19 = vadd.f32 %v1239_v28, %v1145_v60 }
 0x172   : > { %v1032_v16 = vadd.f32 %v1013_v35, %v918_v51 }
 0x175   : > { %v1018_v55 = vpop.f32.mrf.mxu2 }
 0x176   : > { %v1127_v22 = vpop.f32.mrf.mxu3 }
 0x177   : > { %v1146_v14 = vadd.f32 %v1127_v22, %v1032_v16  ;;  %v902_v17 = vpop.f32.mrf.mxu1 }
 0x178   : > { %v919_v23 = vadd.f32 %v902_v17, %v3702_v25 }
 0x179   : > { %v1244_v36 = vpop.f32.mrf.mxu0  ;;  %v3758_v56 = vadd.f32 %v1241_v61, %v1146_v14 }
 0x17a   : > { %1813 = vmatmul.bf16.gmra.mxu1 %v3892_v58  ;;  %v1033_v29 = vadd.f32 %v1016_v45, %v919_v23  ;;  %1932 = vmatmul.bf16.gmra.mxu2 %v3894_v38 }
 0x17b   : > { %2041 = vmatmul.bf16.gmra.mxu3 %v3893_v2 }
 0x17d   : > { %v1021_v0 = vpop.f32.mrf.mxu2 }
 0x17e   : > { %v1130_v41 = vpop.f32.mrf.mxu3 }
 0x17f   : > { %v1147_v54 = vadd.f32 %v1130_v41, %v1033_v29  ;;  %v904_v25 = vpop.f32.mrf.mxu1 }
 0x180   : > { %v920_v39 = vadd.f32 %v904_v25, %v3716_v59  ;;  %v3896_v59 = vpack.c.bf16 %v3466_v47, %v3464_v46  ;;  %v1734_v47 = vpack.c.bf16 %v1730_v12, %v3601_v27 }
 0x181   : > { %v1246_v42 = vpop.f32.mrf.mxu0  ;;  %v3770_v57 = vadd.f32 %v1244_v36, %v1147_v54 }
 0x182   : > { %v1034_v62 = vadd.f32 %v1018_v55, %v920_v39 }
 0x185   : > { %v1023_v40 = vpop.f32.mrf.mxu2 }
 0x186   : > { %v1132_v3 = vpop.f32.mrf.mxu3 }
 0x187   : > { %v1148_v20 = vadd.f32 %v1132_v3, %v1034_v62  ;;  %v907_v10 = vpop.f32.mrf.mxu1 }
 0x188   : > { %v921_v53 = vadd.f32 %v907_v10, %v3728_v11 }
 0x189   : > { %v1249_v37 = vpop.f32.mrf.mxu0  ;;  %v1262_v8 = vadd.f32 %v1246_v42, %v1148_v20 }
 0x18a   : > { %1818 = vmatmul.bf16.gmra.mxu1 %v3895_v63  ;;  %v1035_v50 = vadd.f32 %v1021_v0, %v921_v53  ;;  %1937 = vmatmul.bf16.gmra.mxu2 %v1848_v34 }
 0x18b   : > { %2046 = vmatmul.bf16.gmra.mxu3 %v3896_v59 }
 0x18d   : > { %v1026_v52 = vpop.f32.mrf.mxu2 }
 0x18e   : > { %v1135_v44 = vpop.f32.mrf.mxu3 }
 0x18f   : > { %v1149_v30 = vadd.f32 %v1135_v44, %v1035_v50  ;;  %v909_v9 = vpop.f32.mrf.mxu1 }
 0x190   : > { %v922_v11 = vadd.f32 %v909_v9, %v3731_v1 }
 0x191   : > { %v1263_v7 = vadd.f32 %v1249_v37, %v1149_v30  ;;  %v1251_v31 = vpop.f32.mrf.mxu0 }
 0x192   : > { %v1036_v35 = vadd.f32 %v1023_v40, %v922_v11 }
 0x195   : > { %v1028_v43 = vpop.f32.mrf.mxu2 }
 0x196   : > { %v1137_v32 = vpop.f32.mrf.mxu3 }
 0x197   : > { %v1150_v33 = vadd.f32 %v1137_v32, %v1036_v35  ;;  %v912_v28 = vpop.f32.mrf.mxu1 }
 0x198   : > { %v923_v46 = vadd.f32 %v912_v28, %v3739_v13 }
 0x199   : > { %v1264_v21 = vadd.f32 %v1251_v31, %v1150_v33  ;;  %v1254_v1 = vpop.f32.mrf.mxu0 }
 0x19a   : > { %1823 = vmatmul.bf16.gmra.mxu1 %v1734_v47  ;;  %v1037_v5 = vadd.f32 %v1026_v52, %v923_v46 }
 0x19b   : > { %2051 = vmatmul.bf16.gmra.mxu3 %v1962_v15 }
 0x19d   : > { %v1467_v60 = vpop.f32.mrf.mxu2 }
 0x19e   : > { %v1140_v48 = vpop.f32.mrf.mxu3 }
 0x19f   : > { %v1151_v18 = vadd.f32 %v1140_v48, %v1037_v5  ;;  %v914_v45 = vpop.f32.mrf.mxu1 }
 0x1a0   : > { %v924_v49 = vadd.f32 %v914_v45, %v3743_v24 }
 0x1a1   : > { %v1265_v51 = vadd.f32 %v1254_v1, %v1151_v18  ;;  %v3785_v16 = vpop.f32.mrf.mxu0 }
 0x1a2   : > { %v1038_v61 = vadd.f32 %v1028_v43, %v924_v49 }
 0x1a5   : > { %v1469_v27 = vpop.f32.mrf.mxu2 }
 0x1a6   : > { %v1142_v13 = vpop.f32.mrf.mxu3 }
 0x1a7   : > { %v3787_v22 = vadd.f32 %v1142_v13, %v1038_v61  ;;  %v1353_v6 = vpop.f32.mrf.mxu1 }
 0x1a8   : > { %v1373_v14 = vadd.f32 %v1353_v6, %v3755_v19 }
 0x1a9   : > { %v1695_v58 = vpop.f32.mrf.mxu0 }
 0x1aa   : > { %v1487_v55 = vadd.f32 %v1467_v60, %v1373_v14 }
 0x1ad   : > { %v1472_v36 = vpop.f32.mrf.mxu2 }
 0x1ae   : > { %v1581_v17 = vpop.f32.mrf.mxu3 }
 0x1af   : > { %v1601_v23 = vadd.f32 %v1581_v17, %v1487_v55  ;;  %v1355_v2 = vpop.f32.mrf.mxu1 }
 0x1b0   : > { %v1374_v29 = vadd.f32 %v1355_v2, %v3758_v56 }
 0x1b1   : > { %v1715_v24 = vadd.f32 %v1695_v58, %v1601_v23  ;;  %v1697_v28 = vpop.f32.mrf.mxu0 }
 0x1b2   : > { %v1488_v38 = vadd.f32 %v1469_v27, %v1374_v29  ;;  %v1266_v29 = vadd.f32 %v3785_v16, %v3787_v22 }
 0x1b5   : > { %v1474_v0 = vpop.f32.mrf.mxu2 }
 0x1b6   : > { %v1583_v41 = vpop.f32.mrf.mxu3 }
 0x1b7   : > { %v3791_v54 = vadd.f32 %v1583_v41, %v1488_v38  ;;  %v1358_v25 = vpop.f32.mrf.mxu1 }
 0x1b8   : > { %v1375_v39 = vadd.f32 %v1358_v25, %v3770_v57 }
 0x1b9   : > { %v1700_v1 = vpop.f32.mrf.mxu0 }
 0x1ba   : > { %v1489_v42 = vadd.f32 %v1472_v36, %v1375_v39 }
 0x1bd   : > { %v1477_v3 = vpop.f32.mrf.mxu2 }
 0x1be   : > { %v1586_v62 = vpop.f32.mrf.mxu3 }
 0x1bf   : > { %v3794_v19 = vadd.f32 %v1586_v62, %v1489_v42  ;;  %v1360_v20 = vpop.f32.mrf.mxu1 }
 0x1c0   : > { %v1376_v40 = vadd.f32 %v1360_v20, %v1262_v8 }
 0x1c1   : > { %v1702_v45 = vpop.f32.mrf.mxu0 }
 0x1c2   : > { %v1490_v4 = vadd.f32 %v1474_v0, %v1376_v40 }
 0x1c5   : > { %v1479_v56 = vpop.f32.mrf.mxu2 }
 0x1c6   : > { %v1588_v10 = vpop.f32.mrf.mxu3 }
 0x1c7   : > { %v3796_v53 = vadd.f32 %v1588_v10, %v1490_v4  ;;  %v1363_v37 = vpop.f32.mrf.mxu1 }
 0x1c8   : > { %v1377_v34 = vadd.f32 %v1363_v37, %v1263_v7 }
 0x1c9   : > { %v1705_v27 = vpop.f32.mrf.mxu0 }
 0x1ca   : > { %v1491_v63 = vadd.f32 %v1477_v3, %v1377_v34 }
 0x1cd   : > { %v1482_v44 = vpop.f32.mrf.mxu2 }
 0x1ce   : > { %v1591_v59 = vpop.f32.mrf.mxu3 }
 0x1cf   : > { %v1605_v50 = vadd.f32 %v1591_v59, %v1491_v63  ;;  %v1365_v30 = vpop.f32.mrf.mxu1  ;;  %v1718_v63 = vadd.f32 %v1702_v45, %v3796_v53  ;;  %v2096_v45 = vld [vmem:[%s3874_s4 + $0x38] sm:$0xff] }
 0x1d0   : > { %v1378_v57 = vadd.f32 %v1365_v30, %v1264_v21 }
 0x1d1   : > { %v1707_v23 = vpop.f32.mrf.mxu0  ;;  %v1719_v10 = vadd.f32 %v1705_v27, %v1605_v50  ;;  %v2071_v50 = vld [vmem:[%s3873_s3 + $0x30] sm:$0xff] }
 0x1d2   : > { %v1492_v52 = vadd.f32 %v1479_v56, %v1378_v57 }
 0x1d5   : > { %v1484_v31 = vpop.f32.mrf.mxu2 }
 0x1d6   : > { %v1593_v9 = vpop.f32.mrf.mxu3 }
 0x1d7   : > { %v1606_v11 = vadd.f32 %v1593_v9, %v1492_v52  ;;  %v1368_v35 = vpop.f32.mrf.mxu1  ;;  %v1716_v9 = vadd.f32 %v1697_v28, %v3791_v54 }
 0x1d8   : > { %v1379_v32 = vadd.f32 %v1368_v35, %v1265_v51 }
 0x1d9   : > { %v1720_v3 = vadd.f32 %v1707_v23, %v1606_v11 }
 0x1da   : > { %v1493_v8 = vadd.f32 %v1482_v44, %v1379_v32  ;;  %v1717_v44 = vadd.f32 %v1700_v1, %v3794_v19 }
 0x1dd   : > { %v1923_v33 = vpop.f32.mrf.mxu2 }
 0x1de   : > { %v1596_v12 = vpop.f32.mrf.mxu3 }
 0x1df   : > { %v1607_v26 = vadd.f32 %v1596_v12, %v1493_v8  ;;  %v1370_v43 = vpop.f32.mrf.mxu1  ;;  %v2070_v12 = vld [vmem:[%s3873_s3 + $0x28] sm:$0xff] }
 0x1e0   : > { %v1380_v38 = vadd.f32 %v1370_v43, %v1266_v29 }
 0x1e2   : > { %v1494_v25 = vadd.f32 %v1484_v31, %v1380_v38 }
 0x1e5   : > { %v3798_v47 = vpop.f32.mrf.mxu2 }
 0x1e6   : > { %v1598_v46 = vpop.f32.mrf.mxu3 }
 0x1e7   : > { %v1809_v7 = vpop.f32.mrf.mxu1  ;;  %v1608_v42 = vadd.f32 %v1598_v46, %v1494_v25  ;;  %v2069_v46 = vld [vmem:[%s3873_s3 + $0x20] sm:$0xff]  ;;  %v2092_v25 = vld [vmem:[%s3874_s4 + $0x18] sm:$0xff] }
 0x1e8   : > { %v1829_v15 = vadd.f32 %v1809_v7, %v1715_v24  ;;  %v1710_v24 = vpop.f32.mrf.mxu0 }
 0x1e9   : > { %v1721_v62 = vadd.f32 %v1710_v24, %v1607_v26  ;;  %v2072_v26 = vld [vmem:[%s3873_s3 + $0x38] sm:$0xff]  ;;  %v2065_v24 = vld [vmem:[%s3873_s3] sm:$0xff] }
 0x1ea   : > { %v1943_v5 = vadd.f32 %v1923_v33, %v1829_v15 }
 0x1ed   : > { %v1928_v60 = vpop.f32.mrf.mxu2 }
 0x1ee   : > { %v2037_v21 = vpop.f32.mrf.mxu3 }
 0x1ef   : > { %v3800_v48 = vadd.f32 %v2037_v21, %v1943_v5  ;;  %v1811_v18 = vpop.f32.mrf.mxu1 }
 0x1f0   : > { %v1712_v40 = vpop.f32.mrf.mxu0  ;;  %v1830_v53 = vadd.f32 %v1811_v18, %v1716_v9  ;;  %v2068_v18 = vld [vmem:[%s3873_s3 + $0x18] sm:$0xff] }
 0x1f1   : > { %v1722_v37 = vadd.f32 %v1712_v40, %v1608_v42 }
 0x1f2   : > { %v1944_v21 = vadd.f32 %v3798_v47, %v1830_v53  ;;  %v2095_v47 = vld [vmem:[%s3874_s4 + $0x30] sm:$0xff] }
 0x1f5   : > { %v1930_v61 = vpop.f32.mrf.mxu2 }
 0x1f6   : > { %v3802_v49 = vpop.f32.mrf.mxu3 }
 0x1f7   : > { %v1814_v51 = vpop.f32.mrf.mxu1 }
 0x1f8   : > { %v1831_v31 = vadd.f32 %v1814_v51, %v1717_v44 }
 0x1fa   : > { %v1945_v7 = vadd.f32 %v1928_v60, %v1831_v31  ;;  %v2067_v60 = vld [vmem:[%s3873_s3 + $0x10] sm:$0xff] }
 0x1fd   : > { %v1933_v14 = vpop.f32.mrf.mxu2 }
 0x1fe   : > { %v2042_v13 = vpop.f32.mrf.mxu3 }
 0x1ff   : > { %v1816_v6 = vpop.f32.mrf.mxu1  ;;  %v2059_v51 = vadd.f32 %v2042_v13, %v1945_v7  ;;  %v2066_v13 = vld [vmem:[%s3873_s3 + $0x8] sm:$0xff] }
 0x200   : > { %v1832_v30 = vadd.f32 %v1816_v6, %v1718_v63  ;;  %v2105_v63 = vld [vmem:[%s3875_s5] sm:$0xf] }
 0x202   : > { %v1946_v54 = vadd.f32 %v1930_v61, %v1832_v30 }
 0x205   : > { %v1935_v58 = vpop.f32.mrf.mxu2 }
 0x206   : > { %v2044_v55 = vpop.f32.mrf.mxu3 }
 0x207   : > { %v1819_v17 = vpop.f32.mrf.mxu1  ;;  %v2060_v15 = vadd.f32 %v2044_v55, %v1946_v54 }
 0x208   : > { %v1833_v59 = vadd.f32 %v1819_v17, %v1719_v10 }
 0x209   : > { %v2076_v55 = vadd.f32 %v2068_v18, %v2060_v15 }
 0x20a   : > { %v1947_v35 = vadd.f32 %v1933_v14, %v1833_v59  ;;  %v2058_v14 = vadd.f32 %v3802_v49, %v1944_v21  ;;  %v2093_v49 = vld [vmem:[%s3874_s4 + $0x20] sm:$0xff] }
 0x20c   : > { %v2074_v38 = vadd.f32 %v2066_v13, %v2058_v14 }
 0x20d   : > { %v1938_v39 = vpop.f32.mrf.mxu2 }
 0x20e   : > { %v2047_v36 = vpop.f32.mrf.mxu3 }
 0x20f   : > { %v1821_v2 = vpop.f32.mrf.mxu1  ;;  %v2061_v33 = vadd.f32 %v2047_v36, %v1947_v35  ;;  %v2094_v36 = vld [vmem:[%s3874_s4 + $0x28] sm:$0xff] }
 0x210   : > { %v1834_v56 = vadd.f32 %v1821_v2, %v1720_v3  ;;  %v2091_v3 = vld [vmem:[%s3874_s4 + $0x10] sm:$0xff] }
 0x211   : > { %v2077_v61 = vadd.f32 %v2069_v46, %v2061_v33 }
 0x212   : > { %v1948_v57 = vadd.f32 %v1935_v58, %v1834_v56  ;;  %v2075_v58 = vadd.f32 %v2067_v60, %v2059_v51 }
 0x213   : > { %v2085_v2 = vmax.f32 %v2077_v61, 0.0 }
 0x214   : > { %v2083_v42 = vmax.f32 %v2075_v58, 0.0 }
 0x215   : > { %v1940_v11 = vpop.f32.mrf.mxu2 }
 0x216   : > { %v2049_v41 = vpop.f32.mrf.mxu3  ;;  %v2099_v56 = vmul.f32 %v2091_v3, %v2083_v42 }
 0x217   : > { %v1824_v0 = vpop.f32.mrf.mxu1  ;;  %v2062_v32 = vadd.f32 %v2049_v41, %v1948_v57  ;;  %v2084_v41 = vmax.f32 %v2076_v55, 0.0 }
 0x218   : > { %v1835_v20 = vadd.f32 %v1824_v0, %v1721_v62  ;;  %v2101_v62 = vmul.f32 %v2093_v49, %v2085_v2 }
 0x219   : > { %v2078_v5 = vadd.f32 %v2070_v12, %v2062_v32  ;;  %v2100_v40 = vmul.f32 %v2092_v25, %v2084_v41 }
 0x21a   : > { %v1949_v16 = vadd.f32 %v1938_v39, %v1835_v20  ;;  %v2073_v39 = vadd.f32 %v2065_v24, %v3800_v48  ;;  %v2082_v20 = vmax.f32 %v2074_v38, 0.0  ;;  %v2089_v48 = vld [vmem:[%s3874_s4] sm:$0xff] }
 0x21b   : > { %v2086_v17 = vmax.f32 %v2078_v5, 0.0 }
 0x21c   : > { %v2081_v10 = vmax.f32 %v2073_v39, 0.0 }
 0x21d   : > { %v2102_v0 = vmul.f32 %v2094_v36, %v2086_v17 }
 0x21e   : > { %v2052_v4 = vpop.f32.mrf.mxu3 }
 0x21f   : > { %v1826_v34 = vpop.f32.mrf.mxu1  ;;  %v2063_v52 = vadd.f32 %v2052_v4, %v1949_v16  ;;  %v2090_v4 = vld [vmem:[%s3874_s4 + $0x8] sm:$0xff] }
 0x220   : > { %v1836_v22 = vadd.f32 %v1826_v34, %v1722_v37  ;;  %v2098_v37 = vmul.f32 %v2090_v4, %v2082_v20  ;;  %v2097_v34 = vmul.f32 %v2089_v48, %v2081_v10 }
 0x221   : > { %v2079_v43 = vadd.f32 %v2071_v50, %v2063_v52 }
 0x222   : > { %v1950_v8 = vadd.f32 %v1940_v11, %v1836_v22  ;;  %v2135_v22 = vstv %s2134_s22 }
 0x223   : > { %v2087_v27 = vmax.f32 %v2079_v43, 0.0 }
 0x225   : > { %v2103_v29 = vmul.f32 %v2095_v47, %v2087_v27 }
 0x226   : > { %v2054_v19 = vpop.f32.mrf.mxu3 }
 0x227   : > { %v2064_v28 = vadd.f32 %v2054_v19, %v1950_v8 }
 0x229   : > { %v2080_v1 = vadd.f32 %v2072_v26, %v2064_v28 }
 0x22b   : > { %v2088_v6 = vmax.f32 %v2080_v1, 0.0 }
 0x22d   : > { %v2104_v23 = vmul.f32 %v2096_v45, %v2088_v6 }
 0x22f   : > { %2118 = vmatpush.msra.mxu0 %v2104_v23 }
 0x231   : > { %2119 = vmatpush.msra.mxu0 %v2103_v29 }
 0x233   : > { %2120 = vmatpush.msra.mxu0 %v2102_v0 }
 0x235   : > { %2121 = vmatpush.msra.mxu0 %v2101_v62 }
 0x237   : > { %2122 = vmatpush.msra.mxu0 %v2100_v40 }
 0x239   : > { %2123 = vmatpush.msra.mxu0 %v2099_v56 }
 0x23b   : > { %2124 = vmatpush.msra.mxu0 %v2098_v37 }
 0x23d   : > { %2125 = vmatpush.msra.mxu0 %v2097_v34 }
 0x23e   : > { %2911 = vmatmul.msk.f32.vlgmr.msra.gmra.mxu0 %vm2106_vm1, %v2105_v63 }
 0x2bb   : > { %v2127_v59 = vpop.f32.mrf.mxu0 }
 0x2bc   : > { %v2131_v16 = vsel %vm2130_vm2, %v2127_v59, 0.0 }
 0x2bd   : > { %2132 = vadd.xlane.f32.xlu0 %v2131_v16 }
 0x330   : > { %v2133_v44 = vpop.xlane.xlu0 %2132 }
 0x331   : > { %v2136_v30 = vadd.f32 %v2135_v22, %v2133_v44 }
 0x333   : > { %2137 = vst [vmem:[%s277_s28] sm:$0xf] %v2136_v30 }
 0x334 PF: > { %s18_s26 = sadd.s32 1, %s3050_s26  }
 0x335   : > { %p15_p4 = scmp.ge.s32.totalorder %s18_s26, 4  }
 0x337   :  { %17 = sbr.rel (!%p15_p4) target bundleno = 2 (0x2), region = 92 }

</bundles_post_ra>
